<compile_context>
chip_gen: v6e
topology: v6e:2x2x1
jax: 0.10.0
libtpu: 0.0.40
codegen_flags: <defaults>
</compile_context>

<pallas_src>
import functools

import jax
import jax.numpy as jnp
from jax import lax
from jax.experimental import pallas as pl
from jax.experimental.pallas import tpu as pltpu

_NEG = -3.0e38  # -inf surrogate for max-pool padding (PyTorch ignores padding)


def _silu(z):
    return z * (1.0 / (1.0 + jnp.exp(-z)))


def _spp_kernel(x_ref, w1_ref, b1_ref, w2_ref, b2_ref, wpos_ref,
                o_ref, bufa_ref, bufb_ref, *, ks, W, pf):
    """One batch image: cv1 -> {identity, maxpool_k for k in ks} -> cat -> cv2."""
    f32 = jnp.float32
    HW = x_ref.shape[2]

    # ---- cv1: 1x1 conv (channel matmul on the MXU) + folded-BN bias + SiLU
    x = x_ref[0].astype(f32)                                   # (C1, HW)
    z1 = jnp.dot(w1_ref[...], x, preferred_element_type=f32,
                 precision=lax.Precision.HIGHEST) + b1_ref[...]
    y = _silu(z1)                                              # (C_, HW)

    # ---- stage y in a lane-padded scratch: every pooling tap becomes a
    #      static shifted slice; padding acts as -inf for the running max.
    bufa_ref[...] = jnp.full(bufa_ref.shape, _NEG, f32)
    bufa_ref[:, pf:pf + HW] = y                                # lane-aligned store
    bufb_ref[...] = jnp.full(bufb_ref.shape, _NEG, f32)

    # ---- W-direction taps (shared by all kernel sizes), masked at row
    #      boundaries via the precomputed (1, HW) column-index vector.
    wpos = wpos_ref[...]                                       # (1, HW) int32
    pmax = max(ks) // 2
    tap = {}
    for d in range(-pmax, pmax + 1):
        s = bufa_ref[:, pf + d:pf + d + HW]                    # (C_, HW)
        valid = (wpos + d >= 0) & (wpos + d < W)
        tap[d] = jnp.where(valid, s, _NEG)

    feats = [y]
    for k in ks:
        p = k // 2
        # separable max-pool, pass 1: along W (lane direction)
        wacc = tap[0]
        for d in range(1, p + 1):
            wacc = jnp.maximum(wacc, jnp.maximum(tap[d], tap[-d]))
        # pass 2: along H = shifts by multiples of W; out-of-range rows land
        # in the -inf padding of the scratch, so no mask is needed.
        bufb_ref[:, pf:pf + HW] = wacc
        hacc = wacc
        for dh in range(1, p + 1):
            up = bufb_ref[:, pf - dh * W:pf - dh * W + HW]
            dn = bufb_ref[:, pf + dh * W:pf + dh * W + HW]
            hacc = jnp.maximum(hacc, jnp.maximum(up, dn))
        feats.append(hacc)

    # ---- concat on channels (sublane axis) + cv2 matmul + SiLU
    cat = jnp.concatenate(feats, axis=0)                       # (4*C_, HW)
    z2 = jnp.dot(w2_ref[...], cat, preferred_element_type=f32,
                 precision=lax.Precision.HIGHEST) + b2_ref[...]
    o_ref[0] = _silu(z2).astype(o_ref.dtype)                   # lane-dense store


def spp_forward(x, w1, bn1, w2, bn2, k=(5, 9, 13), eps=1e-5):
    """SPP forward (eval mode). x: (B, C1, H, W) -> (B, C2, H, W).

    w1: (C_, C1, 1, 1), w2: (C2, C_*(len(k)+1), 1, 1);
    bn1 / bn2 = (gamma, beta, running_mean, running_var) of the two Convs.
    """
    B, C1, H, W = x.shape
    HW = H * W
    C_ = w1.shape[0]
    C2 = w2.shape[0]
    assert w1.shape == (C_, C1, 1, 1)
    assert w2.shape == (C2, C_ * (len(k) + 1), 1, 1)
    # TODO(synk): training-mode BatchNorm (batch statistics / running-stat
    # updates) is not implemented; eval-mode BN is folded exactly into cv1/cv2.

    def fold(w, bn):
        g, b, m, v = bn
        s = g / jnp.sqrt(v + eps)
        wf = (w[:, :, 0, 0] * s[:, None]).astype(jnp.float32)
        bf = (b - m * s).astype(jnp.float32)
        return wf, bf.reshape(-1, 1)

    w1f, b1f = fold(w1, bn1)
    w2f, b2f = fold(w2, bn2)

    pmax = max(k) // 2
    # lane padding: >= pmax (W-pass) and >= pmax*W (H-pass); rounded to a
    # multiple of 128 so the center store into the scratch is lane-aligned.
    pf = max(128, -(-(pmax * W) // 128) * 128)
    wpos = (jnp.arange(HW, dtype=jnp.int32) % W).reshape(1, HW)

    x2 = x.reshape(B, C1, HW)      # free metadata reshape; lanes = flat H*W
    kern = functools.partial(_spp_kernel, ks=tuple(k), W=W, pf=pf)

    out = pl.pallas_call(
        kern,
        out_shape=jax.ShapeDtypeStruct((B, C2, HW), jnp.float32),
        grid_spec=pltpu.PrefetchScalarGridSpec(
            num_scalar_prefetch=0,
            grid=(B,),                                  # one fused step / image
            in_specs=[
                pl.BlockSpec((1, C1, HW), lambda b: (b, 0, 0)),
                pl.BlockSpec((C_, C1), lambda b: (0, 0)),          # resident
                pl.BlockSpec((C_, 1), lambda b: (0, 0)),
                pl.BlockSpec((C2, C_ * (len(k) + 1)), lambda b: (0, 0)),
                pl.BlockSpec((C2, 1), lambda b: (0, 0)),
                pl.BlockSpec((1, HW), lambda b: (0, 0)),
            ],
            out_specs=pl.BlockSpec((1, C2, HW), lambda b: (b, 0, 0)),
            scratch_shapes=[
                pltpu.VMEM((C_, HW + 2 * pf), jnp.float32),  # padded cv1 output
                pltpu.VMEM((C_, HW + 2 * pf), jnp.float32),  # padded row-pooled
            ],
        ),
        compiler_params=pltpu.CompilerParams(
            dimension_semantics=("parallel",),   # batch -> v7x megacore sharding
            vmem_limit_bytes=32 * 1024 * 1024,   # explicit, safe on v5e/v6e/v7x
        ),
    )(x2, w1f, b1f, w2f, b2f, wpos)

    # TODO(synk): for large H*W, add a second grid axis tiling HW in lane
    # multiples (with a pmax*W halo) instead of one whole-image block.
    return out.reshape(B, C2, H, W)


def _spp_reference(x, w1, bn1, w2, bn2, k=(5, 9, 13), eps=1e-5):
    """Pure-JAX mirror of the PyTorch module (eval mode)."""
    def conv_bn_silu(t, w, bn):
        g, b, m, v = bn
        z = jnp.einsum("bchw,oc->bohw", t, w[:, :, 0, 0],
                       precision=lax.Precision.HIGHEST)
        s = g / jnp.sqrt(v + eps)
        z = (z - m[None, :, None, None]) * s[None, :, None, None] \
            + b[None, :, None, None]
        return z * jax.nn.sigmoid(z)

    y = conv_bn_silu(x, w1, bn1)
    pools = []
    for kk in k:
        p = kk // 2
        pools.append(lax.reduce_window(
            y, -jnp.inf, lax.max,
            window_dimensions=(1, 1, kk, kk),
            window_strides=(1, 1, 1, 1),
            padding=((0, 0), (0, 0), (p, p), (p, p))))
    return conv_bn_silu(jnp.concatenate([y] + pools, axis=1), w2, bn2)


if __name__ == "__main__":
    key = jax.random.PRNGKey(0)
    B, C1, C2, H, W = 2, 32, 32, 16, 16
    ks = (5, 9, 13)
    C_ = C1 // 2

    keys = jax.random.split(key, 11)
    x = jax.random.normal(keys[0], (B, C1, H, W), dtype=jnp.float32)
    w1 = 0.1 * jax.random.normal(keys[1], (C_, C1, 1, 1), dtype=jnp.float32)
    w2 = 0.1 * jax.random.normal(keys[2], (C2, C_ * (len(ks) + 1), 1, 1),
                                 dtype=jnp.float32)
    bn1 = (1.0 + 0.1 * jax.random.normal(keys[3], (C_,), dtype=jnp.float32),
           0.1 * jax.random.normal(keys[4], (C_,), dtype=jnp.float32),
           0.1 * jax.random.normal(keys[5], (C_,), dtype=jnp.float32),
           1.0 + 0.5 * jax.random.uniform(keys[6], (C_,), dtype=jnp.float32))
    bn2 = (1.0 + 0.1 * jax.random.normal(keys[7], (C2,), dtype=jnp.float32),
           0.1 * jax.random.normal(keys[8], (C2,), dtype=jnp.float32),
           0.1 * jax.random.normal(keys[9], (C2,), dtype=jnp.float32),
           1.0 + 0.5 * jax.random.uniform(keys[10], (C2,), dtype=jnp.float32))

    out = spp_forward(x, w1, bn1, w2, bn2, k=ks)
    out = jax.block_until_ready(out)

    ref = _spp_reference(x, w1, bn1, w2, bn2, k=ks)
    assert out.shape == (B, C2, H, W)
    err = float(jnp.max(jnp.abs(out - ref)))
    assert jnp.allclose(out, ref, atol=1e-3, rtol=1e-3), f"max abs err = {err}"

    print("KERNEL_OK")
</pallas_src>

<mosaic_0001>
module attributes {stable_mosaic.version = 11 : i64} {
  func.func @_spp_kernel(%arg0: i32, %arg1: memref<1x32x256xf32, #tpu.memory_space<vmem>>, %arg2: memref<16x32xf32, #tpu.memory_space<vmem>>, %arg3: memref<16x1xf32, #tpu.memory_space<vmem>>, %arg4: memref<32x64xf32, #tpu.memory_space<vmem>>, %arg5: memref<32x1xf32, #tpu.memory_space<vmem>>, %arg6: memref<1x256xi32, #tpu.memory_space<vmem>>, %arg7: memref<1x32x256xf32, #tpu.memory_space<vmem>>, %arg8: memref<16x512xf32, #tpu.memory_space<vmem>>, %arg9: memref<16x512xf32, #tpu.memory_space<vmem>>) attributes {dimension_semantics = [#tpu.dimension_semantics<parallel>], iteration_bounds = array<i64: 2>, scalar_prefetch = 0 : i64, scratch_operands = 2 : i64, tpu.core_type = #tpu.core_type<tc>, window_params = [{transform_indices = @transform_0, window_bounds = array<i64: 1, 32, 256>}, {pipeline_mode = #tpu.pipeline_mode<synchronous>, transform_indices = @transform_1, window_bounds = array<i64: 16, 32>}, {pipeline_mode = #tpu.pipeline_mode<synchronous>, transform_indices = @transform_2, window_bounds = array<i64: 16, 1>}, {pipeline_mode = #tpu.pipeline_mode<synchronous>, transform_indices = @transform_3, window_bounds = array<i64: 32, 64>}, {pipeline_mode = #tpu.pipeline_mode<synchronous>, transform_indices = @transform_4, window_bounds = array<i64: 32, 1>}, {pipeline_mode = #tpu.pipeline_mode<synchronous>, transform_indices = @transform_5, window_bounds = array<i64: 1, 256>}, {transform_indices = @transform_6, window_bounds = array<i64: 1, 32, 256>}]} {
    %c0 = arith.constant 0 : index
    %c0_0 = arith.constant 0 : index
    %c0_1 = arith.constant 0 : index
    %0 = vector.load %arg1[%c0, %c0_0, %c0_1] : memref<1x32x256xf32, #tpu.memory_space<vmem>>, vector<1x32x256xf32>
    %1 = vector.shape_cast %0 : vector<1x32x256xf32> to vector<32x256xf32>
    %c0_2 = arith.constant 0 : index
    %c0_3 = arith.constant 0 : index
    %2 = vector.load %arg2[%c0_2, %c0_3] : memref<16x32xf32, #tpu.memory_space<vmem>>, vector<16x32xf32>
    %cst = arith.constant dense<0.000000e+00> : vector<16x256xf32>
    %3 = tpu.matmul %2, %1, %cst {dimension_numbers = #tpu.dot_dimension_numbers<[1], [0], [0], [1], [0, 0, 1, 1], [], []>, precision = #tpu.contract_precision<fp32>} : vector<16x32xf32>, vector<32x256xf32>, vector<16x256xf32> -> vector<16x256xf32>
    %c0_4 = arith.constant 0 : index
    %c0_5 = arith.constant 0 : index
    %4 = vector.load %arg3[%c0_4, %c0_5] : memref<16x1xf32, #tpu.memory_space<vmem>>, vector<16x1xf32>
    %5 = vector.broadcast %4 : vector<16x1xf32> to vector<16x256xf32>
    %6 = arith.addf %3, %5 : vector<16x256xf32>
    %cst_6 = arith.constant 0.000000e+00 : f32
    %7 = vector.broadcast %cst_6 : f32 to vector<16x256xf32>
    %8 = arith.subf %7, %6 : vector<16x256xf32>
    %9 = math.exp %8 : vector<16x256xf32>
    %cst_7 = arith.constant 1.000000e+00 : f32
    %10 = vector.broadcast %cst_7 : f32 to vector<16x256xf32>
    %11 = arith.addf %10, %9 : vector<16x256xf32>
    %cst_8 = arith.constant 1.000000e+00 : f32
    %12 = vector.broadcast %cst_8 : f32 to vector<16x256xf32>
    %13 = arith.divf %12, %11 : vector<16x256xf32>
    %14 = arith.mulf %6, %13 : vector<16x256xf32>
    %cst_9 = arith.constant -3.000000e+38 : f32
    %15 = vector.broadcast %cst_9 : f32 to vector<16x512xf32>
    %c0_10 = arith.constant 0 : index
    %c0_11 = arith.constant 0 : index
    %16 = vector.load %arg8[%c0_10, %c0_11] : memref<16x512xf32, #tpu.memory_space<vmem>>, vector<16x512xf32>
    tpu.vector_store %arg8[%c0_10, %c0_11], %15 {strides = array<i32>} : memref<16x512xf32, #tpu.memory_space<vmem>>, vector<16x512xf32>,
    %c0_12 = arith.constant 0 : index
    %c128 = arith.constant 128 : index
    %17 = vector.load %arg8[%c0_12, %c128] : memref<16x512xf32, #tpu.memory_space<vmem>>, vector<16x256xf32>
    tpu.vector_store %arg8[%c0_12, %c128], %14 {strides = array<i32>} : memref<16x512xf32, #tpu.memory_space<vmem>>, vector<16x256xf32>,
    %cst_13 = arith.constant -3.000000e+38 : f32
    %18 = vector.broadcast %cst_13 : f32 to vector<16x512xf32>
    %c0_14 = arith.constant 0 : index
    %c0_15 = arith.constant 0 : index
    %19 = vector.load %arg9[%c0_14, %c0_15] : memref<16x512xf32, #tpu.memory_space<vmem>>, vector<16x512xf32>
    tpu.vector_store %arg9[%c0_14, %c0_15], %18 {strides = array<i32>} : memref<16x512xf32, #tpu.memory_space<vmem>>, vector<16x512xf32>,
    %c0_16 = arith.constant 0 : index
    %c0_17 = arith.constant 0 : index
    %20 = vector.load %arg6[%c0_16, %c0_17] : memref<1x256xi32, #tpu.memory_space<vmem>>, vector<1x256xi32>
    %c0_18 = arith.constant 0 : index
    %c122 = arith.constant 122 : index
    %21 = vector.load %arg8[%c0_18, %c122] : memref<16x512xf32, #tpu.memory_space<vmem>>, vector<16x256xf32>
    %c-6_i32 = arith.constant -6 : i32
    %22 = vector.broadcast %c-6_i32 : i32 to vector<1x256xi32>
    %23 = arith.addi %20, %22 : vector<1x256xi32>
    %c0_i32 = arith.constant 0 : i32
    %24 = vector.broadcast %c0_i32 : i32 to vector<1x256xi32>
    %25 = arith.cmpi sge, %23, %24 : vector<1x256xi32>
    %c-6_i32_19 = arith.constant -6 : i32
    %26 = vector.broadcast %c-6_i32_19 : i32 to vector<1x256xi32>
    %27 = arith.addi %20, %26 : vector<1x256xi32>
    %c16_i32 = arith.constant 16 : i32
    %28 = vector.broadcast %c16_i32 : i32 to vector<1x256xi32>
    %29 = arith.cmpi slt, %27, %28 : vector<1x256xi32>
    %30 = arith.andi %25, %29 : vector<1x256xi1>
    %cst_20 = arith.constant -3.000000e+38 : f32
    %31 = vector.shape_cast %30 : vector<1x256xi1> to vector<1x256xi1>
    %32 = vector.broadcast %31 : vector<1x256xi1> to vector<16x256xi1>
    %33 = vector.broadcast %cst_20 : f32 to vector<16x256xf32>
    %34 = arith.select %32, %21, %33 : vector<16x256xi1>, vector<16x256xf32>
    %c0_21 = arith.constant 0 : index
    %c123 = arith.constant 123 : index
    %35 = vector.load %arg8[%c0_21, %c123] : memref<16x512xf32, #tpu.memory_space<vmem>>, vector<16x256xf32>
    %c-5_i32 = arith.constant -5 : i32
    %36 = vector.broadcast %c-5_i32 : i32 to vector<1x256xi32>
    %37 = arith.addi %20, %36 : vector<1x256xi32>
    %c0_i32_22 = arith.constant 0 : i32
    %38 = vector.broadcast %c0_i32_22 : i32 to vector<1x256xi32>
    %39 = arith.cmpi sge, %37, %38 : vector<1x256xi32>
    %c-5_i32_23 = arith.constant -5 : i32
    %40 = vector.broadcast %c-5_i32_23 : i32 to vector<1x256xi32>
    %41 = arith.addi %20, %40 : vector<1x256xi32>
    %c16_i32_24 = arith.constant 16 : i32
    %42 = vector.broadcast %c16_i32_24 : i32 to vector<1x256xi32>
    %43 = arith.cmpi slt, %41, %42 : vector<1x256xi32>
    %44 = arith.andi %39, %43 : vector<1x256xi1>
    %cst_25 = arith.constant -3.000000e+38 : f32
    %45 = vector.shape_cast %44 : vector<1x256xi1> to vector<1x256xi1>
    %46 = vector.broadcast %45 : vector<1x256xi1> to vector<16x256xi1>
    %47 = vector.broadcast %cst_25 : f32 to vector<16x256xf32>
    %48 = arith.select %46, %35, %47 : vector<16x256xi1>, vector<16x256xf32>
    %c0_26 = arith.constant 0 : index
    %c124 = arith.constant 124 : index
    %49 = vector.load %arg8[%c0_26, %c124] : memref<16x512xf32, #tpu.memory_space<vmem>>, vector<16x256xf32>
    %c-4_i32 = arith.constant -4 : i32
    %50 = vector.broadcast %c-4_i32 : i32 to vector<1x256xi32>
    %51 = arith.addi %20, %50 : vector<1x256xi32>
    %c0_i32_27 = arith.constant 0 : i32
    %52 = vector.broadcast %c0_i32_27 : i32 to vector<1x256xi32>
    %53 = arith.cmpi sge, %51, %52 : vector<1x256xi32>
    %c-4_i32_28 = arith.constant -4 : i32
    %54 = vector.broadcast %c-4_i32_28 : i32 to vector<1x256xi32>
    %55 = arith.addi %20, %54 : vector<1x256xi32>
    %c16_i32_29 = arith.constant 16 : i32
    %56 = vector.broadcast %c16_i32_29 : i32 to vector<1x256xi32>
    %57 = arith.cmpi slt, %55, %56 : vector<1x256xi32>
    %58 = arith.andi %53, %57 : vector<1x256xi1>
    %cst_30 = arith.constant -3.000000e+38 : f32
    %59 = vector.shape_cast %58 : vector<1x256xi1> to vector<1x256xi1>
    %60 = vector.broadcast %59 : vector<1x256xi1> to vector<16x256xi1>
    %61 = vector.broadcast %cst_30 : f32 to vector<16x256xf32>
    %62 = arith.select %60, %49, %61 : vector<16x256xi1>, vector<16x256xf32>
    %c0_31 = arith.constant 0 : index
    %c125 = arith.constant 125 : index
    %63 = vector.load %arg8[%c0_31, %c125] : memref<16x512xf32, #tpu.memory_space<vmem>>, vector<16x256xf32>
    %c-3_i32 = arith.constant -3 : i32
    %64 = vector.broadcast %c-3_i32 : i32 to vector<1x256xi32>
    %65 = arith.addi %20, %64 : vector<1x256xi32>
    %c0_i32_32 = arith.constant 0 : i32
    %66 = vector.broadcast %c0_i32_32 : i32 to vector<1x256xi32>
    %67 = arith.cmpi sge, %65, %66 : vector<1x256xi32>
    %c-3_i32_33 = arith.constant -3 : i32
    %68 = vector.broadcast %c-3_i32_33 : i32 to vector<1x256xi32>
    %69 = arith.addi %20, %68 : vector<1x256xi32>
    %c16_i32_34 = arith.constant 16 : i32
    %70 = vector.broadcast %c16_i32_34 : i32 to vector<1x256xi32>
    %71 = arith.cmpi slt, %69, %70 : vector<1x256xi32>
    %72 = arith.andi %67, %71 : vector<1x256xi1>
    %cst_35 = arith.constant -3.000000e+38 : f32
    %73 = vector.shape_cast %72 : vector<1x256xi1> to vector<1x256xi1>
    %74 = vector.broadcast %73 : vector<1x256xi1> to vector<16x256xi1>
    %75 = vector.broadcast %cst_35 : f32 to vector<16x256xf32>
    %76 = arith.select %74, %63, %75 : vector<16x256xi1>, vector<16x256xf32>
    %c0_36 = arith.constant 0 : index
    %c126 = arith.constant 126 : index
    %77 = vector.load %arg8[%c0_36, %c126] : memref<16x512xf32, #tpu.memory_space<vmem>>, vector<16x256xf32>
    %c-2_i32 = arith.constant -2 : i32
    %78 = vector.broadcast %c-2_i32 : i32 to vector<1x256xi32>
    %79 = arith.addi %20, %78 : vector<1x256xi32>
    %c0_i32_37 = arith.constant 0 : i32
    %80 = vector.broadcast %c0_i32_37 : i32 to vector<1x256xi32>
    %81 = arith.cmpi sge, %79, %80 : vector<1x256xi32>
    %c-2_i32_38 = arith.constant -2 : i32
    %82 = vector.broadcast %c-2_i32_38 : i32 to vector<1x256xi32>
    %83 = arith.addi %20, %82 : vector<1x256xi32>
    %c16_i32_39 = arith.constant 16 : i32
    %84 = vector.broadcast %c16_i32_39 : i32 to vector<1x256xi32>
    %85 = arith.cmpi slt, %83, %84 : vector<1x256xi32>
    %86 = arith.andi %81, %85 : vector<1x256xi1>
    %cst_40 = arith.constant -3.000000e+38 : f32
    %87 = vector.shape_cast %86 : vector<1x256xi1> to vector<1x256xi1>
    %88 = vector.broadcast %87 : vector<1x256xi1> to vector<16x256xi1>
    %89 = vector.broadcast %cst_40 : f32 to vector<16x256xf32>
    %90 = arith.select %88, %77, %89 : vector<16x256xi1>, vector<16x256xf32>
    %c0_41 = arith.constant 0 : index
    %c127 = arith.constant 127 : index
    %91 = vector.load %arg8[%c0_41, %c127] : memref<16x512xf32, #tpu.memory_space<vmem>>, vector<16x256xf32>
    %c-1_i32 = arith.constant -1 : i32
    %92 = vector.broadcast %c-1_i32 : i32 to vector<1x256xi32>
    %93 = arith.addi %20, %92 : vector<1x256xi32>
    %c0_i32_42 = arith.constant 0 : i32
    %94 = vector.broadcast %c0_i32_42 : i32 to vector<1x256xi32>
    %95 = arith.cmpi sge, %93, %94 : vector<1x256xi32>
    %c-1_i32_43 = arith.constant -1 : i32
    %96 = vector.broadcast %c-1_i32_43 : i32 to vector<1x256xi32>
    %97 = arith.addi %20, %96 : vector<1x256xi32>
    %c16_i32_44 = arith.constant 16 : i32
    %98 = vector.broadcast %c16_i32_44 : i32 to vector<1x256xi32>
    %99 = arith.cmpi slt, %97, %98 : vector<1x256xi32>
    %100 = arith.andi %95, %99 : vector<1x256xi1>
    %cst_45 = arith.constant -3.000000e+38 : f32
    %101 = vector.shape_cast %100 : vector<1x256xi1> to vector<1x256xi1>
    %102 = vector.broadcast %101 : vector<1x256xi1> to vector<16x256xi1>
    %103 = vector.broadcast %cst_45 : f32 to vector<16x256xf32>
    %104 = arith.select %102, %91, %103 : vector<16x256xi1>, vector<16x256xf32>
    %c0_46 = arith.constant 0 : index
    %c128_47 = arith.constant 128 : index
    %105 = vector.load %arg8[%c0_46, %c128_47] : memref<16x512xf32, #tpu.memory_space<vmem>>, vector<16x256xf32>
    %c0_i32_48 = arith.constant 0 : i32
    %106 = vector.broadcast %c0_i32_48 : i32 to vector<1x256xi32>
    %107 = arith.addi %20, %106 : vector<1x256xi32>
    %c0_i32_49 = arith.constant 0 : i32
    %108 = vector.broadcast %c0_i32_49 : i32 to vector<1x256xi32>
    %109 = arith.cmpi sge, %107, %108 : vector<1x256xi32>
    %c0_i32_50 = arith.constant 0 : i32
    %110 = vector.broadcast %c0_i32_50 : i32 to vector<1x256xi32>
    %111 = arith.addi %20, %110 : vector<1x256xi32>
    %c16_i32_51 = arith.constant 16 : i32
    %112 = vector.broadcast %c16_i32_51 : i32 to vector<1x256xi32>
    %113 = arith.cmpi slt, %111, %112 : vector<1x256xi32>
    %114 = arith.andi %109, %113 : vector<1x256xi1>
    %cst_52 = arith.constant -3.000000e+38 : f32
    %115 = vector.shape_cast %114 : vector<1x256xi1> to vector<1x256xi1>
    %116 = vector.broadcast %115 : vector<1x256xi1> to vector<16x256xi1>
    %117 = vector.broadcast %cst_52 : f32 to vector<16x256xf32>
    %118 = arith.select %116, %105, %117 : vector<16x256xi1>, vector<16x256xf32>
    %c0_53 = arith.constant 0 : index
    %c129 = arith.constant 129 : index
    %119 = vector.load %arg8[%c0_53, %c129] : memref<16x512xf32, #tpu.memory_space<vmem>>, vector<16x256xf32>
    %c1_i32 = arith.constant 1 : i32
    %120 = vector.broadcast %c1_i32 : i32 to vector<1x256xi32>
    %121 = arith.addi %20, %120 : vector<1x256xi32>
    %c0_i32_54 = arith.constant 0 : i32
    %122 = vector.broadcast %c0_i32_54 : i32 to vector<1x256xi32>
    %123 = arith.cmpi sge, %121, %122 : vector<1x256xi32>
    %c1_i32_55 = arith.constant 1 : i32
    %124 = vector.broadcast %c1_i32_55 : i32 to vector<1x256xi32>
    %125 = arith.addi %20, %124 : vector<1x256xi32>
    %c16_i32_56 = arith.constant 16 : i32
    %126 = vector.broadcast %c16_i32_56 : i32 to vector<1x256xi32>
    %127 = arith.cmpi slt, %125, %126 : vector<1x256xi32>
    %128 = arith.andi %123, %127 : vector<1x256xi1>
    %cst_57 = arith.constant -3.000000e+38 : f32
    %129 = vector.shape_cast %128 : vector<1x256xi1> to vector<1x256xi1>
    %130 = vector.broadcast %129 : vector<1x256xi1> to vector<16x256xi1>
    %131 = vector.broadcast %cst_57 : f32 to vector<16x256xf32>
    %132 = arith.select %130, %119, %131 : vector<16x256xi1>, vector<16x256xf32>
    %c0_58 = arith.constant 0 : index
    %c130 = arith.constant 130 : index
    %133 = vector.load %arg8[%c0_58, %c130] : memref<16x512xf32, #tpu.memory_space<vmem>>, vector<16x256xf32>
    %c2_i32 = arith.constant 2 : i32
    %134 = vector.broadcast %c2_i32 : i32 to vector<1x256xi32>
    %135 = arith.addi %20, %134 : vector<1x256xi32>
    %c0_i32_59 = arith.constant 0 : i32
    %136 = vector.broadcast %c0_i32_59 : i32 to vector<1x256xi32>
    %137 = arith.cmpi sge, %135, %136 : vector<1x256xi32>
    %c2_i32_60 = arith.constant 2 : i32
    %138 = vector.broadcast %c2_i32_60 : i32 to vector<1x256xi32>
    %139 = arith.addi %20, %138 : vector<1x256xi32>
    %c16_i32_61 = arith.constant 16 : i32
    %140 = vector.broadcast %c16_i32_61 : i32 to vector<1x256xi32>
    %141 = arith.cmpi slt, %139, %140 : vector<1x256xi32>
    %142 = arith.andi %137, %141 : vector<1x256xi1>
    %cst_62 = arith.constant -3.000000e+38 : f32
    %143 = vector.shape_cast %142 : vector<1x256xi1> to vector<1x256xi1>
    %144 = vector.broadcast %143 : vector<1x256xi1> to vector<16x256xi1>
    %145 = vector.broadcast %cst_62 : f32 to vector<16x256xf32>
    %146 = arith.select %144, %133, %145 : vector<16x256xi1>, vector<16x256xf32>
    %c0_63 = arith.constant 0 : index
    %c131 = arith.constant 131 : index
    %147 = vector.load %arg8[%c0_63, %c131] : memref<16x512xf32, #tpu.memory_space<vmem>>, vector<16x256xf32>
    %c3_i32 = arith.constant 3 : i32
    %148 = vector.broadcast %c3_i32 : i32 to vector<1x256xi32>
    %149 = arith.addi %20, %148 : vector<1x256xi32>
    %c0_i32_64 = arith.constant 0 : i32
    %150 = vector.broadcast %c0_i32_64 : i32 to vector<1x256xi32>
    %151 = arith.cmpi sge, %149, %150 : vector<1x256xi32>
    %c3_i32_65 = arith.constant 3 : i32
    %152 = vector.broadcast %c3_i32_65 : i32 to vector<1x256xi32>
    %153 = arith.addi %20, %152 : vector<1x256xi32>
    %c16_i32_66 = arith.constant 16 : i32
    %154 = vector.broadcast %c16_i32_66 : i32 to vector<1x256xi32>
    %155 = arith.cmpi slt, %153, %154 : vector<1x256xi32>
    %156 = arith.andi %151, %155 : vector<1x256xi1>
    %cst_67 = arith.constant -3.000000e+38 : f32
    %157 = vector.shape_cast %156 : vector<1x256xi1> to vector<1x256xi1>
    %158 = vector.broadcast %157 : vector<1x256xi1> to vector<16x256xi1>
    %159 = vector.broadcast %cst_67 : f32 to vector<16x256xf32>
    %160 = arith.select %158, %147, %159 : vector<16x256xi1>, vector<16x256xf32>
    %c0_68 = arith.constant 0 : index
    %c132 = arith.constant 132 : index
    %161 = vector.load %arg8[%c0_68, %c132] : memref<16x512xf32, #tpu.memory_space<vmem>>, vector<16x256xf32>
    %c4_i32 = arith.constant 4 : i32
    %162 = vector.broadcast %c4_i32 : i32 to vector<1x256xi32>
    %163 = arith.addi %20, %162 : vector<1x256xi32>
    %c0_i32_69 = arith.constant 0 : i32
    %164 = vector.broadcast %c0_i32_69 : i32 to vector<1x256xi32>
    %165 = arith.cmpi sge, %163, %164 : vector<1x256xi32>
    %c4_i32_70 = arith.constant 4 : i32
    %166 = vector.broadcast %c4_i32_70 : i32 to vector<1x256xi32>
    %167 = arith.addi %20, %166 : vector<1x256xi32>
    %c16_i32_71 = arith.constant 16 : i32
    %168 = vector.broadcast %c16_i32_71 : i32 to vector<1x256xi32>
    %169 = arith.cmpi slt, %167, %168 : vector<1x256xi32>
    %170 = arith.andi %165, %169 : vector<1x256xi1>
    %cst_72 = arith.constant -3.000000e+38 : f32
    %171 = vector.shape_cast %170 : vector<1x256xi1> to vector<1x256xi1>
    %172 = vector.broadcast %171 : vector<1x256xi1> to vector<16x256xi1>
    %173 = vector.broadcast %cst_72 : f32 to vector<16x256xf32>
    %174 = arith.select %172, %161, %173 : vector<16x256xi1>, vector<16x256xf32>
    %c0_73 = arith.constant 0 : index
    %c133 = arith.constant 133 : index
    %175 = vector.load %arg8[%c0_73, %c133] : memref<16x512xf32, #tpu.memory_space<vmem>>, vector<16x256xf32>
    %c5_i32 = arith.constant 5 : i32
    %176 = vector.broadcast %c5_i32 : i32 to vector<1x256xi32>
    %177 = arith.addi %20, %176 : vector<1x256xi32>
    %c0_i32_74 = arith.constant 0 : i32
    %178 = vector.broadcast %c0_i32_74 : i32 to vector<1x256xi32>
    %179 = arith.cmpi sge, %177, %178 : vector<1x256xi32>
    %c5_i32_75 = arith.constant 5 : i32
    %180 = vector.broadcast %c5_i32_75 : i32 to vector<1x256xi32>
    %181 = arith.addi %20, %180 : vector<1x256xi32>
    %c16_i32_76 = arith.constant 16 : i32
    %182 = vector.broadcast %c16_i32_76 : i32 to vector<1x256xi32>
    %183 = arith.cmpi slt, %181, %182 : vector<1x256xi32>
    %184 = arith.andi %179, %183 : vector<1x256xi1>
    %cst_77 = arith.constant -3.000000e+38 : f32
    %185 = vector.shape_cast %184 : vector<1x256xi1> to vector<1x256xi1>
    %186 = vector.broadcast %185 : vector<1x256xi1> to vector<16x256xi1>
    %187 = vector.broadcast %cst_77 : f32 to vector<16x256xf32>
    %188 = arith.select %186, %175, %187 : vector<16x256xi1>, vector<16x256xf32>
    %c0_78 = arith.constant 0 : index
    %c134 = arith.constant 134 : index
    %189 = vector.load %arg8[%c0_78, %c134] : memref<16x512xf32, #tpu.memory_space<vmem>>, vector<16x256xf32>
    %c6_i32 = arith.constant 6 : i32
    %190 = vector.broadcast %c6_i32 : i32 to vector<1x256xi32>
    %191 = arith.addi %20, %190 : vector<1x256xi32>
    %c0_i32_79 = arith.constant 0 : i32
    %192 = vector.broadcast %c0_i32_79 : i32 to vector<1x256xi32>
    %193 = arith.cmpi sge, %191, %192 : vector<1x256xi32>
    %c6_i32_80 = arith.constant 6 : i32
    %194 = vector.broadcast %c6_i32_80 : i32 to vector<1x256xi32>
    %195 = arith.addi %20, %194 : vector<1x256xi32>
    %c16_i32_81 = arith.constant 16 : i32
    %196 = vector.broadcast %c16_i32_81 : i32 to vector<1x256xi32>
    %197 = arith.cmpi slt, %195, %196 : vector<1x256xi32>
    %198 = arith.andi %193, %197 : vector<1x256xi1>
    %cst_82 = arith.constant -3.000000e+38 : f32
    %199 = vector.shape_cast %198 : vector<1x256xi1> to vector<1x256xi1>
    %200 = vector.broadcast %199 : vector<1x256xi1> to vector<16x256xi1>
    %201 = vector.broadcast %cst_82 : f32 to vector<16x256xf32>
    %202 = arith.select %200, %189, %201 : vector<16x256xi1>, vector<16x256xf32>
    %203 = arith.maximumf %132, %104 : vector<16x256xf32>
    %204 = arith.maximumf %118, %203 : vector<16x256xf32>
    %205 = arith.maximumf %146, %90 : vector<16x256xf32>
    %206 = arith.maximumf %204, %205 : vector<16x256xf32>
    %c0_83 = arith.constant 0 : index
    %c128_84 = arith.constant 128 : index
    %207 = vector.load %arg9[%c0_83, %c128_84] : memref<16x512xf32, #tpu.memory_space<vmem>>, vector<16x256xf32>
    tpu.vector_store %arg9[%c0_83, %c128_84], %206 {strides = array<i32>} : memref<16x512xf32, #tpu.memory_space<vmem>>, vector<16x256xf32>,
    %c0_85 = arith.constant 0 : index
    %c112 = arith.constant 112 : index
    %208 = vector.load %arg9[%c0_85, %c112] : memref<16x512xf32, #tpu.memory_space<vmem>>, vector<16x256xf32>
    %c0_86 = arith.constant 0 : index
    %c144 = arith.constant 144 : index
    %209 = vector.load %arg9[%c0_86, %c144] : memref<16x512xf32, #tpu.memory_space<vmem>>, vector<16x256xf32>
    %210 = arith.maximumf %208, %209 : vector<16x256xf32>
    %211 = arith.maximumf %206, %210 : vector<16x256xf32>
    %c0_87 = arith.constant 0 : index
    %c96 = arith.constant 96 : index
    %212 = vector.load %arg9[%c0_87, %c96] : memref<16x512xf32, #tpu.memory_space<vmem>>, vector<16x256xf32>
    %c0_88 = arith.constant 0 : index
    %c160 = arith.constant 160 : index
    %213 = vector.load %arg9[%c0_88, %c160] : memref<16x512xf32, #tpu.memory_space<vmem>>, vector<16x256xf32>
    %214 = arith.maximumf %212, %213 : vector<16x256xf32>
    %215 = arith.maximumf %211, %214 : vector<16x256xf32>
    %216 = arith.maximumf %132, %104 : vector<16x256xf32>
    %217 = arith.maximumf %118, %216 : vector<16x256xf32>
    %218 = arith.maximumf %146, %90 : vector<16x256xf32>
    %219 = arith.maximumf %217, %218 : vector<16x256xf32>
    %220 = arith.maximumf %160, %76 : vector<16x256xf32>
    %221 = arith.maximumf %219, %220 : vector<16x256xf32>
    %222 = arith.maximumf %174, %62 : vector<16x256xf32>
    %223 = arith.maximumf %221, %222 : vector<16x256xf32>
    %c0_89 = arith.constant 0 : index
    %c128_90 = arith.constant 128 : index
    %224 = vector.load %arg9[%c0_89, %c128_90] : memref<16x512xf32, #tpu.memory_space<vmem>>, vector<16x256xf32>
    tpu.vector_store %arg9[%c0_89, %c128_90], %223 {strides = array<i32>} : memref<16x512xf32, #tpu.memory_space<vmem>>, vector<16x256xf32>,
    %c0_91 = arith.constant 0 : index
    %c112_92 = arith.constant 112 : index
    %225 = vector.load %arg9[%c0_91, %c112_92] : memref<16x512xf32, #tpu.memory_space<vmem>>, vector<16x256xf32>
    %c0_93 = arith.constant 0 : index
    %c144_94 = arith.constant 144 : index
    %226 = vector.load %arg9[%c0_93, %c144_94] : memref<16x512xf32, #tpu.memory_space<vmem>>, vector<16x256xf32>
    %227 = arith.maximumf %225, %226 : vector<16x256xf32>
    %228 = arith.maximumf %223, %227 : vector<16x256xf32>
    %c0_95 = arith.constant 0 : index
    %c96_96 = arith.constant 96 : index
    %229 = vector.load %arg9[%c0_95, %c96_96] : memref<16x512xf32, #tpu.memory_space<vmem>>, vector<16x256xf32>
    %c0_97 = arith.constant 0 : index
    %c160_98 = arith.constant 160 : index
    %230 = vector.load %arg9[%c0_97, %c160_98] : memref<16x512xf32, #tpu.memory_space<vmem>>, vector<16x256xf32>
    %231 = arith.maximumf %229, %230 : vector<16x256xf32>
    %232 = arith.maximumf %228, %231 : vector<16x256xf32>
    %c0_99 = arith.constant 0 : index
    %c80 = arith.constant 80 : index
    %233 = vector.load %arg9[%c0_99, %c80] : memref<16x512xf32, #tpu.memory_space<vmem>>, vector<16x256xf32>
    %c0_100 = arith.constant 0 : index
    %c176 = arith.constant 176 : index
    %234 = vector.load %arg9[%c0_100, %c176] : memref<16x512xf32, #tpu.memory_space<vmem>>, vector<16x256xf32>
    %235 = arith.maximumf %233, %234 : vector<16x256xf32>
    %236 = arith.maximumf %232, %235 : vector<16x256xf32>
    %c0_101 = arith.constant 0 : index
    %c64 = arith.constant 64 : index
    %237 = vector.load %arg9[%c0_101, %c64] : memref<16x512xf32, #tpu.memory_space<vmem>>, vector<16x256xf32>
    %c0_102 = arith.constant 0 : index
    %c192 = arith.constant 192 : index
    %238 = vector.load %arg9[%c0_102, %c192] : memref<16x512xf32, #tpu.memory_space<vmem>>, vector<16x256xf32>
    %239 = arith.maximumf %237, %238 : vector<16x256xf32>
    %240 = arith.maximumf %236, %239 : vector<16x256xf32>
    %241 = arith.maximumf %132, %104 : vector<16x256xf32>
    %242 = arith.maximumf %118, %241 : vector<16x256xf32>
    %243 = arith.maximumf %146, %90 : vector<16x256xf32>
    %244 = arith.maximumf %242, %243 : vector<16x256xf32>
    %245 = arith.maximumf %160, %76 : vector<16x256xf32>
    %246 = arith.maximumf %244, %245 : vector<16x256xf32>
    %247 = arith.maximumf %174, %62 : vector<16x256xf32>
    %248 = arith.maximumf %246, %247 : vector<16x256xf32>
    %249 = arith.maximumf %188, %48 : vector<16x256xf32>
    %250 = arith.maximumf %248, %249 : vector<16x256xf32>
    %251 = arith.maximumf %202, %34 : vector<16x256xf32>
    %252 = arith.maximumf %250, %251 : vector<16x256xf32>
    %c0_103 = arith.constant 0 : index
    %c128_104 = arith.constant 128 : index
    %253 = vector.load %arg9[%c0_103, %c128_104] : memref<16x512xf32, #tpu.memory_space<vmem>>, vector<16x256xf32>
    tpu.vector_store %arg9[%c0_103, %c128_104], %252 {strides = array<i32>} : memref<16x512xf32, #tpu.memory_space<vmem>>, vector<16x256xf32>,
    %c0_105 = arith.constant 0 : index
    %c112_106 = arith.constant 112 : index
    %254 = vector.load %arg9[%c0_105, %c112_106] : memref<16x512xf32, #tpu.memory_space<vmem>>, vector<16x256xf32>
    %c0_107 = arith.constant 0 : index
    %c144_108 = arith.constant 144 : index
    %255 = vector.load %arg9[%c0_107, %c144_108] : memref<16x512xf32, #tpu.memory_space<vmem>>, vector<16x256xf32>
    %256 = arith.maximumf %254, %255 : vector<16x256xf32>
    %257 = arith.maximumf %252, %256 : vector<16x256xf32>
    %c0_109 = arith.constant 0 : index
    %c96_110 = arith.constant 96 : index
    %258 = vector.load %arg9[%c0_109, %c96_110] : memref<16x512xf32, #tpu.memory_space<vmem>>, vector<16x256xf32>
    %c0_111 = arith.constant 0 : index
    %c160_112 = arith.constant 160 : index
    %259 = vector.load %arg9[%c0_111, %c160_112] : memref<16x512xf32, #tpu.memory_space<vmem>>, vector<16x256xf32>
    %260 = arith.maximumf %258, %259 : vector<16x256xf32>
    %261 = arith.maximumf %257, %260 : vector<16x256xf32>
    %c0_113 = arith.constant 0 : index
    %c80_114 = arith.constant 80 : index
    %262 = vector.load %arg9[%c0_113, %c80_114] : memref<16x512xf32, #tpu.memory_space<vmem>>, vector<16x256xf32>
    %c0_115 = arith.constant 0 : index
    %c176_116 = arith.constant 176 : index
    %263 = vector.load %arg9[%c0_115, %c176_116] : memref<16x512xf32, #tpu.memory_space<vmem>>, vector<16x256xf32>
    %264 = arith.maximumf %262, %263 : vector<16x256xf32>
    %265 = arith.maximumf %261, %264 : vector<16x256xf32>
    %c0_117 = arith.constant 0 : index
    %c64_118 = arith.constant 64 : index
    %266 = vector.load %arg9[%c0_117, %c64_118] : memref<16x512xf32, #tpu.memory_space<vmem>>, vector<16x256xf32>
    %c0_119 = arith.constant 0 : index
    %c192_120 = arith.constant 192 : index
    %267 = vector.load %arg9[%c0_119, %c192_120] : memref<16x512xf32, #tpu.memory_space<vmem>>, vector<16x256xf32>
    %268 = arith.maximumf %266, %267 : vector<16x256xf32>
    %269 = arith.maximumf %265, %268 : vector<16x256xf32>
    %c0_121 = arith.constant 0 : index
    %c48 = arith.constant 48 : index
    %270 = vector.load %arg9[%c0_121, %c48] : memref<16x512xf32, #tpu.memory_space<vmem>>, vector<16x256xf32>
    %c0_122 = arith.constant 0 : index
    %c208 = arith.constant 208 : index
    %271 = vector.load %arg9[%c0_122, %c208] : memref<16x512xf32, #tpu.memory_space<vmem>>, vector<16x256xf32>
    %272 = arith.maximumf %270, %271 : vector<16x256xf32>
    %273 = arith.maximumf %269, %272 : vector<16x256xf32>
    %c0_123 = arith.constant 0 : index
    %c32 = arith.constant 32 : index
    %274 = vector.load %arg9[%c0_123, %c32] : memref<16x512xf32, #tpu.memory_space<vmem>>, vector<16x256xf32>
    %c0_124 = arith.constant 0 : index
    %c224 = arith.constant 224 : index
    %275 = vector.load %arg9[%c0_124, %c224] : memref<16x512xf32, #tpu.memory_space<vmem>>, vector<16x256xf32>
    %276 = arith.maximumf %274, %275 : vector<16x256xf32>
    %277 = arith.maximumf %273, %276 : vector<16x256xf32>
    %278 = tpu.concatenate %14, %215, %240, %277 in 0 : vector<16x256xf32>, vector<16x256xf32>, vector<16x256xf32>, vector<16x256xf32> -> vector<64x256xf32>
    %c0_125 = arith.constant 0 : index
    %c0_126 = arith.constant 0 : index
    %279 = vector.load %arg4[%c0_125, %c0_126] : memref<32x64xf32, #tpu.memory_space<vmem>>, vector<32x64xf32>
    %cst_127 = arith.constant dense<0.000000e+00> : vector<32x256xf32>
    %280 = tpu.matmul %279, %278, %cst_127 {dimension_numbers = #tpu.dot_dimension_numbers<[1], [0], [0], [1], [0, 0, 1, 1], [], []>, precision = #tpu.contract_precision<fp32>} : vector<32x64xf32>, vector<64x256xf32>, vector<32x256xf32> -> vector<32x256xf32>
    %c0_128 = arith.constant 0 : index
    %c0_129 = arith.constant 0 : index
    %281 = vector.load %arg5[%c0_128, %c0_129] : memref<32x1xf32, #tpu.memory_space<vmem>>, vector<32x1xf32>
    %282 = vector.broadcast %281 : vector<32x1xf32> to vector<32x256xf32>
    %283 = arith.addf %280, %282 : vector<32x256xf32>
    %cst_130 = arith.constant 0.000000e+00 : f32
    %284 = vector.broadcast %cst_130 : f32 to vector<32x256xf32>
    %285 = arith.subf %284, %283 : vector<32x256xf32>
    %286 = math.exp %285 : vector<32x256xf32>
    %cst_131 = arith.constant 1.000000e+00 : f32
    %287 = vector.broadcast %cst_131 : f32 to vector<32x256xf32>
    %288 = arith.addf %287, %286 : vector<32x256xf32>
    %cst_132 = arith.constant 1.000000e+00 : f32
    %289 = vector.broadcast %cst_132 : f32 to vector<32x256xf32>
    %290 = arith.divf %289, %288 : vector<32x256xf32>
    %291 = arith.mulf %283, %290 : vector<32x256xf32>
    %c0_133 = arith.constant 0 : index
    %c0_134 = arith.constant 0 : index
    %c0_135 = arith.constant 0 : index
    %292 = vector.load %arg7[%c0_133, %c0_134, %c0_135] : memref<1x32x256xf32, #tpu.memory_space<vmem>>, vector<1x32x256xf32>
    %293 = vector.shape_cast %292 : vector<1x32x256xf32> to vector<32x256xf32>
    %294 = vector.shape_cast %291 : vector<32x256xf32> to vector<1x32x256xf32>
    tpu.vector_store %arg7[%c0_133, %c0_134, %c0_135], %294 {strides = array<i32>} : memref<1x32x256xf32, #tpu.memory_space<vmem>>, vector<1x32x256xf32>,
    return
  }
  func.func @transform_0(%arg0: i32) -> (i32, i32, i32) {
    %c0_i32 = arith.constant 0 : i32
    %c0_i32_0 = arith.constant 0 : i32
    %c0_i32_1 = arith.constant 0 : i32
    return %arg0, %c0_i32, %c0_i32_0 : i32, i32, i32
  }
  func.func @transform_1(%arg0: i32) -> (i32, i32) {
    %c0_i32 = arith.constant 0 : i32
    %c0_i32_0 = arith.constant 0 : i32
    %c0_i32_1 = arith.constant 0 : i32
    return %c0_i32, %c0_i32_0 : i32, i32
  }
  func.func @transform_2(%arg0: i32) -> (i32, i32) {
    %c0_i32 = arith.constant 0 : i32
    %c0_i32_0 = arith.constant 0 : i32
    %c0_i32_1 = arith.constant 0 : i32
    return %c0_i32, %c0_i32_0 : i32, i32
  }
  func.func @transform_3(%arg0: i32) -> (i32, i32) {
    %c0_i32 = arith.constant 0 : i32
    %c0_i32_0 = arith.constant 0 : i32
    %c0_i32_1 = arith.constant 0 : i32
    return %c0_i32, %c0_i32_0 : i32, i32
  }
  func.func @transform_4(%arg0: i32) -> (i32, i32) {
    %c0_i32 = arith.constant 0 : i32
    %c0_i32_0 = arith.constant 0 : i32
    %c0_i32_1 = arith.constant 0 : i32
    return %c0_i32, %c0_i32_0 : i32, i32
  }
  func.func @transform_5(%arg0: i32) -> (i32, i32) {
    %c0_i32 = arith.constant 0 : i32
    %c0_i32_0 = arith.constant 0 : i32
    %c0_i32_1 = arith.constant 0 : i32
    return %c0_i32, %c0_i32_0 : i32, i32
  }
  func.func @transform_6(%arg0: i32) -> (i32, i32, i32) {
    %c0_i32 = arith.constant 0 : i32
    %c0_i32_0 = arith.constant 0 : i32
    %c0_i32_1 = arith.constant 0 : i32
    return %arg0, %c0_i32, %c0_i32_0 : i32, i32, i32
  }
}

</mosaic_0001>

<bundles_post_ra>
// kernel: tpu_custom_call.1
= control target key start
LH: loop header
LB: loop body
LE: loop exit
PB: predicated region body
PF: predicated region fallthrough
CT: control target
= control target key end

     0   :  { %11 = vsyncpa [#allocation5], 0  ;;  %s5278_s0 = inlined_call_operand.hbm [shape: f32[2,32,256], index: 0, kind: input, shape index: {}]   ;;  %s5279_s1 = inlined_call_operand.vmem [shape: f32[16,32], index: 1, kind: input, shape index: {}]   ;;  %s5280_s2 = inlined_call_operand.vmem [shape: f32[16,1], index: 2, kind: input, shape index: {}]   ;;  %s5281_s3 = inlined_call_operand.vmem [shape: f32[32,64], index: 3, kind: input, shape index: {}]   ;;  %s5282_s4 = inlined_call_operand.vmem [shape: f32[32,1], index: 4, kind: input, shape index: {}]   ;;  %s5283_s5 = inlined_call_operand.vmem [shape: s32[1,256], index: 5, kind: input, shape index: {}]   ;;  %s5284_s6 = inlined_call_operand.hbm [shape: f32[2,32,256], index: 6, kind: output, shape index: {}]  }
   0x1   :  { %13 = vsyncpa [#allocation5 + $0x1], 0 }
   0x2   :  { %14 = vsyncpa [#allocation6], 0 }
   0x3   :  { %16 = vsyncpa [#allocation6 + $0x1], 0  ;;  %s3469_s21 = smov 0   ;;  %s3471_s22 = smov 0  }
   0x4   :  { %s3473_s23 = smov 0   ;;  %s3475_s24 = smov 0  }
   0x5 LB: > { %s3490_s25 = sadd.s32 4294967295, %s3406_s24   ;;  %s3178_s26 = sadd.s32 4294967294, %s3406_s24   ;;  %s3406_s24 = sphi %s3475_s24, %s5521_s24   ;;  %s3402_s23 = sphi %s3473_s23, %s5520_s23   ;;  %s3398_s22 = sphi %s3471_s22, %s5519_s22   ;;  %s3394_s21 = sphi %s3469_s21, %s5518_s21  }
   0x6   : > { %s3494_s27 = sadd.s32 1, %s3406_s24   ;;  %s29_s28 = sadd.s32 1, %s3402_s23 }
   0x7   : > { %s26_s29 = ssub.s32 %s3406_s24, %s3494_s27  ;;  %p36_p0 = scmp.ne.s32.totalorder %s3402_s23, %s3398_s22 }
   0x8   : > { %p27_p1 = scmp.eq.s32.totalorder %s26_s29, 0  ;;  %p37_p2 = scmp.eq.s32.totalorder %s3406_s24, 0 }
   0x9   : > { %p42_p3 = scmp.ne.s32.totalorder %s3398_s22, %s3394_s21  ;;  %p43_p4 = scmp.eq.s32.totalorder %s3490_s25, 0 }
   0xa   : > { %s3506_s30 = scalar_select %p27_p1, %s3402_s23, %s29_s28  }
   0xb   : > { %p3508_p5 = por %p37_p2, %p36_p0  ;;  %p3512_p6 = por %p43_p4, %p42_p3 }
   0xc   : > { %p171_p7 = scmp.eq.s32.totalorder %s3490_s25, 1  ;;  %p177_p8 = scmp.eq.s32.totalorder %s3178_s26, 1 }
   0xd   : > { %s5341_s8 = scalar_select %p3512_p6, 1, 0 }
   0xe   : > { %p3206_p10 = scmp.lt.s32.totalorder %s3406_s24, 2  ;;  %p3519_p11 = por %p171_p7, %p36_p0 }
   0xf   : > { %p3523_p12 = por %p177_p8, %p42_p3  ;;  %s212_s11 = sand.u32 1, %s3402_s23  }
  0x10   : > { %s5342_s9 = scalar_select %p3519_p11, 1, 0 }
  0x11   : > { %s5343_s10 = scalar_select %p3523_p12, 1, 0 }
  0x12   : > { %s3192_s12 = sshll.u32 %s3406_s24, 10  ;;  %s3181_s13 = sshll.u32 %s212_s11, 6 }
  0x13   : > { %s3532_s16 = scalar_lea.hbm %s5278_s0, %s3192_s12  ;;  %s216_s17 = scalar_lea.vmem [#allocation4], %s3181_s13 }
  0x14   : > { %s223_s18 = sshll.u32 %s216_s17, 4  ;;  %p3536_p13 = pnand %p3206_p10, %p3508_p5  ;;  %s3540_s18 = int_to_ptr.vmem [resolvable:$true] %s223_s18 }
  0x15   : > { %s3542_s20 = scalar_lea.sflag [#allocation5], %s212_s11  ;;  %s3314_s26 = scalar_lea.hbm %s3532_s16, 1024 }
  0x16   : > { %p3315_p0 = scmp.ne.s32.totalorder %s3532_s16, %s3314_s26  ;;  %p3316_p1 = pneg %p3536_p13 }
  0x17   : > { %s3319_s12 = scalar_lea.hbm %s5278_s0, 2048  ;;  %p3320_p4 = scmp.lt.s32.totalorder %s3532_s16, %s5278_s0 }
  0x18   : > { %p3317_p2 = pnand %p3316_p1, %p3315_p0  ;;  %p3321_p5 = scmp.lt.s32.totalorder %s3319_s12, %s3314_s26 }
  0x1a   : > { %p3318_p3 = pneg %p3317_p2  ;;  %p3322_p7 = por %p3321_p5, %p3320_p4 }
  0x1c   : > { %p3323_p8 = pnand %p3322_p7, %p3318_p3 }
  0x1e   : > { %3326 = shalt.err (!%p3323_p8)
}
  0x1f   : > { %s3327_s11 = scalar_lea.vmem %s3540_s18, 1024  ;;  %s3408_s14 = smov [#allocation4]  }
  0x20   : > { %p3328_p10 = scmp.ne.s32.totalorder %s3540_s18, %s3327_s11  ;;  %s3332_s15 = sshll.u32 %s3408_s14, 4  ;;  %s3333_s15 = int_to_ptr.vmem [resolvable:$false] %s3332_s15 }
  0x21   : > { %s3334_s17 = scalar_lea.vmem %s3333_s15, 2048  ;;  %p3335_p2 = scmp.lt.s32.totalorder %s3540_s18, %s3333_s15 }
  0x22   : > { %p3330_p9 = pnand %p3328_p10, %p3316_p1  ;;  %p3336_p12 = scmp.lt.s32.totalorder %s3334_s17, %s3327_s11 }
  0x24   : > { %p3331_p0 = pneg %p3330_p9  ;;  %p3337_p11 = por %p3336_p12, %p3335_p2 }
  0x26   : > { %p3338_p6 = pnand %p3337_p11, %p3331_p0 }
  0x28   : > { %3341 = shalt.err (!%p3338_p6)
}
  0x29   : > { %s3409_s26 = smov 256   ;;  %s3410_s28 = smov 16  }
  0x2a   : > { %3201 = dma.hbm_to_vmem [thread:$0]  (!%p3536_p13), %s3532_s16, 1024, %s3540_s18, %s3542_s20, %s3409_s26, %s3409_s26, %s3410_s28  }
  0x2b   : > { %p3184_p9 = scmp.ge.s32.totalorder %s3406_s24, 1  ;;  %p231_p1 = scmp.lt.s32.totalorder %s3406_s24, 3 }
  0x2d   : > { %p232_p3 = pnand %p3184_p9, %p231_p1 }
  0x2f   : > { %235 = sbr.rel (%p232_p3) target bundleno = 1172 (0x494), region = 44 }
  0x34   : > { %s3566_s29 = sand.u32 1, %s3398_s22   ;;  %p5345_p6 = scmp.ne.s32.totalorder %s5341_s8, 0 }
  0x35   : > { %s5287_s12 = sshll.u32 %s3566_s29, 6  ;;  %s238_s7 = scalar_lea.sflag [#allocation5], %s3566_s29 }
  0x36   : > { %s241_s13 = scalar_lea.vmem [#allocation4], %s5287_s12 }
  0x37   : > { %3385 = dma.done.wait (%p5345_p6), %s238_s7, 1024  }
  0x38   : > { %3387 = vsyncadd (%p5345_p6), %s238_s7, 4294966272  ;;  %v5292_v0 = vmov 0.0   ;;  %v3412_v1 = vmov -3e+38   ;;  %s3413_s16 = smov 2   ;;  %s3414_s18 = smov 1  }
  0x39   : > { %371 = vmatprep.mubr.f32.mxu0 %v5292_v0  ;;  %498 = vmatprep.mubr.f32.mxu1 %v5292_v0  ;;  %v5294_v2 = vmov 0   ;;  %s3416_s8 = smov 127   ;;  %v277_v3 = vld [vmem:[%s241_s13 + $0x38] sm:$0xff]  ;;  %v276_v4 = vld [vmem:[%s241_s13 + $0x30] sm:$0xff]  ;;  %v275_v5 = vld [vmem:[%s241_s13 + $0x28] sm:$0xff]  ;;  %vm5296_vm0 = vcmask 261120  }
  0x3a   : > { %1133 = vrot.lane.b32.xlu0 %v3412_v1, %s3413_s16  ;;  %1173 = vrot.lane.b32.xlu1 %v3412_v1, %s3414_s18  ;;  %v3586_v6 = vand.u32 4294901760, %v277_v3  ;;  %v3588_v7 = vand.u32 4294901760, %v276_v4  ;;  %v3590_v8 = vand.u32 4294901760, %v275_v5  ;;  %v274_v9 = vld [vmem:[%s241_s13 + $0x20] sm:$0xff]  ;;  %v273_v10 = vld [vmem:[%s241_s13 + $0x18] sm:$0xff]  ;;  %s3417_s7 = smov 126  }
  0x3b   : > { %3264 = vset.pattern.permute.xlu0 %v5294_v2  ;;  %3265 = vset.pattern.permute.xlu1 %v5294_v2  ;;  %v272_v11 = vld [vmem:[%s241_s13 + $0x10] sm:$0xff]  ;;  %v3592_v12 = vand.u32 4294901760, %v274_v9  ;;  %v3594_v13 = vand.u32 4294901760, %v273_v10  ;;  %v271_v15 = vld [vmem:[%s241_s13 + $0x8] sm:$0xff]  ;;  %v270_v16 = vld [vmem:[%s241_s13] sm:$0xff]  ;;  %s3418_s13 = smov 3  }
  0x3c   : > { %v3596_v14 = vand.u32 4294901760, %v272_v11  ;;  %v278_v17 = vld [vmem:[%s5279_s1] sm:$0xff]  ;;  %324 = vmatprep.subr.mxu0 %v3586_v6  ;;  %v3602_v18 = vand.u32 4294901760, %v271_v15  ;;  %v3605_v19 = vsub.f32 %v277_v3, %v3586_v6  ;;  %v3607_v20 = vand.u32 4294901760, %v270_v16  ;;  %v279_v22 = vld [vmem:[%s5279_s1 + $0x8] sm:$0xff]  ;;  %s3419_s19 = smov 125  }
  0x3d   : > { %v3610_v21 = vsub.f32 %v276_v4, %v3588_v7  ;;  %v281_v23 = vld [vmem:[%s5280_s2 + $0x8] sm:$0xff]  ;;  %326 = vmatpush1.msra.mxu0 %v3588_v7  ;;  %v294_v24 = vsel %vm5296_vm0, %v278_v17, 0  ;;  %v3623_v25 = vsub.f32 %v275_v5, %v3590_v8  ;;  %v3626_v26 = vsub.f32 %v274_v9, %v3592_v12  ;;  %v280_v32 = vld [vmem:[%s5280_s2] sm:$0xff]  ;;  %s3420_s20 = smov 4   ;;  %s3421_s11 = smov 124  }
  0x3e   : > { %1247 = vrot.lane.b32.xlu1 %v3412_v1, %s3416_s8  ;;  %v3629_v27 = vsub.f32 %v273_v10, %v3594_v13  ;;  %289 = vperm.xlu0 %3264, %v281_v23   ;;  %v420_v28 = vand.u32 4294901760, %v3605_v19  ;;  %v3634_v30 = vand.u32 4294901760, %v294_v24  ;;  %v3637_v31 = vsub.f32 %v272_v11, %v3596_v14  ;;  %s3422_s14 = smov 5   ;;  %s5288_s15 = smov 123  }
  0x3f   : > { %328 = vmatprep.subr.mxu0 %v3590_v8  ;;  %v426_v29 = vand.u32 4294901760, %v3610_v21  ;;  %v432_v33 = vand.u32 4294901760, %v3623_v25  ;;  %v438_v34 = vand.u32 4294901760, %v3626_v26  ;;  %v297_v36 = vsel %vm5296_vm0, %v279_v22, 0  ;;  %s3424_s17 = smov 6   ;;  %s3425_s26 = smov 122  }
  0x40   : > { %330 = vmatpush1.msra.mxu0 %v3592_v12  ;;  %v444_v35 = vand.u32 4294901760, %v3629_v27  ;;  %v421_v37 = vsub.f32 %v3605_v19, %v420_v28  ;;  %v3655_v39 = vsub.f32 %v294_v24, %v3634_v30  ;;  %v450_v40 = vand.u32 4294901760, %v3637_v31  ;;  %s3426_s28 = smov 96   ;;  %s3427_s12 = smov 64  }
  0x41   : > { %332 = vmatprep.subr.mxu0 %v3594_v13  ;;  %v427_v38 = vsub.f32 %v3610_v21, %v426_v29  ;;  %v433_v41 = vsub.f32 %v3623_v25, %v432_v33  ;;  %v439_v42 = vsub.f32 %v3626_v26, %v438_v34  ;;  %v3670_v44 = vand.u32 4294901760, %v297_v36  ;;  %p5515_p12 = scmp.ne.s32.totalorder %s5342_s9, 0 }
  0x42   : > { %1167 = vrot.lane.b32.xlu1 %v3412_v1, %s3414_s18  ;;  %334 = vmatpush1.msra.mxu0 %v3596_v14  ;;  %v445_v43 = vsub.f32 %v3629_v27, %v444_v35  ;;  %v422_v45 = vand.u32 4294901760, %v421_v37  ;;  %v374_v47 = vand.u32 4294901760, %v3655_v39  ;;  %v451_v48 = vsub.f32 %v3637_v31, %v450_v40 }
  0x43   : > { %284 = vperm.xlu0 %3264, %v280_v32   ;;  %336 = vmatprep.subr.mxu0 %v3602_v18  ;;  %v428_v46 = vand.u32 4294901760, %v427_v38  ;;  %v434_v49 = vand.u32 4294901760, %v433_v41  ;;  %v440_v50 = vand.u32 4294901760, %v439_v42  ;;  %v3679_v51 = vsub.f32 %v297_v36, %v3670_v44 }
  0x44   : > { %338 = vmatpush1.msra.mxu0 %v3607_v20  ;;  %423 = vmatprep.subr.mxu1 %v422_v45  ;;  %v375_v52 = vsub.f32 %v3655_v39, %v374_v47  ;;  %v446_v53 = vand.u32 4294901760, %v445_v43  ;;  %v455_v54 = vsub.f32 %v271_v15, %v3602_v18  ;;  %v461_v55 = vsub.f32 %v270_v16, %v3607_v20 }
  0x45   : > { %539 = vmatprep.subr.mxu0 %v3605_v19  ;;  %429 = vmatpush1.msra.mxu1 %v428_v46  ;;  %v385_v56 = vand.u32 4294901760, %v3679_v51  ;;  %v452_v58 = vand.u32 4294901760, %v451_v48 }
  0x46   : > { %1287 = vrot.lane.b32.xlu1 %v3412_v1, %s3417_s7  ;;  %v376_v57 = vand.u32 4294901760, %v375_v52  ;;  %435 = vmatprep.subr.mxu1 %v434_v49  ;;  %v456_v59 = vand.u32 4294901760, %v455_v54  ;;  %v462_v60 = vand.u32 4294901760, %v461_v55 }
  0x47   : > { %1241 = vrot.lane.b32.xlu0 %v3412_v1, %s3416_s8  ;;  %441 = vmatpush1.msra.mxu1 %v440_v50  ;;  %v386_v61 = vsub.f32 %v3679_v51, %v385_v56 }
  0x48   : > { %377 = vmatmul.mubr.f32.vlgmr.msra.gmra.mxu0 %v376_v57  ;;  %447 = vmatprep.subr.mxu1 %v446_v53  ;;  %v457_v62 = vsub.f32 %v455_v54, %v456_v59  ;;  %v463_v63 = vsub.f32 %v461_v55, %v462_v60 }
  0x49   : > { %542 = vmatpush1.msra.mxu0 %v3610_v21  ;;  %382 = vmatprep.mubr.f32.mxu0 %v5292_v0  ;;  %v387_v3 = vand.u32 4294901760, %v386_v61 }
  0x4a   : > { %1127 = vrot.lane.b32.xlu1 %v3412_v1, %s3413_s16  ;;  %545 = vmatprep.subr.mxu0 %v3623_v25  ;;  %v458_v4 = vand.u32 4294901760, %v457_v62  ;;  %v464_v5 = vand.u32 4294901760, %v463_v63 }
  0x4b   : > { %453 = vmatpush1.msra.mxu1 %v452_v58  ;;  %548 = vmatpush1.msra.mxu0 %v3626_v26 }
  0x4c   : > { %1093 = vrot.lane.b32.xlu0 %v3412_v1, %s3418_s13  ;;  %388 = vmatmul.mubr.f32.gmra.mxu0 %v387_v3 }
  0x4d   : > { %459 = vmatprep.subr.mxu1 %v458_v4  ;;  %551 = vmatprep.subr.mxu0 %v3629_v27 }
  0x4e   : > { %465 = vmatpush1.msra.mxu1 %v464_v5  ;;  %554 = vmatpush1.msra.mxu0 %v3637_v31 }
  0x4f   : > { %500 = vmatmul.mubr.f32.vlgmr.msra.gmra.mxu1 %v3634_v30  ;;  %557 = vmatprep.subr.mxu0 %v455_v54 }
  0x50   : > { %635 = vmatprep.subr.mxu1 %v3586_v6  ;;  %560 = vmatpush1.msra.mxu0 %v461_v55 }
  0x51   : > { %593 = vmatprep.mubr.f32.mxu0 %v5292_v0  ;;  %637 = vmatpush1.msra.mxu1 %v3588_v7 }
  0x52   : > { %596 = vmatmul.mubr.f32.vlgmr.msra.gmra.mxu0 %v3655_v39  ;;  %639 = vmatprep.subr.mxu1 %v3590_v8 }
  0x53   : > { %728 = vmatprep.subr.mxu0 %v420_v28  ;;  %505 = vmatprep.mubr.f32.mxu1 %v5292_v0 }
  0x54   : > { %641 = vmatpush1.msra.mxu1 %v3592_v12  ;;  %732 = vmatpush1.msra.mxu0 %v426_v29 }
  0x55   : > { %507 = vmatmul.mubr.f32.gmra.mxu1 %v3670_v44  ;;  %643 = vmatprep.subr.mxu1 %v3594_v13 }
  0x56   : > { %736 = vmatprep.subr.mxu0 %v432_v33  ;;  %601 = vmatprep.mubr.f32.mxu0 %v5292_v0 }
  0x57   : > { %645 = vmatpush1.msra.mxu1 %v3596_v14  ;;  %740 = vmatpush1.msra.mxu0 %v438_v34 }
  0x58   : > { %647 = vmatprep.subr.mxu1 %v3602_v18  ;;  %604 = vmatmul.mubr.f32.gmra.mxu0 %v3679_v51 }
  0x59   : > { %744 = vmatprep.subr.mxu0 %v444_v35  ;;  %649 = vmatpush1.msra.mxu1 %v3607_v20 }
  0x5a   : > { %682 = vmatprep.mubr.f32.mxu1 %v5292_v0  ;;  %748 = vmatpush1.msra.mxu0 %v450_v40 }
  0x5b   : > { %686 = vmatmul.mubr.f32.vlgmr.msra.gmra.mxu1 %v374_v47  ;;  %752 = vmatprep.subr.mxu0 %v456_v59 }
  0x5c   : > { %829 = vmatprep.subr.mxu1 %v3586_v6  ;;  %756 = vmatpush1.msra.mxu0 %v462_v60 }
  0x5d   : > { %789 = vmatprep.mubr.f32.mxu0 %v5292_v0  ;;  %831 = vmatpush1.msra.mxu1 %v3588_v7 }
  0x5e   : > { %791 = vmatmul.mubr.f32.vlgmr.msra.gmra.mxu0 %v3634_v30  ;;  %833 = vmatprep.subr.mxu1 %v3590_v8 }
  0x5f   : > { %691 = vmatprep.mubr.f32.mxu1 %v5292_v0  ;;  %835 = vmatpush1.msra.mxu1 %v3592_v12 }
  0x60   : > { %796 = vmatprep.mubr.f32.mxu0 %v5292_v0  ;;  %695 = vmatmul.mubr.f32.gmra.mxu1 %v385_v56 }
  0x61   : > { %837 = vmatprep.subr.mxu1 %v3594_v13  ;;  %876 = vmatprep.mubr.f32.mxu1 %v5292_v0 }
  0x62   : > { %839 = vmatpush1.msra.mxu1 %v3596_v14  ;;  %798 = vmatmul.mubr.f32.gmra.mxu0 %v3670_v44 }
  0x63   : > { %841 = vmatprep.subr.mxu1 %v3602_v18  ;;  %1327 = vrot.lane.b32.xlu1 %v3412_v1, %s3419_s19 }
  0x64   : > { %843 = vmatpush1.msra.mxu1 %v3607_v20  ;;  %1281 = vrot.lane.b32.xlu0 %v3412_v1, %s3417_s7 }
  0x65   : > { %878 = vmatmul.mubr.f32.vlgmr.msra.gmra.mxu1 %v3634_v30  ;;  %2313 = vmatprep.mubr.f32.mxu0 %v5292_v0 }
  0x66   : > { %883 = vmatprep.mubr.f32.mxu1 %v5292_v0 }
  0x67   : > { %1087 = vrot.lane.b32.xlu1 %v3412_v1, %s3418_s13 }
  0x68   : > { %1053 = vrot.lane.b32.xlu0 %v3412_v1, %s3420_s20 }
  0x69   : > { %885 = vmatmul.mubr.f32.gmra.mxu1 %v3670_v44 }
  0x6a   : > { %2502 = vmatprep.mubr.f32.mxu1 %v5292_v0 }
  0x6b   : > { %1367 = vrot.lane.b32.xlu1 %v3412_v1, %s3421_s11 }
  0x6c   : > { %1321 = vrot.lane.b32.xlu0 %v3412_v1, %s3419_s19 }
  0x6f   : > { %1047 = vrot.lane.b32.xlu1 %v3412_v1, %s3420_s20 }
  0x70   : > { %1013 = vrot.lane.b32.xlu0 %v3412_v1, %s3422_s14 }
  0x73   : > { %1407 = vrot.lane.b32.xlu1 %v3412_v1, %s5288_s15 }
  0x74   : > { %1361 = vrot.lane.b32.xlu0 %v3412_v1, %s3421_s11 }
  0x77   : > { %1007 = vrot.lane.b32.xlu1 %v3412_v1, %s3422_s14 }
  0x78   : > { %973 = vrot.lane.b32.xlu0 %v3412_v1, %s3424_s17 }
  0x7b   : > { %1447 = vrot.lane.b32.xlu1 %v3412_v1, %s3425_s26 }
  0x7c   : > { %1401 = vrot.lane.b32.xlu0 %v3412_v1, %s5288_s15  ;;  %s5290_s15 = smov 32  }
  0x7f   : > { %1441 = vrot.lane.b32.xlu1 %v3412_v1, %s3425_s26 }
  0x80   : > { %967 = vrot.lane.b32.xlu0 %v3412_v1, %s3424_s17 }
  0x83   : > { %1910 = vrot.lane.b32.xlu1 %v3412_v1, %s3426_s28 }
  0x84   : > { %1916 = vrot.lane.b32.xlu0 %v3412_v1, %s3426_s28 }
  0x87   : > { %1968 = vrot.lane.b32.xlu1 %v3412_v1, %s3427_s12 }
  0x88   : > { %1974 = vrot.lane.b32.xlu0 %v3412_v1, %s3427_s12 }
  0x8b   : > { %2026 = vrot.lane.b32.xlu1 %v3412_v1, %s5290_s15 }
  0x8c   : > { %2032 = vrot.lane.b32.xlu0 %v3412_v1, %s5290_s15 }
  0x8f   : > { %1661 = vrot.lane.b32.xlu1 %v3412_v1, %s3426_s28 }
  0x90   : > { %1667 = vrot.lane.b32.xlu0 %v3412_v1, %s3426_s28 }
  0x93   : > { %1719 = vrot.lane.b32.xlu1 %v3412_v1, %s3427_s12 }
  0x94   : > { %1725 = vrot.lane.b32.xlu0 %v3412_v1, %s3427_s12 }
  0x97   : > { %1777 = vrot.lane.b32.xlu1 %v3412_v1, %s5290_s15 }
  0x98   : > { %1783 = vrot.lane.b32.xlu0 %v3412_v1, %s5290_s15  ;;  %s5348_s15 = smov 123  }
  0x9b   : > { %1504 = vrot.lane.b32.xlu1 %v3412_v1, %s3426_s28 }
  0x9c   : > { %1510 = vrot.lane.b32.xlu0 %v3412_v1, %s3426_s28 }
  0x9f   : > { %1564 = vrot.lane.b32.xlu1 %v3412_v1, %s3427_s12 }
  0xa0   : > { %1570 = vrot.lane.b32.xlu0 %v3412_v1, %s3427_s12 }
  0xac   : > { %v3818_v6 = vpop.permute.xlu0 %1133  ;;  %v3820_v52 = vpop.permute.xlu1 %1173 }
  0xb0   : > { %v3822_v60 = vpop.permute.xlu1 %1247 }
  0xb9   : > { %v290_v9 = vpop.permute.xlu0 %289 }
  0xbe   : > { %v285_v15 = vpop.permute.xlu0 %284 }
 0x108   : > { %v378_v7 = vpop.f32.mrf.mxu0 }
 0x109   : > { %v379_v18 = vadd.f32 %v378_v7, %v285_v15 }
 0x10a   : > { %v380_v8 = vpop.f32.mrf.mxu0 }
 0x10b   : > { %v381_v22 = vadd.f32 %v380_v8, %v285_v15  ;;  %v3830_v8 = vpop.permute.xlu1 %1167 }
 0x10c   : > { %v389_v10 = vpop.f32.mrf.mxu0 }
 0x10d   : > { %v390_v45 = vadd.f32 %v389_v10, %v290_v9 }
 0x10e   : > { %v391_v11 = vpop.f32.mrf.mxu0 }
 0x10f   : > { %v501_v12 = vpop.f32.mrf.mxu1  ;;  %v392_v48 = vadd.f32 %v391_v11, %v290_v9  ;;  %v3838_v15 = vpop.permute.xlu1 %1287 }
 0x110   : > { %v502_v21 = vadd.f32 %v501_v12, %v379_v18 }
 0x111   : > { %v503_v13 = vpop.f32.mrf.mxu1 }
 0x112   : > { %v597_v14 = vpop.f32.mrf.mxu0  ;;  %v504_v24 = vadd.f32 %v503_v13, %v381_v22 }
 0x113   : > { %v598_v26 = vadd.f32 %v597_v14, %v502_v21 }
 0x114   : > { %v599_v17 = vpop.f32.mrf.mxu0 }
 0x115   : > { %v508_v16 = vpop.f32.mrf.mxu1  ;;  %v600_v28 = vadd.f32 %v599_v17, %v504_v24  ;;  %v3850_v17 = vpop.permute.xlu1 %1127 }
 0x116   : > { %v509_v49 = vadd.f32 %v508_v16, %v390_v45  ;;  %v3840_v16 = vpop.permute.xlu0 %1241 }
 0x117   : > { %v510_v19 = vpop.f32.mrf.mxu1 }
 0x118   : > { %v605_v20 = vpop.f32.mrf.mxu0  ;;  %v511_v50 = vadd.f32 %v510_v19, %v392_v48 }
 0x119   : > { %v606_v53 = vadd.f32 %v605_v20, %v509_v49  ;;  %v3858_v19 = vpop.permute.xlu1 %1327 }
 0x11a   : > { %v607_v23 = vpop.f32.mrf.mxu0  ;;  %v3852_v18 = vpop.permute.xlu0 %1093 }
 0x11b   : > { %v687_v1 = vpop.f32.mrf.mxu1  ;;  %v608_v55 = vadd.f32 %v607_v23, %v511_v50 }
 0x11c   : > { %v688_v29 = vadd.f32 %v687_v1, %v598_v26 }
 0x11d   : > { %v689_v25 = vpop.f32.mrf.mxu1  ;;  %v3870_v23 = vpop.permute.xlu1 %1087 }
 0x11e   : > { %v792_v27 = vpop.f32.mrf.mxu0  ;;  %v690_v31 = vadd.f32 %v689_v25, %v600_v28  ;;  %v3860_v20 = vpop.permute.xlu0 %1281 }
 0x11f   : > { %v793_v34 = vadd.f32 %v792_v27, %v688_v29 }
 0x120   : > { %v696_v30 = vpop.f32.mrf.mxu1  ;;  %v794_v32 = vpop.f32.mrf.mxu0 }
 0x121   : > { %v795_v36 = vadd.f32 %v794_v32, %v690_v31  ;;  %v697_v56 = vadd.f32 %v696_v30, %v606_v53  ;;  %v3878_v26 = vpop.permute.xlu1 %1367 }
 0x122   : > { %v698_v33 = vpop.f32.mrf.mxu1  ;;  %v799_v54 = vpop.f32.mrf.mxu0 }
 0x123   : > { %v699_v58 = vadd.f32 %v698_v33, %v608_v55  ;;  %v800_v61 = vadd.f32 %v799_v54, %v697_v56  ;;  %v3872_v1 = vpop.permute.xlu0 %1053 }
 0x124   : > { %v801_v59 = vpop.f32.mrf.mxu0 }
 0x125   : > { %v879_v35 = vpop.f32.mrf.mxu1  ;;  %v802_v63 = vadd.f32 %v801_v59, %v699_v58  ;;  %v3890_v28 = vpop.permute.xlu1 %1047  ;;  %v951_v58 = vlaneseq }
 0x126   : > { %v880_v37 = vadd.f32 %v879_v35, %v793_v34 }
 0x127   : > { %v881_v38 = vpop.f32.mrf.mxu1  ;;  %v3880_v27 = vpop.permute.xlu0 %1321 }
 0x128   : > { %v891_v39 = vsub.f32 0.0, %v880_v37  ;;  %v882_v40 = vadd.f32 %v881_v38, %v795_v36 }
 0x129   : > { %v886_v57 = vpop.f32.mrf.mxu1  ;;  %v3898_v31 = vpop.permute.xlu1 %1407 }
 0x12a   : > { %v895_v41 = vmul.f32 1.442695, %v891_v39  ;;  %v892_v42 = vsub.f32 0.0, %v882_v40  ;;  %v887_v4 = vadd.f32 %v886_v57, %v800_v61  ;;  %v4001_v57 = vld [vmem:[%s5283_s5] sm:$0x3] }
 0x12b   : > { %v888_v62 = vpop.f32.mrf.mxu1  ;;  %v3892_v29 = vpop.permute.xlu0 %1013  ;;  %vm1192_vm1 = vcmp.ge.s32.totalorder %v4001_v57, 0  ;;  %vm1193_vm2 = vcmp.lt.s32.totalorder %v4001_v57, 16 }
 0x12c   : > { %3266 = vpow2.f32 %v895_v41  ;;  %v897_v43 = vmul.f32 1.442695, %v892_v42  ;;  %v889_v7 = vadd.f32 %v888_v62, %v802_v63  ;;  %v893_v9 = vsub.f32 0.0, %v887_v4  ;;  %vm1194_vm5 = vmand %vm1192_vm1, %vm1193_vm2 }
 0x12d   : > { %v3914_v36 = vpop.permute.xlu1 %1007  ;;  %v1152_v62 = vadd.s32 4294967295, %v4001_v57  ;;  %v1216_v63 = vadd.s32 1, %v4001_v57  ;;  %vm5297_vm2 = vcmask 7168  }
 0x12e   : > { %3268 = vpow2.f32 %v897_v43  ;;  %v894_v10 = vsub.f32 0.0, %v889_v7  ;;  %v899_v12 = vmul.f32 1.442695, %v893_v9 }
 0x12f   : > { %v3900_v32 = vpop.permute.xlu0 %1361  ;;  %vm1153_vm3 = vcmp.ge.s32.totalorder %v1152_v62, 0  ;;  %vm1154_vm4 = vcmp.lt.s32.totalorder %v1152_v62, 16  ;;  %vm1217_vm6 = vcmp.ge.s32.totalorder %v1216_v63, 0  ;;  %vm1218_vm7 = vcmp.lt.s32.totalorder %v1216_v63, 16 }
 0x130   : > { %v901_v14 = vmul.f32 1.442695, %v894_v10  ;;  %vm1155_vm8 = vmand %vm1153_vm3, %vm1154_vm4  ;;  %vm5298_vm4 = vcmask 1039360  }
 0x131   : > { %v3922_v38 = vpop.permute.xlu1 %1447  ;;  %vm1219_vm11 = vmand %vm1217_vm6, %vm1218_vm7 }
 0x139   : > { %v3267_v44 = vpop.eup %3266 }
 0x13a   : > { %v903_v46 = vadd.f32 1.0, %v3267_v44 }
 0x13b   : > { %v3269_v47 = vpop.eup %3268 }
 0x13c   : > { %3270 = vrcp.f32 %v903_v46  ;;  %v904_v51 = vadd.f32 1.0, %v3269_v47 }
 0x13e   : > { %3272 = vrcp.f32 %v904_v51 }
 0x13f   : > { %3274 = vpow2.f32 %v899_v12 }
 0x140   : > { %3276 = vpow2.f32 %v901_v14  ;;  %v1195_v14 = vsel %vm1194_vm5, 1, %v5294_v2 }
 0x149   : > { %v3271_v3 = vpop.eup %3270 }
 0x14a   : > { %v3824_v5 = vmul.f32 %v3271_v3, %v880_v37  ;;  %v3916_v37 = vpop.permute.xlu0 %973  ;;  %v952_v3 = vshrl.u32 %v951_v58, 7 }
 0x14b   : > { %v3273_v11 = vpop.eup %3272  ;;  %5349 = vst [vmem:[#allocation12_spill] sm:$0xff] %v3916_v37 }
 0x14c   : > { %5346 = vst [vmem:[#allocation10_spill] sm:$0xff] %v3824_v5  ;;  %969 = vrot.lane.b32.xlu1 %v3824_v5, %s3424_s17  ;;  %1169 = vrot.lane.b32.xlu0 %v3824_v5, %s3414_s18  ;;  %v3836_v13 = vmul.f32 %v3273_v11, %v882_v40  ;;  %v3275_v21 = vpop.eup %3274  ;;  %v3934_v40 = vpop.permute.xlu1 %1441  ;;  %v4014_v10 = vsub.s32 0, %v952_v3  ;;  %v1262_v11 = vadd.s32 2, %v4001_v57  ;;  %v4017_v12 = vsub.s32 1, %v952_v3 }
 0x14d   : > { %v3277_v22 = vpop.eup %3276  ;;  %v905_v24 = vadd.f32 1.0, %v3275_v21  ;;  %v1156_v21 = vsel %vm1155_vm8, 1, %v5294_v2 }
 0x14e   : > { %5347 = vst [vmem:[#allocation11_spill] sm:$0xff] %v3836_v13  ;;  %v906_v25 = vadd.f32 1.0, %v3277_v22  ;;  %v3924_v39 = vpop.permute.xlu0 %1401  ;;  %vm1263_vm13 = vcmp.ge.s32.totalorder %v1262_v11, 0  ;;  %vm1264_vm14 = vcmp.lt.s32.totalorder %v1262_v11, 16  ;;  %v1160_v58 = vrot.slane %v1156_v21, %v4014_v10 }
 0x14f   : > { %3278 = vrcp.f32 %v905_v24  ;;  %v1164_v62 = vrot.slane %v1156_v21, %v4017_v12  ;;  %vm1265_vm15 = vmand %vm1263_vm13, %vm1264_vm14 }
 0x150   : > { %1437 = vrot.lane.b32.xlu1 %v3824_v5, %s3425_s26  ;;  %1237 = vrot.lane.b32.xlu0 %v3824_v5, %s3416_s8  ;;  %3280 = vrcp.f32 %v906_v25  ;;  %v3942_v42 = vpop.permute.xlu1 %1910  ;;  %v1199_v25 = vrot.slane %v1195_v14, %v4014_v10  ;;  %vm4041_vm5 = vcmp.eq.s32.totalorder %v1160_v58, 1 }
 0x151   : > { %vm4045_vm6 = vcmp.eq.s32.totalorder %v1164_v62, 1 }
 0x152   : > { %v3936_v41 = vpop.permute.xlu0 %967  ;;  %vm4032_vm1 = vcmp.eq.s32.totalorder %v1199_v25, 1 }
 0x154   : > { %1171 = vrot.lane.b32.xlu1 %v3836_v13, %s3414_s18  ;;  %1129 = vrot.lane.b32.xlu0 %v3824_v5, %s3413_s16  ;;  %v3954_v44 = vpop.permute.xlu1 %1968 }
 0x156   : > { %v3944_v43 = vpop.permute.xlu0 %1916 }
 0x157   : > { %5350 = vst [vmem:[#allocation13_spill] sm:$0xff] %v3944_v43 }
 0x158   : > { %1239 = vrot.lane.b32.xlu1 %v3836_v13, %s3416_s8  ;;  %1277 = vrot.lane.b32.xlu0 %v3824_v5, %s3417_s7  ;;  %v3962_v46 = vpop.permute.xlu1 %2026 }
 0x159   : > { %5352 = vst [vmem:[#allocation15_spill] sm:$0xff] %v3962_v46 }
 0x15a   : > { %v3956_v45 = vpop.permute.xlu0 %1974 }
 0x15b   : > { %5351 = vst [vmem:[#allocation14_spill] sm:$0xff] %v3956_v45 }
 0x15c   : > { %1131 = vrot.lane.b32.xlu1 %v3836_v13, %s3413_s16  ;;  %1089 = vrot.lane.b32.xlu0 %v3824_v5, %s3418_s13  ;;  %v3279_v30 = vpop.eup %3278  ;;  %v3974_v48 = vpop.permute.xlu1 %1661 }
 0x15d   : > { %v3281_v33 = vpop.eup %3280  ;;  %v3906_v34 = vmul.f32 %v3279_v30, %v887_v4  ;;  %5354 = vst [vmem:[#allocation17_spill] sm:$0xff] %v3974_v48  ;;  %v1112_v4 = vadd.s32 4294967294, %v4001_v57  ;;  %v1220_v30 = vsel %vm1219_vm11, 1, %v5294_v2 }
 0x15e   : > { %v3908_v35 = vmul.f32 %v3281_v33, %v889_v7  ;;  %v3964_v47 = vpop.permute.xlu0 %2032  ;;  %v1203_v33 = vrot.slane %v1195_v14, %v4017_v12  ;;  %v1224_v0 = vrot.slane %v1220_v30, %v4014_v10  ;;  %v1302_v14 = vadd.s32 3, %v4001_v57 }
 0x15f   : > { %5353 = vst [vmem:[#allocation16_spill] sm:$0xff] %v3964_v47  ;;  %vm1113_vm9 = vcmp.ge.s32.totalorder %v1112_v4, 0  ;;  %vm1114_vm10 = vcmp.lt.s32.totalorder %v1112_v4, 16  ;;  %v5364_v47 = vmov 0 }
 0x160   : > { %1279 = vrot.lane.b32.xlu1 %v3836_v13, %s3417_s7  ;;  %1317 = vrot.lane.b32.xlu0 %v3824_v5, %s3419_s19  ;;  %v3982_v50 = vpop.permute.xlu1 %1719  ;;  %vm1115_vm12 = vmand %vm1113_vm9, %vm1114_vm10  ;;  %v5365_v47 = vsel %vm4032_vm1, 4294967295, %v5364_v47  ;;  %vm4036_vm3 = vcmp.eq.s32.totalorder %v1203_v33, 1  ;;  %vm4051_vm7 = vcmp.eq.s32.totalorder %v1224_v0, 1  ;;  %v1032_v0 = vadd.s32 4294967292, %v4001_v57 }
 0x161   : > { %5356 = vst [vmem:[#allocation19_spill] sm:$0xff] %v3982_v50  ;;  %v1116_v3 = vsel %vm1115_vm12, 1, %v5294_v2  ;;  %vm1303_vm12 = vcmp.ge.s32.totalorder %v1302_v14, 0  ;;  %vm1304_vm13 = vcmp.lt.s32.totalorder %v1302_v14, 16  ;;  %v5386_v14 = vmov 0 }
 0x162   : > { %v3976_v49 = vpop.permute.xlu0 %1667  ;;  %v1120_v25 = vrot.slane %v1116_v3, %v4014_v10  ;;  %v1124_v50 = vrot.slane %v1116_v3, %v4017_v12  ;;  %v5376_v3 = vmov 0 }
 0x163   : > { %5355 = vst [vmem:[#allocation18_spill] sm:$0xff] %v3976_v49 }
 0x164   : > { %1091 = vrot.lane.b32.xlu1 %v3836_v13, %s3418_s13  ;;  %1049 = vrot.lane.b32.xlu0 %v3824_v5, %s3420_s20  ;;  %v3990_v53 = vpop.permute.xlu1 %1777  ;;  %vm4072_vm14 = vcmp.eq.s32.totalorder %v1120_v25, 1  ;;  %vm4087_vm0 = vcmp.eq.s32.totalorder %v1124_v50, 1  ;;  %v5383_v50 = vmov 0 }
 0x165   : > { %5358 = vst [vmem:[#allocation21_spill] sm:$0xff] %v3990_v53  ;;  %v5377_v3 = vsel %vm4072_vm14, 4294967295, %v5376_v3 }
 0x166   : > { %v3984_v51 = vpop.permute.xlu0 %1725 }
 0x167   : > { %5357 = vst [vmem:[#allocation20_spill] sm:$0xff] %v3984_v51  ;;  %v1209_v51 = vsel %vm4036_vm3, %v3908_v35, -3e+38 }
 0x168   : > { %1319 = vrot.lane.b32.xlu1 %v3836_v13, %s3419_s19  ;;  %1357 = vrot.lane.b32.xlu0 %v3824_v5, %s3421_s11  ;;  %v3994_v55 = vpop.permute.xlu1 %1504 }
 0x169   : > { %5360 = vst [vmem:[#allocation23_spill] sm:$0xff] %v3994_v55 }
 0x16a   : > { %v3992_v54 = vpop.permute.xlu0 %1783 }
 0x16b   : > { %5359 = vst [vmem:[#allocation22_spill] sm:$0xff] %v3992_v54  ;;  %v1266_v54 = vsel %vm1265_vm15, 1, %v5294_v2 }
 0x16c   : > { %1051 = vrot.lane.b32.xlu1 %v3836_v13, %s3420_s20  ;;  %1009 = vrot.lane.b32.xlu0 %v3824_v5, %s3422_s14  ;;  %v4003_v59 = vpop.permute.xlu1 %1564  ;;  %v1270_v2 = vrot.slane %v1266_v54, %v4014_v10 }
 0x16d   : > { %5362 = vst [vmem:[#allocation25_spill] sm:$0xff] %v4003_v59  ;;  %v1228_v59 = vrot.slane %v1220_v30, %v4017_v12 }
 0x16e   : > { %v3996_v56 = vpop.permute.xlu0 %1510 }
 0x16f   : > { %5361 = vst [vmem:[#allocation24_spill] sm:$0xff] %v3996_v56  ;;  %vm4055_vm8 = vcmp.eq.s32.totalorder %v1228_v59, 1 }
 0x170   : > { %1359 = vrot.lane.b32.xlu1 %v3836_v13, %s3421_s11  ;;  %1397 = vrot.lane.b32.xlu0 %v3824_v5, %s5348_s15 }
 0x172   : > { %v4005_v61 = vpop.permute.xlu0 %1570 }
 0x173   : > { %5363 = vst [vmem:[#allocation26_spill] sm:$0xff] %v4005_v61  ;;  %v1072_v61 = vadd.s32 4294967293, %v4001_v57 }
 0x174   : > { %1011 = vrot.lane.b32.xlu1 %v3836_v13, %s3422_s14  ;;  %971 = vrot.lane.b32.xlu0 %v3836_v13, %s3424_s17 }
 0x175   : > { %vm1073_vm9 = vcmp.ge.s32.totalorder %v1072_v61, 0  ;;  %vm1074_vm10 = vcmp.lt.s32.totalorder %v1072_v61, 16 }
 0x176   : > { %vm4082_vm15 = vmand %vm1073_vm9, %vm1074_vm10  ;;  %vm5382_vm9 = vcmask 15360   ;;  %vm4099_vm10 = vcmp.eq.s32.totalorder %v1270_v2, 1 }
 0x177   : > { %v5384_v50 = vsel %vm4099_vm10, 4294967295, %v5383_v50 }
 0x178   : > { %1399 = vrot.lane.b32.xlu1 %v3836_v13, %s5348_s15  ;;  %1439 = vrot.lane.b32.xlu0 %v3836_v13, %s3425_s26 }
 0x17c   : > { %1175 = vrot.lane.b32.xlu1 %v3906_v34, %s3414_s18  ;;  %1177 = vrot.lane.b32.xlu0 %v3908_v35, %s3414_s18 }
 0x180   : > { %1243 = vrot.lane.b32.xlu1 %v3906_v34, %s3416_s8  ;;  %1245 = vrot.lane.b32.xlu0 %v3908_v35, %s3416_s8  ;;  %s5411_s8 = smov 32  }
 0x184   : > { %1135 = vrot.lane.b32.xlu1 %v3906_v34, %s3413_s16  ;;  %1137 = vrot.lane.b32.xlu0 %v3908_v35, %s3413_s16 }
 0x188   : > { %1283 = vrot.lane.b32.xlu1 %v3906_v34, %s3417_s7  ;;  %1285 = vrot.lane.b32.xlu0 %v3908_v35, %s3417_s7  ;;  %s3429_s7 = smov 80  }
 0x18c   : > { %1095 = vrot.lane.b32.xlu1 %v3906_v34, %s3418_s13  ;;  %1097 = vrot.lane.b32.xlu0 %v3908_v35, %s3418_s13  ;;  %s3431_s13 = smov 48  }
 0x190   : > { %1323 = vrot.lane.b32.xlu1 %v3906_v34, %s3419_s19  ;;  %1325 = vrot.lane.b32.xlu0 %v3908_v35, %s3419_s19 }
 0x194   : > { %1055 = vrot.lane.b32.xlu1 %v3906_v34, %s3420_s20  ;;  %1057 = vrot.lane.b32.xlu0 %v3908_v35, %s3420_s20 }
 0x198   : > { %1363 = vrot.lane.b32.xlu1 %v3906_v34, %s3421_s11  ;;  %1365 = vrot.lane.b32.xlu0 %v3908_v35, %s3421_s11 }
 0x19c   : > { %1015 = vrot.lane.b32.xlu1 %v3906_v34, %s3422_s14  ;;  %1017 = vrot.lane.b32.xlu0 %v3908_v35, %s3422_s14  ;;  %s5514_s14 = sshll.u32 %s3566_s29, 6 }
 0x1a0   : > { %1403 = vrot.lane.b32.xlu1 %v3906_v34, %s5348_s15  ;;  %1405 = vrot.lane.b32.xlu0 %v3908_v35, %s5348_s15  ;;  %s269_s15 = scalar_lea.vmem [#allocation7], %s5514_s14 }
 0x1a4   : > { %975 = vrot.lane.b32.xlu1 %v3906_v34, %s3424_s17  ;;  %977 = vrot.lane.b32.xlu0 %v3908_v35, %s3424_s17  ;;  %s3105_s17 = sshll.u32 %s269_s15, 4  ;;  %s5229_s17 = int_to_ptr.vmem [resolvable:$true] %s3105_s17 }
 0x1a8   : > { %1443 = vrot.lane.b32.xlu1 %v3906_v34, %s3425_s26  ;;  %1445 = vrot.lane.b32.xlu0 %v3908_v35, %s3425_s26  ;;  %s3193_s26 = sshll.u32 %s3490_s25, 10  ;;  %s3432_s25 = smov [#allocation7]  }
 0x1a9   : > { %s5234_s18 = scalar_lea.hbm %s5284_s6, %s3193_s26 }
 0x1be   : > { %v4012_v7 = vpop.permute.xlu1 %969  ;;  %v1170_v9 = vpop.permute.xlu0 %1169 }
 0x1bf   : > { %v1180_v59 = vsel %vm5297_vm2, %v3830_v8, %v1170_v9 }
 0x1c2   : > { %v4021_v22 = vpop.permute.xlu1 %1437  ;;  %v1238_v24 = vpop.permute.xlu0 %1237 }
 0x1c6   : > { %v1172_v63 = vpop.permute.xlu1 %1171  ;;  %v1130_v4 = vpop.permute.xlu0 %1129 }
 0x1c7   : > { %v1181_v48 = vsel %vm5297_vm2, %v1170_v9, %v1172_v63  ;;  %v5380_v63 = vmov 0  ;;  %vm5306_vm2 = vcmask 1031168   ;;  %v1140_v25 = vsel %vm5382_vm9, %v3850_v17, %v1130_v4 }
 0x1c8   : > { %v5381_v63 = vsel %vm4087_vm0, 4294967295, %v5380_v63  ;;  %v1189_v61 = vsel %vm4045_vm6, %v1181_v48, -3e+38  ;;  %v5388_v48 = vmov 0  }
 0x1c9   : > { %v1076_v17 = vsel %vm4082_vm15, 1, %v5388_v48 }
 0x1ca   : > { %v1240_v58 = vpop.permute.xlu1 %1239  ;;  %v1278_v49 = vpop.permute.xlu0 %1277 }
 0x1cb   : > { %v1250_v62 = vsel %vm5298_vm4, %v1238_v24, %v1240_v58  ;;  %v1251_v46 = vsel %vm5298_vm4, %v1240_v58, %v3840_v16  ;;  %v1206_v24 = vsel %vm4032_vm1, %v3824_v5, -3e+38  ;;  %v1274_v16 = vrot.slane %v1266_v54, %v4017_v12  ;;  %vm1305_vm1 = vmand %vm1303_vm12, %vm1304_vm13 }
 0x1cc   : > { %v1258_v58 = vsel %vm4051_vm7, %v1250_v62, -3e+38  ;;  %v1259_v56 = vsel %vm4055_vm8, %v1251_v46, -3e+38  ;;  %v1342_v54 = vadd.s32 4, %v4001_v57  ;;  %vm5385_vm4 = vmmov %vm5382_vm9  ;;  %v1306_v45 = vsel %vm1305_vm1, 1, %v5388_v48 }
 0x1cd   : > { %v1188_v46 = vsel %vm4041_vm5, %v1180_v59, -3e+38  ;;  %v1463_v5 = vmax.f32 %v1259_v56, %v1189_v61  ;;  %vm4104_vm11 = vcmp.eq.s32.totalorder %v1274_v16, 1  ;;  %v1207_v59 = vsel %vm4036_vm3, %v3836_v13, -3e+38 }
 0x1ce   : > { %v1132_v53 = vpop.permute.xlu1 %1131  ;;  %v1090_v9 = vpop.permute.xlu0 %1089  ;;  %v1462_v62 = vmax.f32 %v1258_v58, %v1188_v46  ;;  %v5387_v14 = vsel %vm4104_vm11, 4294967295, %v5386_v14  ;;  %vm1343_vm12 = vcmp.ge.s32.totalorder %v1342_v54, 0  ;;  %vm5389_vm1 = vcmp.lt.s32.totalorder %v1032_v0, 16 }
 0x1cf   : > { %v1141_v55 = vsel %vm5385_vm4, %v1130_v4, %v1132_v53  ;;  %v1148_v53 = vsel %vm4072_vm14, %v1140_v25, -3e+38  ;;  %vm1344_vm4 = vcmp.lt.s32.totalorder %v1342_v54, 16  ;;  %vm5390_vm13 = vcmp.ge.s32.totalorder %v1032_v0, 0 }
 0x1d0   : > { %v1149_v16 = vsel %vm4087_vm0, %v1141_v55, -3e+38  ;;  %vm1035_vm15 = vmand %vm5390_vm13, %vm5389_vm1  ;;  %v1466_v46 = vmax.f32 %v1206_v24, %v1462_v62  ;;  %v1467_v61 = vmax.f32 %v1207_v59, %v1463_v5  ;;  %v1080_v0 = vrot.slane %v1076_v17, %v4014_v10 }
 0x1d1   : > { %vm1345_vm9 = vmand %vm1343_vm12, %vm1344_vm4  ;;  %vm5307_vm1 = vcmask 1022976   ;;  %v1084_v5 = vrot.slane %v1076_v17, %v4017_v12  ;;  %vm5308_vm12 = vcmask 23552   ;;  %v5393_v62 = vmov 0 }
 0x1d2   : > { %v1280_v2 = vpop.permute.xlu1 %1279  ;;  %v1318_v43 = vpop.permute.xlu0 %1317  ;;  %v1346_v24 = vsel %vm1345_vm9, 1, %v5388_v48  ;;  %vm5313_vm9 = vcmask 1014784  }
 0x1d3   : > { %v1290_v56 = vsel %vm5306_vm2, %v1278_v49, %v1280_v2  ;;  %v1291_v4 = vsel %vm5306_vm2, %v1280_v2, %v3860_v20  ;;  %v1310_v20 = vrot.slane %v1306_v45, %v4014_v10  ;;  %vm4163_vm2 = vcmp.eq.s32.totalorder %v1084_v5, 1 }
 0x1d4   : > { %v1298_v58 = vsel %vm4099_vm10, %v1290_v56, -3e+38  ;;  %v1299_v8 = vsel %vm4104_vm11, %v1291_v4, -3e+38  ;;  %v1036_v56 = vsel %vm1035_vm15, 1, %v5388_v48  ;;  %v1314_v4 = vrot.slane %v1306_v45, %v4017_v12 }
 0x1d5   : > { %v1470_v25 = vmax.f32 %v1298_v58, %v1148_v53  ;;  %v1471_v49 = vmax.f32 %v1299_v8, %v1149_v16  ;;  %v1040_v54 = vrot.slane %v1036_v56, %v4014_v10  ;;  %vm4144_vm4 = vcmp.eq.s32.totalorder %v1310_v20, 1 }
 0x1d6   : > { %v1092_v13 = vpop.permute.xlu1 %1091  ;;  %v1050_v37 = vpop.permute.xlu0 %1049  ;;  %v5394_v62 = vsel %vm4144_vm4, 4294967295, %v5393_v62  ;;  %vm4148_vm13 = vcmp.eq.s32.totalorder %v1314_v4, 1  ;;  %v5395_v53 = vmov 0  ;;  %v1044_v58 = vrot.slane %v1036_v56, %v4017_v12 }
 0x1d7   : > { %v4130_v55 = vmax.f32 %v1466_v46, %v1470_v25  ;;  %v4132_v2 = vmax.f32 %v1467_v61, %v1471_v49  ;;  %v5396_v53 = vsel %vm4148_vm13, 4294967295, %v5395_v53  ;;  %vm4156_vm15 = vcmp.eq.s32.totalorder %v1080_v0, 1 }
 0x1d8   : > { %v5397_v8 = vmov 0  ;;  %v1350_v46 = vrot.slane %v1346_v24, %v4014_v10  ;;  %v1100_v61 = vsel %vm5308_vm12, %v3870_v23, %v1090_v9  ;;  %v5399_v25 = vmov 0 }
 0x1d9   : > { %5391 = vst [vmem:[#allocation27_spill] sm:$0xff] %v4130_v55  ;;  %5392 = vst [vmem:[#allocation28_spill] sm:$0xff] %v4132_v2  ;;  %1502 = vrot.lane.b32.xlu0 %v4132_v2, %s3426_s28  ;;  %1500 = vrot.lane.b32.xlu1 %v4130_v55, %s3426_s28  ;;  %v5398_v8 = vsel %vm4156_vm15, 4294967295, %v5397_v8  ;;  %v5400_v25 = vsel %vm4163_vm2, 4294967295, %v5399_v25  ;;  %v5401_v4 = vmov 0 }
 0x1da   : > { %v1320_v45 = vpop.permute.xlu1 %1319  ;;  %v1358_v59 = vpop.permute.xlu0 %1357 }
 0x1db   : > { %v1330_v17 = vsel %vm5307_vm1, %v1318_v43, %v1320_v45  ;;  %v1331_v16 = vsel %vm5307_vm1, %v1320_v45, %v3880_v27  ;;  %v1101_v43 = vsel %vm5308_vm12, %v1090_v9, %v1092_v13  ;;  %v1354_v27 = vrot.slane %v1346_v24, %v4017_v12 }
 0x1dc   : > { %v1338_v49 = vsel %vm4144_vm4, %v1330_v17, -3e+38  ;;  %v1339_v23 = vsel %vm4148_vm13, %v1331_v16, -3e+38  ;;  %vm4179_vm1 = vcmp.eq.s32.totalorder %v1040_v54, 1  ;;  %vm4183_vm12 = vcmp.eq.s32.totalorder %v1044_v58, 1 }
 0x1dd   : > { %1562 = vrot.lane.b32.xlu0 %v4132_v2, %s3427_s12  ;;  %1560 = vrot.lane.b32.xlu1 %v4130_v55, %s3427_s12  ;;  %v5402_v4 = vsel %vm4179_vm1, 4294967295, %v5401_v4  ;;  %v5403_v13 = vmov 0  ;;  %v1108_v9 = vsel %vm4156_vm15, %v1100_v61, -3e+38  ;;  %v1109_v0 = vsel %vm4163_vm2, %v1101_v43, -3e+38 }
 0x1de   : > { %v1052_v20 = vpop.permute.xlu1 %1051  ;;  %v4177_v56 = vpop.permute.xlu0 %1009  ;;  %v5404_v13 = vsel %vm4183_vm12, 4294967295, %v5403_v13  ;;  %vm5405_vm4 = vcmask 31744   ;;  %vm4193_vm13 = vcmp.eq.s32.totalorder %v1350_v46, 1  ;;  %v5406_v24 = vmov 0 }
 0x1df   : > { %v1060_v5 = vsel %vm5405_vm4, %v3890_v28, %v1050_v37  ;;  %v5407_v24 = vsel %vm4193_vm13, 4294967295, %v5406_v24  ;;  %v1619_v54 = vmax.f32 %v1338_v49, %v1108_v9  ;;  %v1620_v45 = vmax.f32 %v1339_v23, %v1109_v0  ;;  %vm5408_vm11 = vmmov %vm5405_vm4 }
 0x1e0   : > { %v1061_v17 = vsel %vm5408_vm11, %v1050_v37, %v1052_v20  ;;  %vm4198_vm10 = vcmp.eq.s32.totalorder %v1354_v27, 1  ;;  %v5409_v16 = vmov 0  ;;  %v1068_v43 = vsel %vm4179_vm1, %v1060_v5, -3e+38 }
 0x1e1   : > { %v5410_v16 = vsel %vm4198_vm10, 4294967295, %v5409_v16  ;;  %v1069_v49 = vsel %vm4183_vm12, %v1061_v17, -3e+38  ;;  %v1623_v23 = vmax.f32 %v4130_v55, %v1619_v54  ;;  %v1624_v20 = vmax.f32 %v4132_v2, %v1620_v45 }
 0x1e2   : > { %v1360_v58 = vpop.permute.xlu1 %1359  ;;  %v4202_v61 = vpop.permute.xlu0 %1397  ;;  %v1382_v54 = vadd.s32 5, %v4001_v57  ;;  %vm5412_vm15 = vcmask 1039360  }
 0x1e3   : > { %v1370_v28 = vsel %vm5313_vm9, %v1358_v59, %v1360_v58  ;;  %v1371_v46 = vsel %vm5313_vm9, %v1360_v58, %v3900_v32  ;;  %vm5413_vm12 = vmmov %vm5412_vm15 }
 0x1e4   : > { %v1378_v37 = vsel %vm4193_vm13, %v1370_v28, -3e+38  ;;  %v1379_v27 = vsel %vm4198_vm10, %v1371_v46, -3e+38  ;;  %vm1383_vm11 = vcmp.ge.s32.totalorder %v1382_v54, 0  ;;  %vm1384_vm4 = vcmp.lt.s32.totalorder %v1382_v54, 16 }
 0x1e5   : > { %v1627_v9 = vmax.f32 %v1378_v37, %v1068_v43  ;;  %v1628_v0 = vmax.f32 %v1379_v27, %v1069_v49  ;;  %v992_v43 = vadd.s32 4294967291, %v4001_v57  ;;  %v1422_v49 = vadd.s32 6, %v4001_v57  ;;  %vm1385_vm13 = vmand %vm1383_vm11, %vm1384_vm4 }
 0x1e6   : > { %v4217_v5 = vpop.permute.xlu1 %1011  ;;  %v4219_v59 = vpop.permute.xlu0 %971  ;;  %v946_v37 = vadd.s32 4294967290, %v4001_v57  ;;  %vm5414_vm4 = vcmask 7168  }
 0x1e7   : > { %v4221_v32 = vmax.f32 %v1623_v23, %v1627_v9  ;;  %v4223_v58 = vmax.f32 %v1624_v20, %v1628_v0  ;;  %vm993_vm9 = vcmp.ge.s32.totalorder %v992_v43, 0  ;;  %vm994_vm1 = vcmp.lt.s32.totalorder %v992_v43, 16  ;;  %vm5415_vm0 = vmmov %vm5414_vm4 }
 0x1e8   : > { %vm995_vm10 = vmand %vm993_vm9, %vm994_vm1  ;;  %v1386_v0 = vsel %vm1385_vm13, 1, %v5388_v48  ;;  %vm1423_vm2 = vcmp.ge.s32.totalorder %v1422_v49, 0  ;;  %vm1424_vm11 = vcmp.lt.s32.totalorder %v1422_v49, 16  ;;  %vm947_vm14 = vcmp.ge.s32.totalorder %v946_v37, 0 }
 0x1e9   : > { %1659 = vrot.lane.b32.xlu0 %v4223_v58, %s3426_s28  ;;  %1657 = vrot.lane.b32.xlu1 %v4221_v32, %s3426_s28  ;;  %vm1425_vm1 = vmand %vm1423_vm2, %vm1424_vm11  ;;  %vm5416_vm13 = vnez %v5365_v47  ;;  %v1394_v21 = vrot.slane %v1386_v0, %v4017_v12  ;;  %vm5424_vm9 = vnez %v5381_v63  ;;  %vm5426_vm11 = vnez %v5387_v14 }
 0x1ea   : > { %v4230_v17 = vpop.permute.xlu1 %1399  ;;  %v4232_v45 = vpop.permute.xlu0 %1439  ;;  %v1426_v30 = vsel %vm1425_vm1, 1, %v5388_v48 }
 0x1eb   : > { %v1430_v14 = vrot.slane %v1426_v30, %v4014_v10  ;;  %vm4313_vm1 = vcmp.eq.s32.totalorder %v1394_v21, 1 }
 0x1ed   : > { %1717 = vrot.lane.b32.xlu0 %v4223_v58, %s3427_s12  ;;  %1715 = vrot.lane.b32.xlu1 %v4221_v32, %s3427_s12 }
 0x1ee   : > { %v1176_v28 = vpop.permute.xlu1 %1175  ;;  %v1178_v46 = vpop.permute.xlu0 %1177 }
 0x1ef   : > { %v1182_v54 = vsel %vm5414_vm4, %v3820_v52, %v1176_v28  ;;  %v1183_v43 = vsel %vm5415_vm0, %v1176_v28, %v1178_v46  ;;  %v1208_v52 = vsel %vm5416_vm13, %v3906_v34, -3e+38  ;;  %vm5417_vm0 = vcmask 15360  }
 0x1f0   : > { %v1190_v28 = vsel %vm4041_vm5, %v1182_v54, -3e+38  ;;  %v1191_v33 = vsel %vm4045_vm6, %v1183_v43, -3e+38  ;;  %vm5418_vm2 = vmmov %vm5417_vm0  ;;  %vm5421_vm6 = vnez %v5377_v3  ;;  %vm5326_vm13 = vcmask 48128  }
 0x1f1   : > { %1775 = vrot.lane.b32.xlu0 %v4223_v58, %s5411_s8  ;;  %1773 = vrot.lane.b32.xlu1 %v4221_v32, %s5411_s8 }
 0x1f2   : > { %v1244_v27 = vpop.permute.xlu1 %1243  ;;  %v1246_v23 = vpop.permute.xlu0 %1245 }
 0x1f3   : > { %v1252_v20 = vsel %vm5412_vm15, %v1244_v27, %v1246_v23  ;;  %v1253_v9 = vsel %vm5413_vm12, %v1246_v23, %v3822_v60  ;;  %vm948_vm12 = vcmp.lt.s32.totalorder %v946_v37, 16  ;;  %v996_v60 = vsel %vm995_vm10, 1, %v5388_v48 }
 0x1f4   : > { %v1260_v57 = vsel %vm4051_vm7, %v1252_v20, -3e+38  ;;  %v1261_v27 = vsel %vm4055_vm8, %v1253_v9, -3e+38  ;;  %v1390_v23 = vrot.slane %v1386_v0, %v4014_v10  ;;  %vm1409_vm7 = vcmask 1006592   ;;  %vm949_vm3 = vmand %vm947_vm14, %vm948_vm12 }
 0x1f5   : > { %v1464_v49 = vmax.f32 %v1260_v57, %v1190_v28  ;;  %v1465_v20 = vmax.f32 %v1261_v27, %v1191_v33  ;;  %v1000_v47 = vrot.slane %v996_v60, %v4014_v10  ;;  %vm5328_vm8 = vcmask 39936  }
 0x1f6   : > { %v1136_v2 = vpop.permute.xlu1 %1135  ;;  %v1138_v55 = vpop.permute.xlu0 %1137  ;;  %vm4276_vm5 = vcmp.eq.s32.totalorder %v1390_v23, 1  ;;  %vm5422_vm10 = vcmask 1031168   ;;  %v1410_v0 = vsel %vm1409_vm7, %v4202_v61, %v4230_v17  ;;  %vm5425_vm14 = vnez %v5384_v50 }
 0x1f7   : > { %v1142_v46 = vsel %vm5417_vm0, %v3818_v6, %v1136_v2  ;;  %v1143_v9 = vsel %vm5418_vm2, %v1136_v2, %v1138_v55  ;;  %vm5423_vm15 = vmmov %vm5422_vm10  ;;  %v1468_v3 = vmax.f32 %v1208_v52, %v1464_v49  ;;  %v1469_v23 = vmax.f32 %v1209_v51, %v1465_v20 }
 0x1f8   : > { %v1150_v6 = vsel %vm5421_vm6, %v1142_v46, -3e+38  ;;  %v1151_v37 = vsel %vm5424_vm9, %v1143_v9, -3e+38  ;;  %v950_v46 = vsel %vm949_vm3, 1, %v5388_v48  ;;  %vm4295_vm4 = vcmp.eq.s32.totalorder %v1000_v47, 1 }
 0x1f9   : > { %v1004_v61 = vrot.slane %v996_v60, %v4017_v12  ;;  %v1020_v50 = vsel %vm5328_vm8, %v3914_v36, %v4177_v56  ;;  %v1418_v48 = vsel %vm4276_vm5, %v1410_v0, -3e+38  ;;  %vm5327_vm12 = vcmask 998400  }
 0x1fa   : > { %v1284_v54 = vpop.permute.xlu1 %1283  ;;  %v1286_v43 = vpop.permute.xlu0 %1285  ;;  %v954_v49 = vrot.slane %v950_v46, %v4014_v10  ;;  %v1411_v36 = vsel %vm1409_vm7, %v4230_v17, %v3924_v39  ;;  %v1434_v20 = vrot.slane %v1426_v30, %v4017_v12  ;;  %v1028_v10 = vsel %vm4295_vm4, %v1020_v50, -3e+38 }
 0x1fb   : > { %v1292_v55 = vsel %vm5422_vm10, %v1284_v54, %v1286_v43  ;;  %v1293_v2 = vsel %vm5423_vm15, %v1286_v43, %v3838_v15  ;;  %vm4327_vm0 = vcmp.eq.s32.totalorder %v1004_v61, 1  ;;  %v1021_v39 = vsel %vm5328_vm8, %v4177_v56, %v4217_v5 }
 0x1fc   : > { %v1300_v57 = vsel %vm5425_vm14, %v1292_v55, -3e+38  ;;  %v1301_v27 = vsel %vm5426_vm11, %v1293_v2, -3e+38  ;;  %v1868_v17 = vmax.f32 %v1418_v48, %v1028_v10  ;;  %vm4334_vm2 = vcmp.eq.s32.totalorder %v1430_v14, 1 }
 0x1fd   : > { %v1472_v28 = vmax.f32 %v1300_v57, %v1150_v6  ;;  %v1473_v33 = vmax.f32 %v1301_v27, %v1151_v37  ;;  %v1450_v43 = vsel %vm5327_vm12, %v4021_v22, %v4232_v45  ;;  %v1419_v6 = vsel %vm4313_vm1, %v1411_v36, -3e+38 }
 0x1fe   : > { %v4300_v63 = vpop.permute.xlu1 %1095  ;;  %v1098_v9 = vpop.permute.xlu0 %1097  ;;  %vm4343_vm3 = vcmp.eq.s32.totalorder %v954_v49, 1  ;;  %v980_v56 = vsel %vm5326_vm13, %v3936_v41, %v4012_v7  ;;  %v958_v5 = vrot.slane %v950_v46, %v4017_v12  ;;  %vm4351_vm6 = vcmp.eq.s32.totalorder %v1434_v20, 1 }
 0x1ff   : > { %v4306_v52 = vmax.f32 %v1468_v3, %v1472_v28  ;;  %v4308_v51 = vmax.f32 %v1469_v23, %v1473_v33  ;;  %v1029_v22 = vsel %vm4327_vm0, %v1021_v39, -3e+38  ;;  %v1458_v0 = vsel %vm4334_vm2, %v1450_v43, -3e+38 }
 0x200   : > { %v1834_v41 = vmax.f32 %v4223_v58, -3e+38  ;;  %v1869_v12 = vmax.f32 %v1419_v6, %v1029_v22  ;;  %v1872_v57 = vmax.f32 %v4221_v32, %v1868_v17  ;;  %v1451_v27 = vsel %vm5327_vm12, %v4232_v45, %v3934_v40 }
 0x201   : > { %1506 = vrot.lane.b32.xlu0 %v4306_v52, %s3426_s28  ;;  %1508 = vrot.lane.b32.xlu1 %v4308_v51, %s3426_s28  ;;  %v1833_v3 = vmax.f32 %v4221_v32, %v4223_v58  ;;  %v988_v23 = vsel %vm4343_vm3, %v980_v56, -3e+38  ;;  %vm4372_vm10 = vcmp.eq.s32.totalorder %v958_v5, 1  ;;  %v981_v46 = vsel %vm5326_vm13, %v4012_v7, %v4219_v59 }
 0x202   : > { %v1324_v21 = vpop.permute.xlu1 %1323  ;;  %v1326_v54 = vpop.permute.xlu0 %1325  ;;  %v1876_v61 = vmax.f32 %v1458_v0, %v988_v23  ;;  %v1459_v40 = vsel %vm4351_vm6, %v1451_v27, -3e+38  ;;  %v1873_v50 = vmax.f32 %v4223_v58, %v1869_v12  ;;  %vm5441_vm15 = vcmask 1022976  }
 0x203   : > { %v1333_v48 = vsel %vm5441_vm15, %v1326_v54, %v3858_v19  ;;  %v1832_v49 = vmax.f32 %v4221_v32, -3e+38  ;;  %v989_v7 = vsel %vm4372_vm10, %v981_v46, -3e+38  ;;  %vm5442_vm9 = vcmask 23552  }
 0x204   : > { %v4384_v14 = vmax.f32 %v1872_v57, %v1876_v61  ;;  %v1877_v59 = vmax.f32 %v1459_v40, %v989_v7  ;;  %v1103_v36 = vsel %vm5442_vm9, %v4300_v63, %v1098_v9  ;;  %vm5443_vm14 = vcmask 1014784  }
 0x205   : > { %1566 = vrot.lane.b32.xlu0 %v4306_v52, %s3427_s12  ;;  %1568 = vrot.lane.b32.xlu1 %v4308_v51, %s3427_s12  ;;  %vm5444_vm11 = vnez %v5396_v53  ;;  %v1332_v17 = vsel %vm5441_vm15, %v1324_v21, %v1326_v54  ;;  %vm5445_vm13 = vcmask 31744   ;;  %vm5446_vm9 = vnez %v5400_v25 }
 0x206   : > { %v1058_v37 = vpop.permute.xlu0 %1057  ;;  %v1056_v28 = vpop.permute.xlu1 %1055  ;;  %v1341_v19 = vsel %vm5444_vm11, %v1333_v48, -3e+38  ;;  %v4400_v39 = vmax.f32 %v1873_v50, %v1877_v59  ;;  %v1111_v9 = vsel %vm5446_vm9, %v1103_v36, -3e+38  ;;  %vm5448_vm12 = vcmask 23552  }
 0x207   : > { %v1063_v43 = vsel %vm5445_vm13, %v1056_v28, %v1058_v37  ;;  %v1102_v6 = vsel %vm5448_vm12, %v3852_v18, %v4300_v63  ;;  %v1622_v56 = vmax.f32 %v1341_v19, %v1111_v9  ;;  %vm5449_vm8 = vcmask 1014784  }
 0x208   : > { %vm5450_vm13 = vnez %v5394_v62  ;;  %vm5451_vm11 = vnez %v5404_v13  ;;  %vm5452_vm15 = vcmask 31744   ;;  %vm5453_vm12 = vnez %v5398_v8 }
 0x209   : > { %1848 = vrot.lane.b32.xlu0 %v1834_v41, %s3427_s12  ;;  %1846 = vrot.lane.b32.xlu1 %v1833_v3, %s3427_s12  ;;  %v1340_v25 = vsel %vm5450_vm13, %v1332_v17, -3e+38  ;;  %v1062_v21 = vsel %vm5452_vm15, %v3872_v1, %v1056_v28  ;;  %v1110_v18 = vsel %vm5453_vm12, %v1102_v6, -3e+38  ;;  %v1626_v0 = vmax.f32 %v4308_v51, %v1622_v56 }
 0x20a   : > { %v1366_v45 = vpop.permute.xlu0 %1365  ;;  %v1364_v10 = vpop.permute.xlu1 %1363  ;;  %v1621_v22 = vmax.f32 %v1340_v25, %v1110_v18  ;;  %vm5455_vm9 = vnez %v5402_v4  ;;  %v2081_v57 = vmax.f32 %v4384_v14, %v4400_v39  ;;  %v2120_v28 = vmax.f32 %v4400_v39, %v3942_v42 }
 0x20b   : > { %v1373_v20 = vsel %vm5443_vm14, %v1366_v45, %v3878_v26  ;;  %vm5447_vm14 = vnez %v5410_v16  ;;  %v1372_v53 = vsel %vm5449_vm8, %v1364_v10, %v1366_v45  ;;  %v1071_v16 = vsel %vm5451_vm11, %v1063_v43, -3e+38  ;;  %v5461_v10 = vld [vmem:[#allocation12_spill] sm:$0xff] }
 0x20c   : > { %v1381_v26 = vsel %vm5447_vm14, %v1373_v20, -3e+38  ;;  %vm5454_vm8 = vnez %v5407_v24  ;;  %v1070_v1 = vsel %vm5455_vm9, %v1062_v21, -3e+38  ;;  %v1625_v24 = vmax.f32 %v4306_v52, %v1621_v22  ;;  %v5464_v22 = vld [vmem:[#allocation13_spill] sm:$0xff] }
 0x20d   : > { %1906 = vrot.lane.b32.xlu1 %v4384_v14, %s3426_s28  ;;  %1844 = vrot.lane.b32.xlu0 %v1832_v49, %s3427_s12  ;;  %v1630_v54 = vmax.f32 %v1381_v26, %v1071_v16  ;;  %v1380_v63 = vsel %vm5454_vm8, %v1372_v53, -3e+38  ;;  %v2082_v46 = vmax.f32 %v4400_v39, -3e+38  ;;  %vm5456_vm14 = vcmask 39936   ;;  %v5463_v16 = vld [vmem:[#allocation14_spill] sm:$0xff] }
 0x20e   : > { %v1018_v5 = vpop.permute.xlu0 %1017  ;;  %v1629_v62 = vmax.f32 %v1380_v63, %v1070_v1  ;;  %v1016_v8 = vpop.permute.xlu1 %1015  ;;  %vm5457_vm13 = vcmask 998400   ;;  %vm5458_vm11 = vcmask 48128   ;;  %v2159_v49 = vmax.f32 %v4400_v39, %v3954_v44  ;;  %vm5459_vm15 = vmmov %vm5456_vm14  ;;  %v5465_v1 = vld [vmem:[#allocation23_spill] sm:$0xff] }
 0x20f   : > { %v4433_v13 = vmax.f32 %v1626_v0, %v1630_v54  ;;  %v1023_v61 = vsel %vm5456_vm14, %v1016_v8, %v1018_v5  ;;  %v2080_v7 = vmax.f32 %v4384_v14, -3e+38  ;;  %v1022_v60 = vsel %vm5459_vm15, %v3892_v29, %v1016_v8 }
 0x210   : > { %v4440_v41 = vmax.f32 %v1625_v24, %v1629_v62  ;;  %v1030_v9 = vsel %vm4295_vm4, %v1022_v60, -3e+38  ;;  %v5466_v24 = vld [vmem:[#allocation27_spill] sm:$0xff]  ;;  %vm1572_vm4 = vcmask 523264   ;;  %vm1547_vm14 = vcmask 130048  }
 0x211   : > { %1964 = vrot.lane.b32.xlu1 %v4384_v14, %s3427_s12  ;;  %1908 = vrot.lane.b32.xlu0 %v4400_v39, %s3426_s28  ;;  %v1837_v43 = vmax.f32 %v4433_v13, -3e+38  ;;  %vm1819_vm15 = vcmask 392192  }
 0x212   : > { %v1406_v37 = vpop.permute.xlu0 %1405  ;;  %v1404_v4 = vpop.permute.xlu1 %1403  ;;  %v1836_v29 = vmax.f32 %v4440_v41, %v4433_v13  ;;  %v1835_v25 = vmax.f32 %v4440_v41, -3e+38 }
 0x213   : > { %v1413_v23 = vsel %vm1409_vm7, %v1406_v37, %v3898_v31  ;;  %v1412_v31 = vsel %vm1409_vm7, %v1404_v4, %v1406_v37  ;;  %vm5462_vm7 = vmmov %vm5458_vm11  ;;  %v5467_v4 = vld [vmem:[#allocation28_spill] sm:$0xff] }
 0x214   : > { %v1421_v45 = vsel %vm4313_vm1, %v1413_v23, -3e+38  ;;  %vm5460_vm1 = vmmov %vm5457_vm13  ;;  %v1420_v19 = vsel %vm4276_vm5, %v1412_v31, -3e+38  ;;  %vm1512_vm5 = vcmask 785408  }
 0x215   : > { %2022 = vrot.lane.b32.xlu1 %v4384_v14, %s5411_s8  ;;  %1966 = vrot.lane.b32.xlu0 %v4400_v39, %s3427_s12  ;;  %v1870_v11 = vmax.f32 %v1420_v19, %v1030_v9 }
 0x216   : > { %v978_v12 = vpop.permute.xlu0 %977  ;;  %v976_v27 = vpop.permute.xlu1 %975 }
 0x217   : > { %v983_v48 = vsel %vm5458_vm11, %v976_v27, %v978_v12  ;;  %v982_v2 = vsel %vm5462_vm7, %v5461_v10, %v976_v27  ;;  %v1874_v15 = vmax.f32 %v4440_v41, %v1870_v11  ;;  %v5470_v10 = vld [vmem:[#allocation24_spill] sm:$0xff] }
 0x218   : > { %v991_v47 = vsel %vm4372_vm10, %v983_v48, -3e+38  ;;  %v990_v33 = vsel %vm4343_vm3, %v982_v2, -3e+38 }
 0x219   : > { %1665 = vrot.lane.b32.xlu1 %v4433_v13, %s3426_s28  ;;  %2024 = vrot.lane.b32.xlu0 %v4400_v39, %s5411_s8 }
 0x21a   : > { %v1446_v3 = vpop.permute.xlu0 %1445  ;;  %v1444_v50 = vpop.permute.xlu1 %1443 }
 0x21b   : > { %v1453_v40 = vsel %vm5457_vm13, %v1446_v3, %v3922_v38  ;;  %v1031_v38 = vsel %vm4327_vm0, %v1023_v61, -3e+38  ;;  %v1452_v20 = vsel %vm5460_vm1, %v1444_v50, %v1446_v3  ;;  %vm5469_vm0 = vcmask 261120  }
 0x21c   : > { %v1461_v59 = vsel %vm4351_vm6, %v1453_v40, -3e+38  ;;  %v1871_v36 = vmax.f32 %v1421_v45, %v1031_v38  ;;  %v1460_v26 = vsel %vm4334_vm2, %v1452_v20, -3e+38  ;;  %vm5473_vm2 = vmmov %vm5469_vm0 }
 0x21d   : > { %1723 = vrot.lane.b32.xlu1 %v4433_v13, %s3427_s12  ;;  %1663 = vrot.lane.b32.xlu0 %v4440_v41, %s3426_s28  ;;  %v1879_v17 = vmax.f32 %v1461_v59, %v991_v47  ;;  %v1878_v56 = vmax.f32 %v1460_v26, %v990_v33  ;;  %v5468_v59 = vld [vmem:[#allocation21_spill] sm:$0xff]  ;;  %vm5475_vm3 = vmmov %vm5469_vm0 }
 0x21e   : > { %v1875_v6 = vmax.f32 %v4433_v13, %v1871_v36  ;;  %vm5477_vm6 = vmmov %vm5469_vm0 }
 0x21f   : > { %v4506_v30 = vmax.f32 %v1874_v15, %v1878_v56  ;;  %vm5478_vm10 = vmmov %vm5469_vm0 }
 0x220   : > { %v4499_v53 = vmax.f32 %v1875_v6, %v1879_v17  ;;  %v5471_v17 = vld [vmem:[#allocation17_spill] sm:$0xff]  ;;  %v5472_v6 = vld [vmem:[#allocation19_spill] sm:$0xff]  ;;  %vm5481_vm12 = vmmov %vm5469_vm0 }
 0x221   : > { %1781 = vrot.lane.b32.xlu1 %v4433_v13, %s5411_s8  ;;  %1721 = vrot.lane.b32.xlu0 %v4440_v41, %s3427_s12  ;;  %v2083_v18 = vmax.f32 %v4506_v30, -3e+38  ;;  %vm5483_vm8 = vmmov %vm5469_vm0 }
 0x222   : > { %v2084_v55 = vmax.f32 %v4506_v30, %v4499_v53  ;;  %v2162_v21 = vmax.f32 %v4499_v53, %v5463_v16  ;;  %v2085_v54 = vmax.f32 %v4499_v53, -3e+38  ;;  %v2123_v0 = vmax.f32 %v4499_v53, %v5464_v22  ;;  %vm5484_vm9 = vmmov %vm5469_vm0 }
 0x223   : > { %vm5487_vm13 = vmmov %vm5469_vm0 }
 0x224   : > { %vm5488_vm11 = vmmov %vm5469_vm0 }
 0x225   : > { %2094 = vrot.lane.b32.xlu1 %v2081_v57, %s3427_s12  ;;  %1779 = vrot.lane.b32.xlu0 %v4440_v41, %s5411_s8  ;;  %vm5490_vm1 = vmmov %vm5469_vm0 }
 0x226   : > { %vm5491_vm7 = vmmov %vm5469_vm0 }
 0x229   : > { %2134 = vrot.lane.b32.xlu1 %v2120_v28, %s3429_s7  ;;  %2096 = vrot.lane.b32.xlu0 %v2082_v46, %s3427_s12 }
 0x22d   : > { %2173 = vrot.lane.b32.xlu1 %v2159_v49, %s3426_s28  ;;  %2092 = vrot.lane.b32.xlu0 %v2080_v7, %s3427_s12 }
 0x231   : > { %1852 = vrot.lane.b32.xlu1 %v1836_v29, %s3427_s12  ;;  %1854 = vrot.lane.b32.xlu0 %v1837_v43, %s3427_s12 }
 0x235   : > { %1914 = vrot.lane.b32.xlu1 %v4499_v53, %s3426_s28  ;;  %1850 = vrot.lane.b32.xlu0 %v1835_v25, %s3427_s12 }
 0x239   : > { %1972 = vrot.lane.b32.xlu1 %v4499_v53, %s3427_s12  ;;  %1912 = vrot.lane.b32.xlu0 %v4506_v30, %s3426_s28 }
 0x23d   : > { %2030 = vrot.lane.b32.xlu1 %v4499_v53, %s5411_s8  ;;  %1970 = vrot.lane.b32.xlu0 %v4506_v30, %s3427_s12 }
 0x241   : > { %2100 = vrot.lane.b32.xlu1 %v2084_v55, %s3427_s12  ;;  %2028 = vrot.lane.b32.xlu0 %v4506_v30, %s5411_s8 }
 0x245   : > { %2179 = vrot.lane.b32.xlu1 %v2162_v21, %s3426_s28  ;;  %2102 = vrot.lane.b32.xlu0 %v2085_v54, %s3427_s12 }
 0x249   : > { %2098 = vrot.lane.b32.xlu0 %v2083_v18, %s3427_s12  ;;  %s3430_s12 = smov 16  }
 0x24b   : > { %v1503_v63 = vpop.permute.xlu0 %1502  ;;  %v4528_v5 = vpop.permute.xlu1 %1500 }
 0x24c   : > { %v1514_v62 = vsel %vm1512_vm5, %v1503_v63, %v5465_v1  ;;  %v1513_v8 = vsel %vm1512_vm5, %v4528_v5, %v1503_v63 }
 0x24d   : > { %v1524_v37 = vmax.f32 %v5466_v24, %v1513_v8  ;;  %2140 = vrot.lane.b32.xlu0 %v2123_v0, %s3429_s7  ;;  %v1525_v12 = vmax.f32 %v5467_v4, %v1514_v62 }
 0x24f   : > { %1537 = vrot.lane.b32.xlu1 %v1524_v37, %s3430_s12  ;;  %v4541_v57 = vpop.permute.xlu0 %1562  ;;  %v4543_v27 = vpop.permute.xlu1 %1560 }
 0x251   : > { %1539 = vrot.lane.b32.xlu0 %v1525_v12, %s3430_s12 }
 0x25b   : > { %v1660_v3 = vpop.permute.xlu0 %1659  ;;  %v1658_v23 = vpop.permute.xlu1 %1657 }
 0x25c   : > { %v1679_v28 = vmax.f32 %v1658_v23, -3e+38  ;;  %v1669_v45 = vsel %vm1512_vm5, %v1658_v23, %v1660_v3  ;;  %v1670_v29 = vsel %vm1512_vm5, %v1660_v3, %v5471_v17 }
 0x25d   : > { %v1680_v31 = vmax.f32 %v4221_v32, %v1669_v45  ;;  %v1681_v11 = vmax.f32 %v4223_v58, %v1670_v29 }
 0x25e   : > { %1691 = vrot.lane.b32.xlu0 %v1679_v28, %s3430_s12 }
 0x25f   : > { %v1716_v46 = vpop.permute.xlu1 %1715  ;;  %v1718_v61 = vpop.permute.xlu0 %1717 }
 0x260   : > { %v1737_v40 = vmax.f32 %v1716_v46, -3e+38  ;;  %v1727_v49 = vsel %vm1572_vm4, %v1716_v46, %v1718_v61  ;;  %v1728_v33 = vsel %vm1572_vm4, %v1718_v61, %v5472_v6 }
 0x261   : > { %v1738_v38 = vmax.f32 %v4221_v32, %v1727_v49  ;;  %v1739_v15 = vmax.f32 %v4223_v58, %v1728_v33 }
 0x262   : > { %1749 = vrot.lane.b32.xlu0 %v1737_v40, %s5411_s8 }
 0x263   : > { %v1774_v50 = vpop.permute.xlu1 %1773  ;;  %v1776_v7 = vpop.permute.xlu0 %1775 }
 0x264   : > { %v1795_v48 = vmax.f32 %v1774_v50, -3e+38  ;;  %v1786_v60 = vsel %vm5469_vm0, %v1776_v7, %v5468_v59  ;;  %v1785_v21 = vsel %vm5473_vm2, %v1774_v50, %v1776_v7  ;;  %vm2142_vm0 = vcmask 654336   ;;  %vm5492_vm2 = vmmov %vm5490_vm1 }
 0x265   : > { %v1797_v36 = vmax.f32 %v4223_v58, %v1786_v60  ;;  %v1796_v63 = vmax.f32 %v4221_v32, %v1785_v21 }
 0x266   : > { %1807 = vrot.lane.b32.xlu1 %v1795_v48, %s3431_s13  ;;  %1693 = vrot.lane.b32.xlu0 %v1680_v31, %s3430_s12  ;;  %v5474_v48 = vld [vmem:[#allocation15_spill] sm:$0xff] }
 0x26a   : > { %1751 = vrot.lane.b32.xlu0 %v1738_v38, %s5411_s8  ;;  %v5476_v38 = vld [vmem:[#allocation18_spill] sm:$0xff] }
 0x26e   : > { %1811 = vrot.lane.b32.xlu0 %v1797_v36, %s3431_s13 }
 0x273   : > { %v1507_v20 = vpop.permute.xlu0 %1506  ;;  %v1509_v19 = vpop.permute.xlu1 %1508 }
 0x274   : > { %v1526_v47 = vmax.f32 %v1507_v20, -3e+38  ;;  %v1516_v2 = vsel %vm1512_vm5, %v1509_v19, %v5470_v10  ;;  %v1515_v1 = vsel %vm1512_vm5, %v1507_v20, %v1509_v19 }
 0x275   : > { %v1528_v43 = vmax.f32 %v4308_v51, %v1516_v2  ;;  %v1527_v37 = vmax.f32 %v4306_v52, %v1515_v1 }
 0x276   : > { %1541 = vrot.lane.b32.xlu1 %v1526_v47, %s3430_s12 }
 0x277   : > { %v4564_v9 = vpop.permute.xlu0 %1566  ;;  %v4566_v26 = vpop.permute.xlu1 %1568  ;;  %1545 = vrot.lane.b32.xlu0 %v1528_v43, %s3430_s12 }
 0x278   : > { %v1575_v3 = vsel %vm1572_vm4, %v4564_v9, %v4566_v26 }
 0x279   : > { %v1587_v61 = vmax.f32 %v4306_v52, %v1575_v3 }
 0x27a   : > { %1695 = vrot.lane.b32.xlu1 %v1681_v11, %s3430_s12 }
 0x27b   : > { %v1849_v56 = vpop.permute.xlu0 %1848  ;;  %v1847_v25 = vpop.permute.xlu1 %1846 }
 0x27c   : > { %v4575_v55 = vsel %vm1572_vm4, %v1847_v25, %v1849_v56 }
 0x27e   : > { %1753 = vrot.lane.b32.xlu1 %v1739_v15, %s5411_s8 }
 0x27f   : > { %v1907_v54 = vpop.permute.xlu1 %1906  ;;  %v1845_v18 = vpop.permute.xlu0 %1844 }
 0x280   : > { %v4581_v0 = vsel %vm1572_vm4, %v1845_v18, %v1847_v25  ;;  %v1928_v31 = vmax.f32 %v1907_v54, -3e+38 }
 0x282   : > { %1809 = vrot.lane.b32.xlu1 %v1796_v63, %s3431_s13 }
 0x283   : > { %v4585_v62 = vpop.permute.xlu1 %1964  ;;  %v1909_v8 = vpop.permute.xlu0 %1908 }
 0x284   : > { %v1919_v12 = vsel %vm1512_vm5, %v1909_v8, %v3942_v42  ;;  %v1986_v36 = vmax.f32 %v4585_v62, -3e+38  ;;  %v1918_v33 = vsel %vm1512_vm5, %v1907_v54, %v1909_v8 }
 0x285   : > { %v1930_v23 = vmax.f32 %v4400_v39, %v1919_v12  ;;  %v2119_v6 = vmax.f32 %v4384_v14, %v1919_v12  ;;  %v2118_v18 = vmax.f32 %v1918_v33, -3e+38 }
 0x286   : > { %1543 = vrot.lane.b32.xlu1 %v1527_v37, %s3430_s12 }
 0x287   : > { %v4595_v28 = vpop.permute.xlu1 %2022  ;;  %1944 = vrot.lane.b32.xlu0 %v1930_v23, %s3430_s12  ;;  %v1967_v46 = vpop.permute.xlu0 %1966 }
 0x288   : > { %v1977_v40 = vsel %vm1572_vm4, %v1967_v46, %v3954_v44  ;;  %v2044_v10 = vmax.f32 %v4595_v28, -3e+38 }
 0x289   : > { %v1988_v42 = vmax.f32 %v4400_v39, %v1977_v40 }
 0x28a   : > { %1603 = vrot.lane.b32.xlu1 %v1587_v61, %s5411_s8  ;;  %v1929_v61 = vmax.f32 %v4384_v14, %v1918_v33 }
 0x28b   : > { %v4603_v45 = vpop.permute.xlu1 %1665  ;;  %2002 = vrot.lane.b32.xlu0 %v1988_v42, %s5411_s8  ;;  %v2025_v50 = vpop.permute.xlu0 %2024 }
 0x28c   : > { %v2035_v49 = vsel %vm5475_vm3, %v2025_v50, %v5474_v48  ;;  %v1672_v59 = vsel %vm1512_vm5, %v4603_v45, %v5476_v38  ;;  %v2158_v48 = vmax.f32 %v4384_v14, %v1977_v40  ;;  %vm5493_vm3 = vmmov %vm5490_vm1 }
 0x28d   : > { %v2046_v7 = vmax.f32 %v4400_v39, %v2035_v49  ;;  %v1684_v20 = vmax.f32 %v4433_v13, %v1672_v59 }
 0x28e   : > { %1940 = vrot.lane.b32.xlu1 %v1928_v31, %s3430_s12  ;;  %v1976_v31 = vsel %vm1572_vm4, %v4585_v62, %v1967_v46 }
 0x28f   : > { %v4613_v44 = vpop.permute.xlu1 %1723  ;;  %2060 = vrot.lane.b32.xlu0 %v2046_v7, %s3431_s13  ;;  %v1664_v60 = vpop.permute.xlu0 %1663  ;;  %v1987_v38 = vmax.f32 %v4384_v14, %v1976_v31 }
 0x290   : > { %v1682_v11 = vmax.f32 %v1664_v60, -3e+38 }
 0x292   : > { %1998 = vrot.lane.b32.xlu1 %v1986_v36, %s5411_s8  ;;  %v2157_v36 = vmax.f32 %v1976_v31, -3e+38 }
 0x293   : > { %v4619_v19 = vpop.permute.xlu1 %1781  ;;  %1701 = vrot.lane.b32.xlu0 %v1684_v20, %s3430_s12  ;;  %v1722_v47 = vpop.permute.xlu0 %1721  ;;  %v2034_v20 = vsel %vm5478_vm10, %v4595_v28, %v2025_v50  ;;  %v5479_v50 = vld [vmem:[#allocation20_spill] sm:$0xff]  ;;  %vm5495_vm10 = vmmov %vm5490_vm1 }
 0x294   : > { %v1729_v2 = vsel %vm1572_vm4, %v1722_v47, %v4613_v44  ;;  %v1740_v15 = vmax.f32 %v1722_v47, -3e+38  ;;  %v2045_v40 = vmax.f32 %v4384_v14, %v2034_v20  ;;  %v5485_v20 = vld [vmem:[#allocation26_spill] sm:$0xff] }
 0x295   : > { %v1741_v17 = vmax.f32 %v4440_v41, %v1729_v2 }
 0x296   : > { %2056 = vrot.lane.b32.xlu1 %v2044_v10, %s3431_s13  ;;  %v1671_v10 = vsel %vm1512_vm5, %v1664_v60, %v4603_v45 }
 0x297   : > { %v2095_v29 = vpop.permute.xlu1 %2094  ;;  %1757 = vrot.lane.b32.xlu0 %v1741_v17, %s5411_s8  ;;  %v1780_v43 = vpop.permute.xlu0 %1779  ;;  %v1683_v17 = vmax.f32 %v4440_v41, %v1671_v10 }
 0x298   : > { %v1787_v63 = vsel %vm5477_vm6, %v1780_v43, %v4619_v19  ;;  %v1798_v8 = vmax.f32 %v1780_v43, -3e+38  ;;  %vm5494_vm6 = vmmov %vm5490_vm1 }
 0x299   : > { %v1799_v12 = vmax.f32 %v4440_v41, %v1787_v63 }
 0x29a   : > { %1697 = vrot.lane.b32.xlu1 %v1682_v11, %s3430_s12 }
 0x29b   : > { %v4631_v56 = vpop.permute.xlu1 %2134  ;;  %2132 = vrot.lane.b32.xlu0 %v2119_v6, %s3429_s7  ;;  %v2097_v25 = vpop.permute.xlu0 %2096  ;;  %v5480_v6 = vld [vmem:[#allocation22_spill] sm:$0xff] }
 0x29c   : > { %v4635_v21 = vsel %vm1572_vm4, %v2095_v29, %v2097_v25  ;;  %v1788_v33 = vsel %vm5481_vm12, %v4619_v19, %v5480_v6  ;;  %vm5498_vm12 = vmmov %vm5490_vm1 }
 0x29e   : > { %1755 = vrot.lane.b32.xlu1 %v1740_v15, %s5411_s8 }
 0x29f   : > { %v4640_v1 = vpop.permute.xlu1 %2173  ;;  %2130 = vrot.lane.b32.xlu0 %v2118_v18, %s3429_s7  ;;  %v2093_v54 = vpop.permute.xlu0 %2092  ;;  %v1800_v18 = vmax.f32 %v4433_v13, %v1788_v33 }
 0x2a0   : > { %v4644_v37 = vsel %vm1572_vm4, %v2093_v54, %v2095_v29  ;;  %v1730_v29 = vsel %vm1572_vm4, %v4613_v44, %v5479_v50 }
 0x2a1   : > { %v1742_v45 = vmax.f32 %v4433_v13, %v1730_v29 }
 0x2a2   : > { %1813 = vrot.lane.b32.xlu1 %v1798_v8, %s3431_s13 }
 0x2a3   : > { %v1853_v3 = vpop.permute.xlu1 %1852  ;;  %1815 = vrot.lane.b32.xlu0 %v1799_v12, %s3431_s13  ;;  %v1855_v23 = vpop.permute.xlu0 %1854 }
 0x2a4   : > { %v4651_v42 = vsel %vm1572_vm4, %v1853_v3, %v1855_v23 }
 0x2a6   : > { %1942 = vrot.lane.b32.xlu1 %v1929_v61, %s3430_s12 }
 0x2a7   : > { %v1915_v49 = vpop.permute.xlu1 %1914  ;;  %2171 = vrot.lane.b32.xlu0 %v2158_v48, %s3426_s28  ;;  %v1851_v7 = vpop.permute.xlu0 %1850 }
 0x2a8   : > { %v4660_v59 = vsel %vm1572_vm4, %v1851_v7, %v1853_v3  ;;  %v1921_v54 = vsel %vm1512_vm5, %v1915_v49, %v5464_v22  ;;  %v5482_v22 = vld [vmem:[#allocation16_spill] sm:$0xff] }
 0x2a9   : > { %v1933_v3 = vmax.f32 %v4499_v53, %v1921_v54 }
 0x2aa   : > { %2000 = vrot.lane.b32.xlu1 %v1987_v38, %s5411_s8 }
 0x2ab   : > { %v1973_v62 = vpop.permute.xlu1 %1972  ;;  %2169 = vrot.lane.b32.xlu0 %v2157_v36, %s3426_s28  ;;  %v1913_v46 = vpop.permute.xlu0 %1912 }
 0x2ac   : > { %v1931_v47 = vmax.f32 %v1913_v46, -3e+38  ;;  %v1920_v25 = vsel %vm1512_vm5, %v1913_v46, %v1915_v49  ;;  %v1979_v19 = vsel %vm1572_vm4, %v1973_v62, %v5463_v16 }
 0x2ad   : > { %v1932_v8 = vmax.f32 %v4506_v30, %v1920_v25  ;;  %v1991_v61 = vmax.f32 %v4499_v53, %v1979_v19  ;;  %v2161_v36 = vmax.f32 %v4506_v30, %v1979_v19  ;;  %v2121_v10 = vmax.f32 %v1920_v25, -3e+38 }
 0x2ae   : > { %2058 = vrot.lane.b32.xlu1 %v2045_v40, %s3431_s13  ;;  %v2122_v40 = vmax.f32 %v4506_v30, %v1921_v54 }
 0x2af   : > { %1946 = vrot.lane.b32.xlu0 %v1931_v47, %s3430_s12  ;;  %v1971_v2 = vpop.permute.xlu0 %1970  ;;  %v2031_v43 = vpop.permute.xlu1 %2030 }
 0x2b0   : > { %v1989_v28 = vmax.f32 %v1971_v2, -3e+38  ;;  %v1978_v31 = vsel %vm1572_vm4, %v1971_v2, %v1973_v62  ;;  %v2037_v48 = vsel %vm5483_vm8, %v2031_v43, %v5482_v22  ;;  %v1576_v62 = vsel %vm1572_vm4, %v4566_v26, %v5485_v20  ;;  %v5486_v26 = vld [vmem:[#allocation25_spill] sm:$0xff]  ;;  %vm5499_vm8 = vmmov %vm5490_vm1 }
 0x2b1   : > { %v1990_v16 = vmax.f32 %v4506_v30, %v1978_v31  ;;  %v2049_v49 = vmax.f32 %v4499_v53, %v2037_v48  ;;  %v1588_v47 = vmax.f32 %v4308_v51, %v1576_v62  ;;  %v2160_v50 = vmax.f32 %v1978_v31, -3e+38 }
 0x2b2   : > { %1699 = vrot.lane.b32.xlu1 %v1683_v17, %s3430_s12  ;;  %v1586_v17 = vmax.f32 %v4564_v9, -3e+38  ;;  %v2197_v9 = vld [vmem:[%s5282_s4] sm:$0xff] }
 0x2b3   : > { %2004 = vrot.lane.b32.xlu0 %v1989_v28, %s5411_s8  ;;  %v2029_v11 = vpop.permute.xlu0 %2028  ;;  %v2101_v15 = vpop.permute.xlu1 %2100  ;;  %v1574_v28 = vsel %vm1572_vm4, %v4541_v57, %v5486_v26 }
 0x2b4   : > { %v2047_v60 = vmax.f32 %v2029_v11, -3e+38  ;;  %v2036_v7 = vsel %vm5484_vm9, %v2029_v11, %v2031_v43  ;;  %v1585_v43 = vmax.f32 %v5467_v4, %v1574_v28  ;;  %v1523_v11 = vmax.f32 %v4528_v5, -3e+38  ;;  %v2199_v5 = vld [vmem:[%s5282_s4 + $0x10] sm:$0xff]  ;;  %vm5504_vm9 = vmmov %vm5490_vm1 }
 0x2b5   : > { %v2048_v38 = vmax.f32 %v4506_v30, %v2036_v7 }
 0x2b6   : > { %1759 = vrot.lane.b32.xlu1 %v1742_v45, %s5411_s8 }
 0x2b7   : > { %2062 = vrot.lane.b32.xlu0 %v2047_v60, %s3431_s13  ;;  %v2103_v44 = vpop.permute.xlu0 %2102  ;;  %v1573_v60 = vsel %vm1572_vm4, %v4543_v27, %v4541_v57 }
 0x2b8   : > { %v4686_v63 = vsel %vm1572_vm4, %v2101_v15, %v2103_v44  ;;  %v1584_v6 = vmax.f32 %v5466_v24, %v1573_v60  ;;  %v4749_v44 = vpop.permute.xlu1 %2179 }
 0x2ba   : > { %1817 = vrot.lane.b32.xlu1 %v1800_v18, %s3431_s13 }
 0x2bb   : > { %1948 = vrot.lane.b32.xlu0 %v1932_v8, %s3430_s12  ;;  %v2099_v12 = vpop.permute.xlu0 %2098 }
 0x2bc   : > { %v4697_v23 = vsel %vm1572_vm4, %v2099_v12, %v2101_v15  ;;  %v1583_v15 = vmax.f32 %v4543_v27, -3e+38 }
 0x2be   : > { %1950 = vrot.lane.b32.xlu1 %v1933_v3, %s3430_s12 }
 0x2bf   : > { %2008 = vrot.lane.b32.xlu0 %v1991_v61, %s5411_s8  ;;  %v4715_v46 = vpop.permute.xlu0 %2140 }
 0x2c1   : > { %v4754_v19 = vpop.permute.xlu1 %1537 }
 0x2c2   : > { %2006 = vrot.lane.b32.xlu1 %v1990_v16, %s5411_s8 }
 0x2c3   : > { %2066 = vrot.lane.b32.xlu0 %v2049_v49, %s3431_s13  ;;  %v4723_v2 = vpop.permute.xlu0 %1539 }
 0x2c6   : > { %2064 = vrot.lane.b32.xlu1 %v2048_v38, %s3431_s13  ;;  %s3346_s13 = sshll.u32 %s3432_s25, 4  ;;  %s3347_s13 = int_to_ptr.vmem [resolvable:$false] %s3346_s13 }
 0x2c7   : > { %2177 = vrot.lane.b32.xlu0 %v2161_v36, %s3426_s28  ;;  %s3348_s19 = scalar_lea.vmem %s3347_s13, 2048  ;;  %p3349_p5 = scmp.lt.s32.totalorder %s5229_s17, %s3347_s13 }
 0x2ca   : > { %2138 = vrot.lane.b32.xlu1 %v2122_v40, %s3429_s7 }
 0x2cb   : > { %1605 = vrot.lane.b32.xlu0 %v1588_v47, %s5411_s8 }
 0x2ce   : > { %2136 = vrot.lane.b32.xlu1 %v2121_v10, %s3429_s7  ;;  %s3342_s7 = scalar_lea.vmem %s5229_s17, 1024 }
 0x2cf   : > { %1601 = vrot.lane.b32.xlu0 %v1586_v17, %s5411_s8  ;;  %p3343_p11 = scmp.ne.s32.totalorder %s5229_s17, %s3342_s7  ;;  %p3350_p7 = scmp.lt.s32.totalorder %s3348_s19, %s3342_s7 }
 0x2d0   : > { %v1692_v29 = vpop.permute.xlu0 %1691 }
 0x2d1   : > { %p3344_p13 = pnand %p3343_p11, %p5515_p12  ;;  %p3351_p8 = por %p3350_p7, %p3349_p5 }
 0x2d2   : > { %2175 = vrot.lane.b32.xlu1 %v2160_v50, %s3426_s28 }
 0x2d3   : > { %1599 = vrot.lane.b32.xlu0 %v1585_v43, %s5411_s8  ;;  %p3345_p4 = pneg %p3344_p13 }
 0x2d4   : > { %v1750_v45 = vpop.permute.xlu0 %1749 }
 0x2d5   : > { %p3352_p10 = pnand %p3351_p8, %p3345_p4 }
 0x2d6   : > { %1535 = vrot.lane.b32.xlu1 %v1523_v11, %s3430_s12 }
 0x2d7   : > { %2203 = vperm.xlu0 %3264, %v2197_v9  }
 0x2d8   : > { %v1694_v33 = vpop.permute.xlu0 %1693  ;;  %v1808_v12 = vpop.permute.xlu1 %1807 }
 0x2d9   : > { %v1703_v25 = vsel %vm1547_vm14, %v1692_v29, %v1694_v33 }
 0x2da   : > { %1597 = vrot.lane.b32.xlu1 %v1584_v6, %s5411_s8  ;;  %v1711_v57 = vmax.f32 %v4221_v32, %v1703_v25 }
 0x2db   : > { %2213 = vperm.xlu0 %3264, %v2199_v5  }
 0x2dc   : > { %v1752_v18 = vpop.permute.xlu0 %1751 }
 0x2dd   : > { %v1761_v54 = vsel %vm5487_vm13, %v1750_v45, %v1752_v18 }
 0x2de   : > { %v1769_v8 = vmax.f32 %v1711_v57, %v1761_v54  ;;  %1595 = vrot.lane.b32.xlu1 %v1583_v15, %s5411_s8  ;;  %s3092_s8 = scalar_lea.sflag [#allocation6], %s3566_s29 }
 0x2e0   : > { %v1812_v48 = vpop.permute.xlu0 %1811 }
 0x2e8   : > { %v1542_v3 = vpop.permute.xlu1 %1541 }
 0x2e9   : > { %v1546_v7 = vpop.permute.xlu0 %1545 }
 0x2ec   : > { %v1696_v61 = vpop.permute.xlu1 %1695 }
 0x2ed   : > { %v1704_v31 = vsel %vm1547_vm14, %v1694_v33, %v1696_v61 }
 0x2ee   : > { %v1712_v22 = vmax.f32 %v4223_v58, %v1704_v31 }
 0x2f0   : > { %v1754_v27 = vpop.permute.xlu1 %1753 }
 0x2f1   : > { %v1762_v16 = vsel %vm5488_vm11, %v1752_v18, %v1754_v27 }
 0x2f2   : > { %v1770_v32 = vmax.f32 %v1712_v22, %v1762_v16 }
 0x2f4   : > { %v1810_v49 = vpop.permute.xlu1 %1809 }
 0x2f5   : > { %v1820_v38 = vsel %vm1819_vm15, %v1808_v12, %v1810_v49  ;;  %v1821_v36 = vsel %vm1819_vm15, %v1810_v49, %v1812_v48  ;;  %v2200_v12 = vld [vmem:[%s5282_s4 + $0x18] sm:$0xff] }
 0x2f6   : > { %v1828_v20 = vmax.f32 %v1769_v8, %v1820_v38  ;;  %v1829_v62 = vmax.f32 %v1770_v32, %v1821_v36  ;;  %v2198_v8 = vld [vmem:[%s5282_s4 + $0x8] sm:$0xff] }
 0x2f7   : > { %2208 = vperm.xlu1 %3265, %v2198_v8  }
 0x2f8   : > { %v4762_v40 = vmax.f32 %v1828_v20, %v4581_v0  ;;  %v4765_v47 = vmax.f32 %v1829_v62, %v4575_v55  ;;  %v1544_v58 = vpop.permute.xlu1 %1543 }
 0x2f9   : > { %v4768_v10 = vsel %vm1547_vm14, %v1542_v3, %v1544_v58  ;;  %v4771_v17 = vsel %vm1547_vm14, %v1544_v58, %v1546_v7  ;;  %v1945_v26 = vpop.permute.xlu0 %1944 }
 0x2fa   : > { %5489 = vst [vmem:[#allocation12_spill] sm:$0xff] %v4762_v40 }
 0x2fb   : > { %2218 = vperm.xlu1 %3265, %v2200_v12  }
 0x2fc   : > { %v4773_v28 = vpop.permute.xlu1 %1603 }
 0x2fd   : > { %v2003_v50 = vpop.permute.xlu0 %2002 }
 0x300   : > { %v1941_v29 = vpop.permute.xlu1 %1940 }
 0x301   : > { %v2061_v43 = vpop.permute.xlu0 %2060 }
 0x304   : > { %v1999_v11 = vpop.permute.xlu1 %1998 }
 0x305   : > { %v1702_v45 = vpop.permute.xlu0 %1701 }
 0x308   : > { %v2057_v0 = vpop.permute.xlu1 %2056 }
 0x309   : > { %v1758_v9 = vpop.permute.xlu0 %1757 }
 0x30c   : > { %v1698_v60 = vpop.permute.xlu1 %1697 }
 0x30d   : > { %v2133_v55 = vpop.permute.xlu0 %2132 }
 0x310   : > { %v1756_v6 = vpop.permute.xlu1 %1755 }
 0x311   : > { %v2131_v33 = vpop.permute.xlu0 %2130 }
 0x314   : > { %v1814_v5 = vpop.permute.xlu1 %1813 }
 0x315   : > { %v1816_v25 = vpop.permute.xlu0 %1815 }
 0x318   : > { %v1943_v15 = vpop.permute.xlu1 %1942 }
 0x319   : > { %v4775_v57 = vpop.permute.xlu0 %2171  ;;  %v1953_v16 = vsel %vm1547_vm14, %v1943_v15, %v1945_v26  ;;  %v1952_v32 = vsel %vm1547_vm14, %v1941_v29, %v1943_v15 }
 0x31a   : > { %v1961_v38 = vmax.f32 %v4400_v39, %v1953_v16  ;;  %v1960_v62 = vmax.f32 %v4384_v14, %v1952_v32 }
 0x31c   : > { %v2001_v18 = vpop.permute.xlu1 %2000 }
 0x31d   : > { %v4777_v54 = vpop.permute.xlu0 %2169  ;;  %v2011_v49 = vsel %vm5490_vm1, %v2001_v18, %v2003_v50  ;;  %v2010_v36 = vsel %vm5491_vm7, %v1999_v11, %v2001_v18 }
 0x31e   : > { %v2019_v8 = vmax.f32 %v1961_v38, %v2011_v49  ;;  %v2018_v24 = vmax.f32 %v1960_v62, %v2010_v36 }
 0x320   : > { %v2059_v3 = vpop.permute.xlu1 %2058 }
 0x321   : > { %v1947_v61 = vpop.permute.xlu0 %1946  ;;  %v2069_v58 = vsel %vm1819_vm15, %v2059_v3, %v2061_v43  ;;  %v2068_v12 = vsel %vm1819_vm15, %v2057_v0, %v2059_v3  ;;  %v1763_v3 = vsel %vm5493_vm3, %v1756_v6, %v1758_v9 }
 0x322   : > { %v2077_v29 = vmax.f32 %v2019_v8, %v2069_v58  ;;  %v2076_v50 = vmax.f32 %v2018_v24, %v2068_v12  ;;  %v5497_v58 = vld [vmem:[#allocation10_spill] sm:$0xff]  ;;  %v2181_v12 = vsel %vm1512_vm5, %v4777_v54, %v4775_v57 }
 0x323   : > { %v4825_v8 = vand.u32 4294901760, %v5497_v58 }
 0x324   : > { %v1700_v31 = vpop.permute.xlu1 %1699  ;;  %v2113_v14 = vmax.f32 %v2077_v29, %v4635_v21  ;;  %v2143_v21 = vsel %vm2142_vm0, %v2131_v33, %v2133_v55 }
 0x325   : > { %v2005_v22 = vpop.permute.xlu0 %2004  ;;  %v1705_v26 = vsel %vm1547_vm14, %v1698_v60, %v1700_v31  ;;  %v1706_v11 = vsel %vm1547_vm14, %v1700_v31, %v1702_v45  ;;  %v2112_v60 = vmax.f32 %v2076_v50, %v4644_v37  ;;  %v2144_v31 = vsel %vm2142_vm0, %v2133_v55, %v4631_v56  ;;  %v2193_v56 = vld [vmem:[%s5281_s3] sm:$0xff] }
 0x326   : > { %v1713_v40 = vmax.f32 %v4440_v41, %v1705_v26  ;;  %v1714_v41 = vmax.f32 %v4433_v13, %v1706_v11  ;;  %v2152_v38 = vmax.f32 %v2113_v14, %v2144_v31  ;;  %v1822_v13 = vsel %vm1819_vm15, %v1814_v5, %v1816_v25 }
 0x327   : > { %v4834_v11 = vand.u32 4294901760, %v3906_v34 }
 0x328   : > { %v1760_v27 = vpop.permute.xlu1 %1759 }
 0x329   : > { %v2063_v48 = vpop.permute.xlu0 %2062  ;;  %v1764_v16 = vsel %vm5494_vm6, %v1758_v9, %v1760_v27 }
 0x32a   : > { %v1772_v37 = vmax.f32 %v1714_v41, %v1764_v16 }
 0x32c   : > { %v1818_v7 = vpop.permute.xlu1 %1817 }
 0x32d   : > { %v1949_v20 = vpop.permute.xlu0 %1948  ;;  %v1823_v32 = vsel %vm1819_vm15, %v1816_v25, %v1818_v7 }
 0x32e   : > { %v1954_v45 = vsel %vm1547_vm14, %v1947_v61, %v1949_v20  ;;  %v1831_v33 = vmax.f32 %v1772_v37, %v1823_v32 }
 0x32f   : > { %v1962_v61 = vmax.f32 %v4506_v30, %v1954_v45 }
 0x330   : > { %v1951_v4 = vpop.permute.xlu1 %1950 }
 0x331   : > { %v2009_v15 = vpop.permute.xlu0 %2008  ;;  %v1955_v39 = vsel %vm1547_vm14, %v1949_v20, %v1951_v4  ;;  %v1771_v4 = vmax.f32 %v1713_v40, %v1763_v3  ;;  %v2151_v40 = vmax.f32 %v2112_v60, %v2143_v21  ;;  %v5496_v20 = vld [vmem:[#allocation11_spill] sm:$0xff] }
 0x332   : > { %v1963_v24 = vmax.f32 %v4499_v53, %v1955_v39  ;;  %v4818_v62 = vand.u32 4294901760, %v5496_v20 }
 0x333   : > { %v1830_v55 = vmax.f32 %v1771_v4, %v1822_v13  ;;  %v2189_v50 = vmax.f32 %v2151_v40, %v2181_v12 }
 0x334   : > { %v2007_v18 = vpop.permute.xlu1 %2006  ;;  %v4842_v54 = vsub.f32 %v5496_v20, %v4818_v62 }
 0x335   : > { %v2013_v43 = vsel %vm5492_vm2, %v2007_v18, %v2009_v15  ;;  %v2067_v0 = vpop.permute.xlu0 %2066  ;;  %v2012_v9 = vsel %vm5495_vm10, %v2005_v22, %v2007_v18  ;;  %v2182_v22 = vsel %vm1512_vm5, %v4775_v57, %v4640_v1  ;;  %v2222_v15 = vsel %vm1572_vm4, %v2193_v56, 0 }
 0x336   : > { %v2021_v49 = vmax.f32 %v1963_v24, %v2013_v43  ;;  %v2020_v5 = vmax.f32 %v1962_v61, %v2012_v9  ;;  %v2190_v26 = vmax.f32 %v2152_v38, %v2182_v22  ;;  %v1867_v18 = vmax.f32 %v1831_v33, %v4651_v42  ;;  %v5500_v9 = vld [vmem:[#allocation12_spill] sm:$0xff] }
 0x337   : > { %v4849_v3 = vand.u32 4294901760, %v2222_v15  ;;  %v1558_v42 = vmax.f32 %v4306_v52, %v4768_v10  ;;  %v4863_v45 = vand.u32 4294901760, %v2189_v50 }
 0x338   : > { %v2065_v6 = vpop.permute.xlu1 %2064  ;;  %v4856_v16 = vand.u32 4294901760, %v2190_v26  ;;  %v4865_v31 = vand.u32 4294901760, %v1867_v18 }
 0x339   : > { %v2071_v53 = vsel %vm1819_vm15, %v2065_v6, %v2067_v0  ;;  %v2178_v27 = vpop.permute.xlu0 %2177  ;;  %v2070_v7 = vsel %vm1819_vm15, %v2063_v48, %v2065_v6  ;;  %v4847_v0 = vand.u32 4294901760, %v3908_v35  ;;  %v4887_v6 = vand.u32 4294901760, %v4765_v47 }
 0x33a   : > { %v2079_v36 = vmax.f32 %v2021_v49, %v2071_v53  ;;  %v2078_v1 = vmax.f32 %v2020_v5, %v2070_v7  ;;  %v2184_v57 = vsel %vm1512_vm5, %v2178_v27, %v4749_v44  ;;  %v2194_v49 = vld [vmem:[%s5281_s3 + $0x8] sm:$0xff]  ;;  %v4891_v37 = vsub.f32 %v2190_v26, %v4856_v16  ;;  %v5501_v5 = vld [vmem:[#allocation28_spill] sm:$0xff] }
 0x33b   : > { %v4894_v53 = vand.u32 4294901760, %v5500_v9  ;;  %v4898_v61 = vsub.f32 %v2189_v50, %v4863_v45  ;;  %v4925_v26 = vsub.f32 %v3908_v35, %v4847_v0 }
 0x33c   : > { %v2139_v25 = vpop.permute.xlu1 %2138  ;;  %v2115_v30 = vmax.f32 %v2079_v36, %v4686_v63  ;;  %v1866_v63 = vmax.f32 %v1830_v55, %v4660_v59  ;;  %v1559_v59 = vmax.f32 %v4308_v51, %v4771_v17  ;;  %v2114_v41 = vmax.f32 %v2078_v1, %v4697_v23 }
 0x33d   : > { %v2146_v48 = vsel %vm2142_vm0, %v2139_v25, %v4715_v46  ;;  %v1606_v29 = vpop.permute.xlu0 %1605  ;;  %v4871_v51 = vsub.f32 %v3906_v34, %v4834_v11  ;;  %v1549_v34 = vsel %vm1547_vm14, %v4754_v19, %v4723_v2  ;;  %v4901_v36 = vsub.f32 %v1867_v18, %v4865_v31 }
 0x33e   : > { %v2154_v39 = vmax.f32 %v2115_v30, %v2146_v48  ;;  %v1610_v14 = vsel %vm5498_vm12, %v4773_v28, %v1606_v29  ;;  %v4867_v10 = vand.u32 4294901760, %v1866_v63  ;;  %v4920_v30 = vsub.f32 %v4765_v47, %v4887_v6  ;;  %v2195_v48 = vld [vmem:[%s5281_s3 + $0x10] sm:$0xff] }
 0x33f   : > { %v1618_v52 = vmax.f32 %v1559_v59, %v1610_v14  ;;  %v2388_v12 = vand.u32 4294901760, %v4891_v37  ;;  %v4932_v29 = vsub.f32 %v5500_v9, %v4894_v53  ;;  %v2394_v50 = vand.u32 4294901760, %v4898_v61  ;;  %v5503_v9 = vld [vmem:[#allocation27_spill] sm:$0xff] }
 0x340   : > { %v2192_v46 = vmax.f32 %v2154_v39, %v2184_v57  ;;  %v2137_v43 = vpop.permute.xlu1 %2136  ;;  %v4906_v56 = vsub.f32 %v1866_v63, %v4867_v10  ;;  %v2400_v35 = vand.u32 4294901760, %v4901_v36 }
 0x341   : > { %v2145_v44 = vsel %vm2142_vm0, %v2137_v43, %v2139_v25  ;;  %v1602_v60 = vpop.permute.xlu0 %1601  ;;  %v4903_v2 = vand.u32 4294901760, %v1618_v52  ;;  %v1557_v25 = vmax.f32 %v5501_v5, %v1549_v34 }
 0x342   : > { %v4858_v24 = vand.u32 4294901760, %v2192_v46  ;;  %v1609_v4 = vsel %vm5499_vm8, %v1602_v60, %v4773_v28  ;;  %v2153_v21 = vmax.f32 %v2114_v41, %v2145_v44  ;;  %v4878_v28 = vsub.f32 %v2222_v15, %v4849_v3 }
 0x343   : > { %v1617_v32 = vmax.f32 %v1558_v42, %v1609_v4  ;;  %v4940_v1 = vsub.f32 %v1618_v52, %v4903_v2  ;;  %v2406_v39 = vand.u32 4294901760, %v4906_v56  ;;  %v2228_v42 = vsel %vm1572_vm4, %v2195_v48, 0 }
 0x344   : > { %v4874_v17 = vsub.f32 %v2192_v46, %v4858_v24  ;;  %v2176_v23 = vpop.permute.xlu1 %2175  ;;  %2250 = vmatprep.subr.mxu0 %v4858_v24  ;;  %v5334_v22 = vand.u32 4294901760, %v4878_v28  ;;  %v2389_v60 = vsub.f32 %v4891_v37, %v2388_v12  ;;  %v2412_v41 = vand.u32 4294901760, %v4920_v30 }
 0x345   : > { %v2183_v38 = vsel %vm1512_vm5, %v2176_v23, %v2178_v27  ;;  %v2225_v27 = vsel %vm1572_vm4, %v2194_v49, 0  ;;  %v4909_v55 = vand.u32 4294901760, %v1617_v32  ;;  %v1600_v46 = vpop.permute.xlu0 %1599  ;;  %vm5502_vm5 = vmmov %vm5490_vm1  ;;  %v2407_v23 = vsub.f32 %v4906_v56, %v2406_v39 }
 0x346   : > { %v2191_v13 = vmax.f32 %v2153_v21, %v2183_v38  ;;  %v2376_v40 = vand.u32 4294901760, %v4874_v17  ;;  %v4945_v63 = vand.u32 4294901760, %v2225_v27  ;;  %v4955_v43 = vsub.f32 %v4878_v28, %v5334_v22 }
 0x347   : > { %v4948_v18 = vsub.f32 %v1617_v32, %v4909_v55  ;;  %v2418_v21 = vand.u32 4294901760, %v4932_v29  ;;  %v2401_v32 = vsub.f32 %v4901_v36, %v2400_v35  ;;  %v5332_v49 = vand.u32 4294901760, %v4940_v1 }
 0x348   : > { %v4911_v33 = vand.u32 4294901760, %v2191_v13  ;;  %v1536_v7 = vpop.permute.xlu1 %1535  ;;  %v2377_v20 = vsub.f32 %v4874_v17, %v2376_v40  ;;  %v4983_v34 = vsub.f32 %v2225_v27, %v4945_v63  ;;  %v2390_v27 = vand.u32 4294901760, %v2389_v60 }
 0x349   : > { %v1548_v59 = vsel %vm1547_vm14, %v1536_v7, %v4754_v19  ;;  %v2395_v19 = vsub.f32 %v4898_v61, %v2394_v50  ;;  %v5333_v38 = vand.u32 4294901760, %v4948_v18  ;;  %v2402_v60 = vand.u32 4294901760, %v2401_v32 }
 0x34a   : > { %v4935_v15 = vsub.f32 %v2191_v13, %v4911_v33  ;;  %2252 = vmatpush1.msra.mxu0 %v4911_v33  ;;  %v2378_v47 = vand.u32 4294901760, %v2377_v20  ;;  %v1556_v13 = vmax.f32 %v5503_v9, %v1548_v59  ;;  %v2425_v9 = vsub.f32 %v4940_v1, %v5332_v49 }
 0x34b   : > { %2254 = vmatprep.subr.mxu0 %v4856_v16  ;;  %v5022_v49 = vsub.f32 %v5497_v58, %v4825_v8 }
 0x34c   : > { %v2382_v57 = vand.u32 4294901760, %v4935_v15  ;;  %v1598_v14 = vpop.permute.xlu1 %1597  ;;  %2256 = vmatpush1.msra.mxu0 %v4863_v45  ;;  %2379 = vmatprep.subr.mxu1 %v2378_v47  ;;  %v2413_v47 = vsub.f32 %v4920_v30, %v2412_v41  ;;  %v2426_v58 = vand.u32 4294901760, %v2425_v9 }
 0x34d   : > { %v1608_v44 = vsel %vm5502_vm5, %v1598_v14, %v1600_v46  ;;  %2258 = vmatprep.subr.mxu0 %v4865_v31  ;;  %v4998_v46 = vand.u32 4294901760, %v2228_v42  ;;  %v5338_v9 = vand.u32 4294901760, %v5022_v49 }
 0x34e   : > { %v1616_v4 = vmax.f32 %v1557_v25, %v1608_v44  ;;  %2260 = vmatpush1.msra.mxu0 %v4867_v10  ;;  %v2383_v52 = vsub.f32 %v4935_v15, %v2382_v57  ;;  %v2196_v25 = vld [vmem:[%s5281_s3 + $0x18] sm:$0xff]  ;;  %v2414_v32 = vand.u32 4294901760, %v2413_v47 }
 0x34f   : > { %2262 = vmatprep.subr.mxu0 %v4887_v6 }
 0x350   : > { %v4987_v7 = vand.u32 4294901760, %v1616_v4  ;;  %v1596_v20 = vpop.permute.xlu1 %1595  ;;  %2264 = vmatpush1.msra.mxu0 %v4894_v53  ;;  %v2384_v5 = vand.u32 4294901760, %v2383_v52  ;;  %v2396_v52 = vand.u32 4294901760, %v2395_v19  ;;  %v2408_v19 = vand.u32 4294901760, %v2407_v23 }
 0x351   : > { %v1607_v48 = vsel %vm5504_vm9, %v1596_v20, %v1598_v14  ;;  %2266 = vmatprep.subr.mxu0 %v4903_v2  ;;  %v2419_v14 = vsub.f32 %v4932_v29, %v2418_v21 }
 0x352   : > { %v5001_v59 = vsub.f32 %v1616_v4, %v4987_v7  ;;  %v1615_v44 = vmax.f32 %v1556_v13, %v1607_v48  ;;  %2268 = vmatpush1.msra.mxu0 %v4909_v55  ;;  %2385 = vmatpush1.msra.mxu1 %v2384_v5  ;;  %v5337_v4 = vand.u32 4294901760, %v4983_v34  ;;  %v2231_v13 = vsel %vm1572_vm4, %v2196_v25, 0 }
 0x353   : > { %2270 = vmatprep.subr.mxu0 %v4987_v7  ;;  %2391 = vmatprep.subr.mxu1 %v2390_v27  ;;  %v2431_v5 = vsub.f32 %v4948_v18, %v5333_v38  ;;  %v5336_v27 = vand.u32 4294901760, %v4925_v26  ;;  %v5025_v25 = vsub.f32 %v2228_v42, %v4998_v46  ;;  %v2420_v23 = vand.u32 4294901760, %v2419_v14 }
 0x354   : > { %v5013_v20 = vand.u32 4294901760, %v1615_v44  ;;  %2397 = vmatpush1.msra.mxu1 %v2396_v52  ;;  %v5335_v48 = vand.u32 4294901760, %v5001_v59  ;;  %v2318_v42 = vand.u32 4294901760, %v4955_v43  ;;  %v2454_v38 = vand.u32 4294901760, %v4871_v51 }
 0x355   : > { %2403 = vmatprep.subr.mxu1 %v2402_v60  ;;  %v5034_v60 = vand.u32 4294901760, %v2231_v13  ;;  %v2432_v14 = vand.u32 4294901760, %v2431_v5  ;;  %v2449_v43 = vsub.f32 %v4925_v26, %v5336_v27 }
 0x356   : > { %v5028_v52 = vsub.f32 %v1615_v44, %v5013_v20  ;;  %2272 = vmatpush1.msra.mxu0 %v5013_v20  ;;  %2409 = vmatpush1.msra.mxu1 %v2408_v19  ;;  %v2437_v47 = vsub.f32 %v5001_v59, %v5335_v48  ;;  %v5339_v44 = vand.u32 4294901760, %v4842_v54  ;;  %v2328_v48 = vsub.f32 %v4983_v34, %v5337_v4 }
 0x357   : > { %2274 = vmatprep.subr.mxu0 %v4847_v0  ;;  %2415 = vmatprep.subr.mxu1 %v2414_v32  ;;  %v2338_v32 = vand.u32 4294901760, %v5025_v25 }
 0x358   : > { %v2442_v22 = vand.u32 4294901760, %v5028_v52  ;;  %2276 = vmatpush1.msra.mxu0 %v4834_v11  ;;  %2421 = vmatpush1.msra.mxu1 %v2420_v23  ;;  %v2438_v19 = vand.u32 4294901760, %v2437_v47  ;;  %v5056_v23 = vsub.f32 %v2231_v13, %v5034_v60  ;;  %v2455_v47 = vsub.f32 %v4871_v51, %v2454_v38 }
 0x359   : > { %2278 = vmatprep.subr.mxu0 %v4818_v62  ;;  %2427 = vmatprep.subr.mxu1 %v2426_v58  ;;  %v5505_v58 = vmov 0.0   ;;  %v2329_v4 = vand.u32 4294901760, %v2328_v48  ;;  %v2450_v13 = vand.u32 4294901760, %v2449_v43 }
 0x35a   : > { %2280 = vmatpush1.msra.mxu0 %v4825_v8  ;;  %2433 = vmatpush1.msra.mxu1 %v2432_v14  ;;  %v2443_v5 = vsub.f32 %v5028_v52, %v2442_v22  ;;  %v2461_v14 = vsub.f32 %v4842_v54, %v5339_v44  ;;  %v2349_v48 = vand.u32 4294901760, %v5056_v23 }
 0x35b   : > { %2319 = vmatmul.mubr.f32.vlgmr.msra.gmra.mxu0 %v2318_v42  ;;  %2439 = vmatprep.subr.mxu1 %v2438_v19  ;;  %v2467_v42 = vsub.f32 %v5022_v49, %v5338_v9  ;;  %v2339_v19 = vsub.f32 %v5025_v25, %v2338_v32 }
 0x35c   : > { %2549 = vmatprep.subr.mxu0 %v4874_v17  ;;  %2324 = vmatprep.mubr.f32.mxu0 %v5505_v58  ;;  %v2444_v27 = vand.u32 4294901760, %v2443_v5  ;;  %v2456_v5 = vand.u32 4294901760, %v2455_v47  ;;  %v2462_v43 = vand.u32 4294901760, %v2461_v14  ;;  %v5506_v17 = vand.u32 4294901760, %v4878_v28 }
 0x35d   : > { %2552 = vmatpush1.msra.mxu0 %v4935_v15  ;;  %v2468_v9 = vand.u32 4294901760, %v2467_v42  ;;  %v2340_v44 = vand.u32 4294901760, %v2339_v19 }
 0x35e   : > { %2555 = vmatprep.subr.mxu0 %v4891_v37  ;;  %2445 = vmatpush1.msra.mxu1 %v2444_v27  ;;  %v2350_v27 = vsub.f32 %v5056_v23, %v2349_v48  ;;  %v5507_v37 = vand.u32 4294901760, %v4940_v1 }
 0x35f   : > { %2558 = vmatpush1.msra.mxu0 %v4898_v61  ;;  %2451 = vmatprep.subr.mxu1 %v2450_v13  ;;  %v5509_v61 = vand.u32 4294901760, %v5001_v59 }
 0x360   : > { %2330 = vmatmul.mubr.f32.gmra.mxu0 %v2329_v4  ;;  %2561 = vmatprep.subr.mxu0 %v4901_v36  ;;  %v2351_v4 = vand.u32 4294901760, %v2350_v27 }
 0x361   : > { %2457 = vmatpush1.msra.mxu1 %v2456_v5  ;;  %2564 = vmatpush1.msra.mxu0 %v4906_v56 }
 0x362   : > { %2463 = vmatprep.subr.mxu1 %v2462_v43  ;;  %2567 = vmatprep.subr.mxu0 %v4920_v30 }
 0x363   : > { %2335 = vmatprep.mubr.f32.mxu0 %v5505_v58  ;;  %2469 = vmatpush1.msra.mxu1 %v2468_v9 }
 0x364   : > { %2570 = vmatpush1.msra.mxu0 %v4932_v29  ;;  %2504 = vmatmul.mubr.f32.vlgmr.msra.gmra.mxu1 %v4849_v3 }
 0x365   : > { %2341 = vmatmul.mubr.f32.gmra.mxu0 %v2340_v44  ;;  %2573 = vmatprep.subr.mxu0 %v4940_v1 }
 0x366   : > { %2677 = vmatprep.subr.mxu1 %v4858_v24  ;;  %2576 = vmatpush1.msra.mxu0 %v4948_v18 }
 0x367   : > { %2679 = vmatpush1.msra.mxu1 %v4911_v33  ;;  %2579 = vmatprep.subr.mxu0 %v5001_v59 }
 0x368   : > { %2681 = vmatprep.subr.mxu1 %v4856_v16  ;;  %2346 = vmatprep.mubr.f32.mxu0 %v5505_v58 }
 0x369   : > { %2509 = vmatprep.mubr.f32.mxu1 %v5505_v58  ;;  %2582 = vmatpush1.msra.mxu0 %v5028_v52 }
 0x36a   : > { %2683 = vmatpush1.msra.mxu1 %v4863_v45  ;;  %2352 = vmatmul.mubr.f32.gmra.mxu0 %v2351_v4 }
 0x36b   : > { %2511 = vmatmul.mubr.f32.gmra.mxu1 %v4945_v63  ;;  %2585 = vmatprep.subr.mxu0 %v4925_v26 }
 0x36c   : > { %2685 = vmatprep.subr.mxu1 %v4865_v31  ;;  %2588 = vmatpush1.msra.mxu0 %v4871_v51 }
 0x36d   : > { %2687 = vmatpush1.msra.mxu1 %v4867_v10  ;;  %2591 = vmatprep.subr.mxu0 %v4842_v54 }
 0x36e   : > { %2689 = vmatprep.subr.mxu1 %v4887_v6  ;;  %2516 = vmatprep.mubr.f32.mxu1 %v5505_v58 }
 0x36f   : > { %2594 = vmatpush1.msra.mxu0 %v5022_v49  ;;  %2627 = vmatprep.mubr.f32.mxu0 %v5505_v58 }
 0x370   : > { %2691 = vmatpush1.msra.mxu1 %v4894_v53  ;;  %2630 = vmatmul.mubr.f32.vlgmr.msra.gmra.mxu0 %v4878_v28  ;;  %v5511_v28 = vand.u32 4294901760, %v4925_v26 }
 0x371   : > { %2518 = vmatmul.mubr.f32.gmra.mxu1 %v4998_v46  ;;  %2693 = vmatprep.subr.mxu1 %v4903_v2 }
 0x372   : > { %2796 = vmatprep.subr.mxu0 %v2376_v40  ;;  %2695 = vmatpush1.msra.mxu1 %v4909_v55  ;;  %v5508_v40 = vand.u32 4294901760, %v4948_v18 }
 0x373   : > { %2800 = vmatpush1.msra.mxu0 %v2382_v57  ;;  %2697 = vmatprep.subr.mxu1 %v4987_v7  ;;  %v2204_v57 = vpop.permute.xlu0 %2203 }
 0x374   : > { %2804 = vmatprep.subr.mxu0 %v2388_v12  ;;  %2523 = vmatprep.mubr.f32.mxu1 %v5505_v58 }
 0x375   : > { %2635 = vmatprep.mubr.f32.mxu0 %v5505_v58  ;;  %2699 = vmatpush1.msra.mxu1 %v5013_v20 }
 0x376   : > { %2808 = vmatpush1.msra.mxu0 %v2394_v50  ;;  %2525 = vmatmul.mubr.f32.gmra.mxu1 %v5034_v60 }
 0x377   : > { %2638 = vmatmul.mubr.f32.gmra.mxu0 %v4983_v34  ;;  %2701 = vmatprep.subr.mxu1 %v4847_v0  ;;  %v2214_v44 = vpop.permute.xlu0 %2213 }
 0x378   : > { %2812 = vmatprep.subr.mxu0 %v2400_v35  ;;  %2703 = vmatpush1.msra.mxu1 %v4834_v11 }
 0x379   : > { %2816 = vmatpush1.msra.mxu0 %v2406_v39  ;;  %2705 = vmatprep.subr.mxu1 %v4818_v62 }
 0x37a   : > { %2820 = vmatprep.subr.mxu0 %v2412_v41  ;;  %2643 = vmatprep.mubr.f32.mxu0 %v5505_v58  ;;  %v2209_v41 = vpop.permute.xlu1 %2208 }
 0x37b   : > { %2707 = vmatpush1.msra.mxu1 %v4825_v8  ;;  %2740 = vmatprep.mubr.f32.mxu1 %v5505_v58 }
 0x37c   : > { %2824 = vmatpush1.msra.mxu0 %v2418_v21  ;;  %2744 = vmatmul.mubr.f32.vlgmr.msra.gmra.mxu1 %v5506_v17 }
 0x37d   : > { %2646 = vmatmul.mubr.f32.gmra.mxu0 %v5025_v25  ;;  %2828 = vmatprep.subr.mxu0 %v5507_v37 }
 0x37e   : > { %2935 = vmatprep.subr.mxu1 %v4858_v24  ;;  %2832 = vmatpush1.msra.mxu0 %v5508_v40  ;;  %v5510_v24 = vand.u32 4294901760, %v4983_v34 }
 0x37f   : > { %2937 = vmatpush1.msra.mxu1 %v4911_v33  ;;  %2836 = vmatprep.subr.mxu0 %v5509_v61 }
 0x380   : > { %2939 = vmatprep.subr.mxu1 %v4856_v16  ;;  %2651 = vmatprep.mubr.f32.mxu0 %v5505_v58  ;;  %v5512_v16 = vand.u32 4294901760, %v4842_v54 }
 0x381   : > { %2749 = vmatprep.mubr.f32.mxu1 %v5505_v58  ;;  %2840 = vmatpush1.msra.mxu0 %v2442_v22 }
 0x382   : > { %2941 = vmatpush1.msra.mxu1 %v4863_v45  ;;  %2654 = vmatmul.mubr.f32.gmra.mxu0 %v5056_v23  ;;  %v5513_v45 = vand.u32 4294901760, %v5022_v49 }
 0x383   : > { %2753 = vmatmul.mubr.f32.gmra.mxu1 %v5510_v24  ;;  %2844 = vmatprep.subr.mxu0 %v5511_v28 }
 0x384   : > { %2943 = vmatprep.subr.mxu1 %v4865_v31  ;;  %2848 = vmatpush1.msra.mxu0 %v2454_v38 }
 0x385   : > { %2945 = vmatpush1.msra.mxu1 %v4867_v10  ;;  %2852 = vmatprep.subr.mxu0 %v5512_v16 }
 0x386   : > { %2947 = vmatprep.subr.mxu1 %v4887_v6  ;;  %2758 = vmatprep.mubr.f32.mxu1 %v5505_v58 }
 0x387   : > { %2856 = vmatpush1.msra.mxu0 %v5513_v45  ;;  %2889 = vmatprep.mubr.f32.mxu0 %v5505_v58 }
 0x388   : > { %2949 = vmatpush1.msra.mxu1 %v4894_v53  ;;  %2891 = vmatmul.mubr.f32.vlgmr.msra.gmra.mxu0 %v4849_v3 }
 0x389   : > { %2762 = vmatmul.mubr.f32.gmra.mxu1 %v2338_v32  ;;  %2951 = vmatprep.subr.mxu1 %v4903_v2 }
 0x38a   : > { %2953 = vmatpush1.msra.mxu1 %v4909_v55  ;;  %2767 = vmatprep.mubr.f32.mxu1 %v5505_v58 }
 0x38b   : > { %2955 = vmatprep.subr.mxu1 %v4987_v7  ;;  %2896 = vmatprep.mubr.f32.mxu0 %v5505_v58 }
 0x38c   : > { %2957 = vmatpush1.msra.mxu1 %v5013_v20  ;;  %2898 = vmatmul.mubr.f32.gmra.mxu0 %v4945_v63 }
 0x38d   : > { %2771 = vmatmul.mubr.f32.gmra.mxu1 %v2349_v48  ;;  %2959 = vmatprep.subr.mxu1 %v4847_v0 }
 0x38e   : > { %2961 = vmatpush1.msra.mxu1 %v4834_v11  ;;  %2903 = vmatprep.mubr.f32.mxu0 %v5505_v58 }
 0x38f   : > { %2963 = vmatprep.subr.mxu1 %v4818_v62  ;;  %2998 = vmatprep.mubr.f32.mxu1 %v5505_v58 }
 0x390   : > { %2965 = vmatpush1.msra.mxu1 %v4825_v8  ;;  %2905 = vmatmul.mubr.f32.gmra.mxu0 %v4998_v46 }
 0x391   : > { %3000 = vmatmul.mubr.f32.vlgmr.msra.gmra.mxu1 %v4849_v3  ;;  %2910 = vmatprep.mubr.f32.mxu0 %v5505_v58 }
 0x392   : > { %3005 = vmatprep.mubr.f32.mxu1 %v5505_v58 }
 0x394   : > { %2912 = vmatmul.mubr.f32.gmra.mxu0 %v5034_v60 }
 0x395   : > { %3007 = vmatmul.mubr.f32.gmra.mxu1 %v4945_v63 }
 0x396   : > { %3012 = vmatprep.mubr.f32.mxu1 %v5505_v58 }
 0x399   : > { %3014 = vmatmul.mubr.f32.gmra.mxu1 %v4998_v46 }
 0x39a   : > { %3019 = vmatprep.mubr.f32.mxu1 %v5505_v58  ;;  %v2219_v58 = vpop.permute.xlu1 %2218 }
 0x39d   : > { %3021 = vmatmul.mubr.f32.gmra.mxu1 %v5034_v60 }
 0x41b   : > { %v2320_v62 = vpop.f32.mrf.mxu0 }
 0x41c   : > { %v2321_v21 = vadd.f32 %v2320_v62, %v2204_v57 }
 0x41d   : > { %v2322_v8 = vpop.f32.mrf.mxu0 }
 0x41e   : > { %v2323_v38 = vadd.f32 %v2322_v8, %v2204_v57 }
 0x420   : > { %v2331_v11 = vpop.f32.mrf.mxu0 }
 0x421   : > { %v2332_v46 = vadd.f32 %v2331_v11, %v2209_v41 }
 0x422   : > { %v2333_v54 = vpop.f32.mrf.mxu0 }
 0x423   : > { %v2334_v32 = vadd.f32 %v2333_v54, %v2209_v41 }
 0x424   : > { %v2505_v0 = vpop.f32.mrf.mxu1 }
 0x425   : > { %v2342_v3 = vpop.f32.mrf.mxu0  ;;  %v2506_v7 = vadd.f32 %v2505_v0, %v2321_v21 }
 0x426   : > { %v2507_v10 = vpop.f32.mrf.mxu1  ;;  %v2343_v42 = vadd.f32 %v2342_v3, %v2214_v44 }
 0x427   : > { %v2344_v31 = vpop.f32.mrf.mxu0  ;;  %v2508_v25 = vadd.f32 %v2507_v10, %v2323_v38 }
 0x428   : > { %v2345_v17 = vadd.f32 %v2344_v31, %v2214_v44 }
 0x42a   : > { %v2353_v51 = vpop.f32.mrf.mxu0 }
 0x42b   : > { %v2512_v6 = vpop.f32.mrf.mxu1  ;;  %v2354_v40 = vadd.f32 %v2353_v51, %v2219_v58 }
 0x42c   : > { %v2355_v53 = vpop.f32.mrf.mxu0  ;;  %v2513_v23 = vadd.f32 %v2512_v6, %v2332_v46 }
 0x42d   : > { %v2514_v36 = vpop.f32.mrf.mxu1 }
 0x42e   : > { %v2515_v48 = vadd.f32 %v2514_v36, %v2334_v32  ;;  %v2356_v36 = vadd.f32 %v2355_v53, %v2219_v58 }
 0x430   : > { %v2631_v2 = vpop.f32.mrf.mxu0 }
 0x431   : > { %v2519_v56 = vpop.f32.mrf.mxu1  ;;  %v2632_v52 = vadd.f32 %v2631_v2, %v2506_v7 }
 0x432   : > { %v2633_v33 = vpop.f32.mrf.mxu0  ;;  %v2520_v37 = vadd.f32 %v2519_v56, %v2343_v42 }
 0x433   : > { %v2521_v55 = vpop.f32.mrf.mxu1  ;;  %v2634_v47 = vadd.f32 %v2633_v33, %v2508_v25 }
 0x434   : > { %v2522_v8 = vadd.f32 %v2521_v55, %v2345_v17 }
 0x436   : > { %v2526_v22 = vpop.f32.mrf.mxu1 }
 0x437   : > { %v2639_v30 = vpop.f32.mrf.mxu0  ;;  %v2527_v31 = vadd.f32 %v2526_v22, %v2354_v40 }
 0x438   : > { %v5200_v12 = vpop.f32.mrf.mxu1  ;;  %v2640_v5 = vadd.f32 %v2639_v30, %v2513_v23 }
 0x439   : > { %v2641_v26 = vpop.f32.mrf.mxu0  ;;  %v2529_v55 = vadd.f32 %v5200_v12, %v2356_v36 }
 0x43a   : > { %v2642_v24 = vadd.f32 %v2641_v26, %v2515_v48 }
 0x43c   : > { %v2745_v29 = vpop.f32.mrf.mxu1 }
 0x43d   : > { %v2647_v15 = vpop.f32.mrf.mxu0  ;;  %v2746_v14 = vadd.f32 %v2745_v29, %v2632_v52 }
 0x43e   : > { %v2747_v1 = vpop.f32.mrf.mxu1  ;;  %v2648_v11 = vadd.f32 %v2647_v15, %v2520_v37 }
 0x43f   : > { %v2649_v50 = vpop.f32.mrf.mxu0  ;;  %v2748_v43 = vadd.f32 %v2747_v1, %v2634_v47 }
 0x440   : > { %v2650_v2 = vadd.f32 %v2649_v50, %v2522_v8 }
 0x442   : > { %v2655_v35 = vpop.f32.mrf.mxu0 }
 0x443   : > { %v2754_v39 = vpop.f32.mrf.mxu1  ;;  %v2656_v15 = vadd.f32 %v2655_v35, %v2527_v31 }
 0x444   : > { %v5202_v63 = vpop.f32.mrf.mxu0  ;;  %v2755_v28 = vadd.f32 %v2754_v39, %v2640_v5 }
 0x445   : > { %v2756_v18 = vpop.f32.mrf.mxu1  ;;  %v2658_v50 = vadd.f32 %v5202_v63, %v2529_v55 }
 0x446   : > { %v2757_v0 = vadd.f32 %v2756_v18, %v2642_v24 }
 0x448   : > { %v2892_v49 = vpop.f32.mrf.mxu0 }
 0x449   : > { %v2763_v34 = vpop.f32.mrf.mxu1  ;;  %v2893_v27 = vadd.f32 %v2892_v49, %v2746_v14 }
 0x44a   : > { %v2894_v59 = vpop.f32.mrf.mxu0  ;;  %v2764_v51 = vadd.f32 %v2763_v34, %v2648_v11 }
 0x44b   : > { %v2765_v20 = vpop.f32.mrf.mxu1  ;;  %v2895_v16 = vadd.f32 %v2894_v59, %v2748_v43 }
 0x44c   : > { %v2899_v60 = vpop.f32.mrf.mxu0  ;;  %v2766_v39 = vadd.f32 %v2765_v20, %v2650_v2 }
 0x44d   : > { %v2772_v9 = vpop.f32.mrf.mxu1  ;;  %v2900_v3 = vadd.f32 %v2899_v60, %v2755_v28 }
 0x44e   : > { %v2901_v13 = vpop.f32.mrf.mxu0  ;;  %v2773_v21 = vadd.f32 %v2772_v9, %v2656_v15 }
 0x44f   : > { %v2774_v19 = vpop.f32.mrf.mxu1  ;;  %v2902_v33 = vadd.f32 %v2901_v13, %v2757_v0 }
 0x450   : > { %v2906_v4 = vpop.f32.mrf.mxu0  ;;  %v2775_v46 = vadd.f32 %v2774_v19, %v2658_v50 }
 0x451   : > { %v3001_v61 = vpop.f32.mrf.mxu1  ;;  %v2907_v18 = vadd.f32 %v2906_v4, %v2764_v51 }
 0x452   : > { %v5204_v45 = vadd.f32 %v3001_v61, %v2893_v27  ;;  %v2908_v62 = vpop.f32.mrf.mxu0 }
 0x453   : > { %v3003_v54 = vpop.f32.mrf.mxu1  ;;  %v2909_v49 = vadd.f32 %v2908_v62, %v2766_v39 }
 0x454   : > { %v3027_v10 = vsub.f32 0.0, %v5204_v45  ;;  %v5207_v6 = vadd.f32 %v3003_v54, %v2895_v16  ;;  %v2913_v29 = vpop.f32.mrf.mxu0 }
 0x455   : > { %v3008_v56 = vpop.f32.mrf.mxu1  ;;  %v2914_v59 = vadd.f32 %v2913_v29, %v2773_v21 }
 0x456   : > { %v3035_v30 = vmul.f32 1.442695, %v3027_v10  ;;  %v3028_v26 = vsub.f32 0.0, %v5207_v6  ;;  %v5210_v1 = vadd.f32 %v3008_v56, %v2900_v3  ;;  %v2915_v7 = vpop.f32.mrf.mxu0 }
 0x457   : > { %v3010_v57 = vpop.f32.mrf.mxu1  ;;  %v2916_v44 = vadd.f32 %v2915_v7, %v2775_v46 }
 0x458   : > { %3282 = vpow2.f32 %v3035_v30  ;;  %v3037_v41 = vmul.f32 1.442695, %v3028_v26  ;;  %v3029_v53 = vsub.f32 0.0, %v5210_v1  ;;  %v5214_v22 = vadd.f32 %v3010_v57, %v2902_v33 }
 0x459   : > { %v3015_v34 = vpop.f32.mrf.mxu1 }
 0x45a   : > { %3284 = vpow2.f32 %v3037_v41  ;;  %v3039_v38 = vmul.f32 1.442695, %v3029_v53  ;;  %v3030_v12 = vsub.f32 0.0, %v5214_v22  ;;  %v5218_v35 = vadd.f32 %v3015_v34, %v2907_v18 }
 0x45b   : > { %v3017_v20 = vpop.f32.mrf.mxu1 }
 0x45c   : > { %3286 = vpow2.f32 %v3039_v38  ;;  %v3041_v25 = vmul.f32 1.442695, %v3030_v12  ;;  %v3031_v52 = vsub.f32 0.0, %v5218_v35  ;;  %v3018_v60 = vadd.f32 %v3017_v20, %v2909_v49 }
 0x45d   : > { %v3022_v63 = vpop.f32.mrf.mxu1 }
 0x45e   : > { %3288 = vpow2.f32 %v3041_v25  ;;  %v3043_v9 = vmul.f32 1.442695, %v3031_v52  ;;  %v3032_v32 = vsub.f32 0.0, %v3018_v60  ;;  %v3023_v23 = vadd.f32 %v3022_v63, %v2914_v59 }
 0x45f   : > { %v3024_v47 = vpop.f32.mrf.mxu1 }
 0x460   : > { %3290 = vpow2.f32 %v3043_v9  ;;  %v3045_v58 = vmul.f32 1.442695, %v3032_v32  ;;  %v3033_v14 = vsub.f32 0.0, %v3023_v23  ;;  %v3025_v13 = vadd.f32 %v3024_v47, %v2916_v44 }
 0x462   : > { %3292 = vpow2.f32 %v3045_v58  ;;  %v3047_v42 = vmul.f32 1.442695, %v3033_v14  ;;  %v3034_v19 = vsub.f32 0.0, %v3025_v13 }
 0x464   : > { %3294 = vpow2.f32 %v3047_v42  ;;  %v3049_v48 = vmul.f32 1.442695, %v3034_v19 }
 0x465   : > { %v3283_v5 = vpop.eup %3282 }
 0x466   : > { %v3051_v43 = vadd.f32 1.0, %v3283_v5  ;;  %3296 = vpow2.f32 %v3049_v48 }
 0x467   : > { %v3285_v27 = vpop.eup %3284 }
 0x468   : > { %3298 = vrcp.f32 %v3051_v43  ;;  %v3052_v4 = vadd.f32 1.0, %v3285_v27 }
 0x469   : > { %v3287_v17 = vpop.eup %3286 }
 0x46a   : > { %3300 = vrcp.f32 %v3052_v4  ;;  %v3053_v37 = vadd.f32 1.0, %v3287_v17 }
 0x46b   : > { %v3289_v40 = vpop.eup %3288 }
 0x46c   : > { %3302 = vrcp.f32 %v3053_v37  ;;  %v3054_v61 = vadd.f32 1.0, %v3289_v40 }
 0x46d   : > { %v3291_v24 = vpop.eup %3290 }
 0x46e   : > { %3304 = vrcp.f32 %v3054_v61  ;;  %v3055_v28 = vadd.f32 1.0, %v3291_v24 }
 0x46f   : > { %v3293_v16 = vpop.eup %3292 }
 0x470   : > { %3306 = vrcp.f32 %v3055_v28  ;;  %v3056_v62 = vadd.f32 1.0, %v3293_v16 }
 0x471   : > { %v3295_v8 = vpop.eup %3294 }
 0x472   : > { %3308 = vrcp.f32 %v3056_v62  ;;  %v3057_v11 = vadd.f32 1.0, %v3295_v8 }
 0x473   : > { %v3297_v54 = vpop.eup %3296 }
 0x474   : > { %3310 = vrcp.f32 %v3057_v11  ;;  %v3058_v0 = vadd.f32 1.0, %v3297_v54 }
 0x475   : > { %v3299_v3 = vpop.eup %3298 }
 0x476   : > { %v3075_v10 = vmul.f32 %v3299_v3, %v5204_v45  ;;  %3312 = vrcp.f32 %v3058_v0 }
 0x477   : > { %v3301_v36 = vpop.eup %3300 }
 0x478   : > { %3083 = vst [vmem:[%s269_s15] sm:$0xff] %v3075_v10  ;;  %v3076_v31 = vmul.f32 %v3301_v36, %v5207_v6 }
 0x479   : > { %v3303_v2 = vpop.eup %3302 }
 0x47a   : > { %3084 = vst [vmem:[%s269_s15 + $0x8] sm:$0xff] %v3076_v31  ;;  %v3077_v51 = vmul.f32 %v3303_v2, %v5210_v1 }
 0x47b   : > { %v3305_v56 = vpop.eup %3304 }
 0x47c   : > { %3085 = vst [vmem:[%s269_s15 + $0x10] sm:$0xff] %v3077_v51  ;;  %v3078_v33 = vmul.f32 %v3305_v56, %v5214_v22 }
 0x47d   : > { %v3307_v30 = vpop.eup %3306 }
 0x47e   : > { %3086 = vst [vmem:[%s269_s15 + $0x18] sm:$0xff] %v3078_v33  ;;  %v3079_v45 = vmul.f32 %v3307_v30, %v5218_v35 }
 0x47f   : > { %v3309_v26 = vpop.eup %3308 }
 0x480   : > { %3087 = vst [vmem:[%s269_s15 + $0x20] sm:$0xff] %v3079_v45  ;;  %v3080_v29 = vmul.f32 %v3309_v26, %v3018_v60 }
 0x481   : > { %v3311_v55 = vpop.eup %3310 }
 0x482   : > { %3088 = vst [vmem:[%s269_s15 + $0x28] sm:$0xff] %v3080_v29  ;;  %v3081_v6 = vmul.f32 %v3311_v55, %v3023_v23 }
 0x483   : > { %v3313_v15 = vpop.eup %3312 }
 0x484   : > { %3089 = vst [vmem:[%s269_s15 + $0x30] sm:$0xff] %v3081_v6  ;;  %v3082_v1 = vmul.f32 %v3313_v15, %v3025_v13 }
 0x486   : > { %3090 = vst [vmem:[%s269_s15 + $0x38] sm:$0xff] %v3082_v1 }
 0x487   : > { %3355 = shalt.err (!%p3352_p10)
}
 0x488   : > { %s3356_s20 = scalar_lea.hbm %s5234_s18, 1024  ;;  %s3360_s15 = scalar_lea.hbm %s5284_s6, 2048 }
 0x489   : > { %p3357_p0 = scmp.ne.s32.totalorder %s5234_s18, %s3356_s20  ;;  %p3361_p1 = scmp.lt.s32.totalorder %s5234_s18, %s5284_s6 }
 0x48a   : > { %p3362_p3 = scmp.lt.s32.totalorder %s3360_s15, %s3356_s20 }
 0x48b   : > { %p3358_p2 = pnand %p3357_p0, %p5515_p12 }
 0x48c   : > { %p3363_p6 = por %p3362_p3, %p3361_p1 }
 0x48d   : > { %p3359_p9 = pneg %p3358_p2 }
 0x48f   : > { %p3364_p11 = pnand %p3363_p6, %p3359_p9 }
 0x491   : > { %3367 = shalt.err (!%p3364_p11)
}
 0x492   : > { %s3433_s16 = smov 256  }
 0x493   : > { %3196 = dma.vmem_to_hbm [thread:$0]  (%p5515_p12), %s5229_s17, 1024, %s5234_s18, %s3092_s8, %s3433_s16, %s3433_s16, %s3430_s12  }
 0x494 PF: > { %s3120_s7 = sand.u32 1, %s3394_s21   ;;  %p5516_p13 = scmp.ne.s32.totalorder %s5343_s10, 0 }
 0x495   : > { %p5517_p4 = scmp.ge.s32.totalorder %s3406_s24, 2  ;;  %s3121_s25 = scalar_lea.sflag [#allocation6], %s3120_s7 }
 0x497   : > { %p3203_p5 = pnand %p5517_p4, %p5516_p13 }
 0x499   : > { %p3204_p7 = pneg %p3203_p5 }
 0x49b   : > { %3389 = dma.done.wait (%p3204_p7), %s3121_s25, 1024  }
 0x49c   : > { %3391 = vsyncadd (%p3204_p7), %s3121_s25, 4294966272  ;;  %p19_p8 = scmp.ge.s32.totalorder %s3494_s27, 4   ;;  %s5518_s21 = smov %s3398_s22 }
 0x49d   : > { %s5519_s22 = smov %s3402_s23  ;;  %s5520_s23 = smov %s3506_s30 }
 0x49e   : > { %s5521_s24 = smov %s3494_s27  ;;  %21 = sbr.rel (!%p19_p8) target bundleno = 5 (0x5), region = 89 }
 0x4a3   :  { %3126 = vsyncpa [#allocation5], 1 }
 0x4a4   :  { %3128 = vsyncpa [#allocation5 + $0x1], 1 }
 0x4a5   :  { %3129 = vsyncpa [#allocation6], 1 }
 0x4a6   :  { %3131 = vsyncpa [#allocation6 + $0x1], 1 }

</bundles_post_ra>
